<compile_context>
chip_gen: v6e
topology: v6e:2x2x1
jax: 0.10.0
libtpu: 0.0.40
codegen_flags: <defaults>
</compile_context>

<pallas_src>
import functools
import math

import jax
import jax.numpy as jnp
from jax import lax
from jax.experimental import pallas as pl
from jax.experimental.pallas import tpu as pltpu


# ----------------------------------------------------------------------------
# helpers
# ----------------------------------------------------------------------------
def _pick_chunk(n, max_chunk, align=1):
    """Largest divisor of n that is <= max_chunk and a multiple of `align`
    (falls back to n itself)."""
    if n <= max_chunk:
        return n
    for c in range(max_chunk, 0, -1):
        if n % c == 0 and c % align == 0:
            return c
    return n


def _vmem_spec():
    return pl.BlockSpec(memory_space=pltpu.MemorySpace.VMEM)


# ----------------------------------------------------------------------------
# Kernel 1: fused input projection  x @ [W_ir|W_iz|W_in] + b   (both directions)
# ----------------------------------------------------------------------------
def _in_proj_kernel(x_ref, wi_ref, bi_ref, o_ref):
    """o = sum_p x[p] @ wi[p] + bi   for one GRU direction.

    x_ref : (P, Mt, Dp)  input parts (P=1 first layer; P=2 = prev fwd/bwd halves)
    wi_ref: (P, Dp, 3H)  fused input weights (gates r|z|n)
    bi_ref: (1, 3H)      [b_ir+b_hr | b_iz+b_hz | b_in]
    o_ref : (Mt, 3H)
    """
    y = jnp.dot(x_ref[0], wi_ref[0], preferred_element_type=jnp.float32)
    for p in range(1, x_ref.shape[0]):
        y = y + jnp.dot(x_ref[p], wi_ref[p], preferred_element_type=jnp.float32)
    o_ref[...] = y + bi_ref[...]


def input_projection(x_parts, w_i, b_i):
    """x_parts: (P, M, Dp); w_i: (2, P, Dp, 3H); b_i: (2, 1, 3H) -> (2, M, 3H)."""
    P, M, Dp = x_parts.shape
    ndir, _, _, H3 = w_i.shape
    Mt = _pick_chunk(M, 1024, align=8)
    nM = M // Mt
    cost = pl.CostEstimate(
        flops=int(2 * ndir * P * M * Dp * H3),
        transcendentals=0,
        bytes_accessed=int(4 * (P * M * Dp + ndir * P * Dp * H3
                                + ndir * H3 + ndir * M * H3)),
    )
    return pl.pallas_call(
        _in_proj_kernel,
        out_shape=jax.ShapeDtypeStruct((ndir, M, H3), jnp.float32),
        grid=(ndir, nM),
        in_specs=[
            pl.BlockSpec((P, Mt, Dp), lambda d, m: (0, m, 0)),
            pl.BlockSpec((None, P, Dp, H3), lambda d, m: (d, 0, 0, 0)),
            pl.BlockSpec((None, 1, H3), lambda d, m: (d, 0, 0)),
        ],
        out_specs=pl.BlockSpec((None, Mt, H3), lambda d, m: (d, m, 0)),
        compiler_params=pltpu.CompilerParams(
            dimension_semantics=("parallel", "parallel")),
        cost_estimate=cost,
    )(x_parts, w_i, b_i)


# ----------------------------------------------------------------------------
# Kernel 2: bidirectional GRU recurrence (grid = (direction, time-chunk))
# ----------------------------------------------------------------------------
def _gru_scan_kernel(xg_ref, wh_ref, bhn_ref, out_ref, h_ref, *, unroll):
    """One direction's GRU recurrence over one time chunk.

    The backward direction (program_id(0) == 1) receives its chunks in reverse
    global order via the index_map and walks each chunk in reverse, so the VMEM
    scratch h_ref carries the correct recurrent state across grid steps.

    xg_ref : (Tt, B, 3H)  precomputed x@W_i + b_i (gates r|z|n)
    wh_ref : (H, 3H)      fused hidden weights [W_hr|W_hz|W_hn]
    bhn_ref: (1, H)       b_hn (kept separate for the r*(h@W_hn + b_hn) term)
    out_ref: (Tt, B, H)   hidden states for this direction / chunk
    h_ref  : (B, H)       VMEM scratch, persists across the time-chunk grid axis
    """
    d = pl.program_id(0)

    @pl.when(pl.program_id(1) == 0)
    def _():
        h_ref[...] = jnp.zeros(h_ref.shape, h_ref.dtype)

    Tt = out_ref.shape[0]
    H = h_ref.shape[1]
    wh = wh_ref[...]
    b_hn = bhn_ref[...]

    def step(s, carry):
        t = s + d * (Tt - 1 - 2 * s)            # fwd: s ; bwd: Tt-1-s
        xg = xg_ref[t]                          # (B, 3H)
        h = h_ref[...]                          # (B, H)
        hg = jnp.dot(h, wh, preferred_element_type=jnp.float32)   # (B, 3H)
        r = jax.nn.sigmoid(xg[:, 0:H] + hg[:, 0:H])
        z = jax.nn.sigmoid(xg[:, H:2 * H] + hg[:, H:2 * H])
        n = jnp.tanh(xg[:, 2 * H:] + r * (hg[:, 2 * H:] + b_hn))
        h_new = (1.0 - z) * n + z * h
        h_ref[...] = h_new
        out_ref[t] = h_new
        return carry

    lax.fori_loop(0, Tt, step, 0, unroll=unroll)


def gru_scan(xg, w_h, b_hn):
    """xg: (2, T, B, 3H); w_h: (2, H, 3H); b_hn: (2, 1, H) -> (2, T, B, H)."""
    ndir, T, B, H3 = xg.shape
    H = H3 // 3
    Tt = _pick_chunk(T, 128)
    nT = T // Tt
    unroll = True if Tt <= 16 else 8

    def time_block(d, i):
        return i + d * (nT - 1 - 2 * i)         # fwd: i ; bwd: nT-1-i

    cost = pl.CostEstimate(
        flops=int(ndir * T * (2 * B * H * H3 + 12 * B * H)),
        transcendentals=int(3 * ndir * T * B * H),
        bytes_accessed=int(4 * (ndir * T * B * H3 + ndir * H * H3
                                + ndir * H + ndir * T * B * H)),
    )
    return pl.pallas_call(
        functools.partial(_gru_scan_kernel, unroll=unroll),
        out_shape=jax.ShapeDtypeStruct((ndir, T, B, H), jnp.float32),
        grid=(ndir, nT),
        in_specs=[
            pl.BlockSpec((None, Tt, B, H3),
                         lambda d, i: (d, time_block(d, i), 0, 0)),
            pl.BlockSpec((None, H, H3), lambda d, i: (d, 0, 0)),
            pl.BlockSpec((None, 1, H), lambda d, i: (d, 0, 0)),
        ],
        out_specs=pl.BlockSpec((None, Tt, B, H),
                               lambda d, i: (d, time_block(d, i), 0, 0)),
        scratch_shapes=[pltpu.VMEM((B, H), jnp.float32)],
        compiler_params=pltpu.CompilerParams(
            dimension_semantics=("parallel", "arbitrary"),
            vmem_limit_bytes=32 * 1024 * 1024,
        ),
        cost_estimate=cost,
    )(xg, w_h, b_hn)


# ----------------------------------------------------------------------------
# Kernel 3: fused MLP head (all Linears + ReLUs, concat folded into Linear 0)
# ----------------------------------------------------------------------------
def _make_mlp_kernel(n_linear):
    def kernel(*refs):
        xf_ref, xb_ref = refs[0], refs[1]
        o_ref = refs[-1]
        w = refs[2:-1]
        # first Linear: concat([fwd, bwd]) @ W == fwd @ W[:H] + bwd @ W[H:]
        h = (jnp.dot(xf_ref[...], w[0][...], preferred_element_type=jnp.float32)
             + jnp.dot(xb_ref[...], w[1][...], preferred_element_type=jnp.float32)
             + w[2][...])
        k = 3
        for li in range(1, n_linear):
            h = jnp.maximum(h, 0.0)             # ReLU between Linears, not after last
            h = jnp.dot(h, w[k][...], preferred_element_type=jnp.float32) + w[k + 1][...]
            k += 2
        o_ref[...] = h
    return kernel


def mlp_head(x_fwd, x_bwd, mlp_params):
    """x_fwd, x_bwd: (B, H); mlp_params: [(W (Fin,Fout), b (1,Fout)), ...]."""
    B, H = x_fwd.shape
    n_linear = len(mlp_params)
    w0, b0 = mlp_params[0]
    args = [x_fwd, x_bwd, w0[:H], w0[H:], b0]
    for w, b in mlp_params[1:]:
        args.extend([w, b])
    out_dim = mlp_params[-1][0].shape[1]
    return pl.pallas_call(
        _make_mlp_kernel(n_linear),
        out_shape=jax.ShapeDtypeStruct((B, out_dim), jnp.float32),
        in_specs=[_vmem_spec() for _ in args],
        out_specs=_vmem_spec(),
    )(*args)


# ----------------------------------------------------------------------------
# Full forward pass
# ----------------------------------------------------------------------------
def zgru_forward(x, gru_params, mlp_params):
    """x: (B, T, D) batch_first (like the PyTorch module). Returns (B, output_size)."""
    B, T, _ = x.shape
    x_tm = jnp.transpose(x, (1, 0, 2)).astype(jnp.float32)      # (T, B, D) time-major
    x_parts = x_tm.reshape(1, T * B, x_tm.shape[-1])            # (P=1, T*B, D)
    out = None
    for lp in gru_params:
        H3 = lp["w_i"].shape[-1]
        H = H3 // 3
        xg = input_projection(x_parts, lp["w_i"], lp["b_i"])    # (2, T*B, 3H)
        xg = xg.reshape(2, T, B, H3)
        out = gru_scan(xg, lp["w_h"], lp["b_hn"])               # (2, T, B, H)
        x_parts = out.reshape(2, T * B, H)                      # next layer's 2 parts
    # output[:, -1] in the PyTorch module == [h_fwd(T-1) | h_bwd(T-1)]
    return mlp_head(out[0, T - 1], out[1, T - 1], mlp_params)


# ----------------------------------------------------------------------------
# Deterministic parameter construction (mirrors nn.GRU / nn.Linear, fused layout)
# ----------------------------------------------------------------------------
def make_params(key, input_size, hidden_size, n_layers, output_size, n_lls=1):
    """Bidirectional GRU + Linear head params in the fused layouts used above."""
    H = hidden_size
    gruout = 2 * H
    k_gru = 1.0 / math.sqrt(H)

    def uni(k, shape, bound):
        return jax.random.uniform(k, shape, jnp.float32, minval=-bound, maxval=bound)

    gru_params = []
    for layer in range(n_layers):
        D_l = input_size if layer == 0 else gruout
        w_i, b_i, w_h, b_hn = [], [], [], []
        for _ in range(2):                                       # fwd, bwd
            key, k0, k1, k2, k3 = jax.random.split(key, 5)
            # PyTorch layout: weight_ih (3H, D), weight_hh (3H, H), gate order r,z,n
            w_ih = uni(k0, (3 * H, D_l), k_gru)
            w_hh = uni(k1, (3 * H, H), k_gru)
            b_ih = uni(k2, (3 * H,), k_gru)
            b_hh = uni(k3, (3 * H,), k_gru)
            wi_t = w_ih.T                                        # (D_l, 3H)
            if layer == 0:
                w_i.append(wi_t[None])                           # (1, D_l, 3H)
            else:
                # split rows: [:H] multiply prev fwd half, [H:] multiply prev bwd half
                w_i.append(jnp.stack([wi_t[:H], wi_t[H:]]))      # (2, H, 3H)
            bx = jnp.concatenate([
                b_ih[0 * H:1 * H] + b_hh[0 * H:1 * H],           # r: b_ir + b_hr
                b_ih[1 * H:2 * H] + b_hh[1 * H:2 * H],           # z: b_iz + b_hz
                b_ih[2 * H:3 * H],                               # n: b_in (b_hn separate)
            ]).reshape(1, 3 * H)
            b_i.append(bx)
            w_h.append(w_hh.T)                                   # (H, 3H)
            b_hn.append(b_hh[2 * H:3 * H].reshape(1, H))
        gru_params.append({
            "w_i": jnp.stack(w_i),                               # (2, P, D_part, 3H)
            "b_i": jnp.stack(b_i),                               # (2, 1, 3H)
            "w_h": jnp.stack(w_h),                               # (2, H, 3H)
            "b_hn": jnp.stack(b_hn),                             # (2, 1, H)
        })

    mlp_params = []
    dims = [gruout] * n_lls + [output_size]                      # (n_lls-1) Linear+ReLU, final Linear
    for i in range(len(dims) - 1):
        fin, fout = dims[i], dims[i + 1]
        k_lin = 1.0 / math.sqrt(fin)
        key, kw, kb = jax.random.split(key, 3)
        w = uni(kw, (fout, fin), k_lin).T                        # stored (Fin, Fout)
        b = uni(kb, (fout,), k_lin).reshape(1, fout)
        mlp_params.append((w, b))
    return gru_params, mlp_params


# ----------------------------------------------------------------------------
# Pure-JAX reference (same fused params) for a structural correctness check
# ----------------------------------------------------------------------------
def zgru_reference(x, gru_params, mlp_params):
    B, T, _ = x.shape
    seq = jnp.transpose(x, (1, 0, 2)).astype(jnp.float32)        # (T, B, D)
    parts = seq[None]                                            # (P, T, B, Dp)
    for lp in gru_params:
        H = lp["w_h"].shape[1]
        outs = []
        for d in range(2):
            wi, bi = lp["w_i"][d], lp["b_i"][d]
            wh, bhn = lp["w_h"][d], lp["b_hn"][d]
            xg = sum(jnp.einsum("tbd,dh->tbh", parts[p], wi[p])
                     for p in range(parts.shape[0])) + bi
            ts = range(T) if d == 0 else range(T - 1, -1, -1)
            h = jnp.zeros((B, H), jnp.float32)
            out_d = [None] * T
            for t in ts:
                g = xg[t]
                hg = h @ wh
                r = jax.nn.sigmoid(g[:, :H] + hg[:, :H])
                z = jax.nn.sigmoid(g[:, H:2 * H] + hg[:, H:2 * H])
                n = jnp.tanh(g[:, 2 * H:] + r * (hg[:, 2 * H:] + bhn))
                h = (1.0 - z) * n + z * h
                out_d[t] = h
            outs.append(jnp.stack(out_d))                        # (T, B, H)
        parts = jnp.stack(outs)                                  # (2, T, B, H)
    feat = jnp.concatenate([parts[0, T - 1], parts[1, T - 1]], axis=-1)
    h = feat
    for i, (w, b) in enumerate(mlp_params):
        h = h @ w + b
        if i < len(mlp_params) - 1:
            h = jnp.maximum(h, 0.0)
    return h


# ----------------------------------------------------------------------------
if __name__ == "__main__":
    # Small shapes consistent with the module's forward pass.
    batch, seq, input_size = 2, 8, 16
    hidden_size, n_layers, output_size = 32, 2, 8
    n_lls = 2

    key = jax.random.PRNGKey(0)
    key, kx, kp = jax.random.split(key, 3)
    x = jax.random.normal(kx, (batch, seq, input_size), jnp.float32)

    gru_params, mlp_params = make_params(
        kp, input_size, hidden_size, n_layers, output_size, n_lls=n_lls)

    fwd = jax.jit(zgru_forward)
    z = fwd(x, gru_params, mlp_params)
    z = jax.block_until_ready(z)

    assert z.shape == (batch, output_size)
    assert bool(jnp.all(jnp.isfinite(z)))

    # Structural correctness check against a pure-JAX reference (loose tolerance
    # to allow for MXU vs XLA f32 matmul precision differences).
    with jax.default_matmul_precision("highest"):
        z_ref = zgru_reference(x, gru_params, mlp_params)
    max_diff = float(jnp.max(jnp.abs(z - z_ref)))
    assert max_diff < 5e-2, f"kernel/reference mismatch: {max_diff}"

    print("KERNEL_OK")
</pallas_src>

<mosaic_0001>
module attributes {stable_mosaic.version = 11 : i64} {
  func.func @_in_proj_kernel(%arg0: i32, %arg1: i32, %arg2: memref<2x16x32xf32, #tpu.memory_space<vmem>>, %arg3: memref<1x2x32x96xf32, #tpu.memory_space<vmem>>, %arg4: memref<1x1x96xf32, #tpu.memory_space<vmem>>, %arg5: memref<1x16x96xf32, #tpu.memory_space<vmem>>) attributes {dimension_semantics = [#tpu.dimension_semantics<parallel>, #tpu.dimension_semantics<parallel>], iteration_bounds = array<i64: 2, 1>, scalar_prefetch = 0 : i64, scratch_operands = 0 : i64, tpu.core_type = #tpu.core_type<tc>, window_params = [{transform_indices = @transform_0, window_bounds = array<i64: 2, 16, 32>}, {transform_indices = @transform_1, window_bounds = array<i64: 1, 2, 32, 96>}, {transform_indices = @transform_2, window_bounds = array<i64: 1, 1, 96>}, {transform_indices = @transform_3, window_bounds = array<i64: 1, 16, 96>}]} {
    %c0 = arith.constant 0 : index
    %c0_0 = arith.constant 0 : index
    %c0_1 = arith.constant 0 : index
    %0 = vector.load %arg2[%c0, %c0_0, %c0_1] : memref<2x16x32xf32, #tpu.memory_space<vmem>>, vector<1x16x32xf32>
    %1 = vector.shape_cast %0 : vector<1x16x32xf32> to vector<16x32xf32>
    %c0_2 = arith.constant 0 : index
    %c0_3 = arith.constant 0 : index
    %c0_4 = arith.constant 0 : index
    %c0_5 = arith.constant 0 : index
    %2 = vector.load %arg3[%c0_2, %c0_3, %c0_4, %c0_5] : memref<1x2x32x96xf32, #tpu.memory_space<vmem>>, vector<1x1x32x96xf32>
    %3 = vector.shape_cast %2 : vector<1x1x32x96xf32> to vector<32x96xf32>
    %cst = arith.constant dense<0.000000e+00> : vector<16x96xf32>
    %4 = tpu.matmul %1, %3, %cst {dimension_numbers = #tpu.dot_dimension_numbers<[1], [0], [0], [1], [0, 0, 1, 1], [], []>} : vector<16x32xf32>, vector<32x96xf32>, vector<16x96xf32> -> vector<16x96xf32>
    %c1 = arith.constant 1 : index
    %c0_6 = arith.constant 0 : index
    %c0_7 = arith.constant 0 : index
    %5 = vector.load %arg2[%c1, %c0_6, %c0_7] : memref<2x16x32xf32, #tpu.memory_space<vmem>>, vector<1x16x32xf32>
    %6 = vector.shape_cast %5 : vector<1x16x32xf32> to vector<16x32xf32>
    %c0_8 = arith.constant 0 : index
    %c1_9 = arith.constant 1 : index
    %c0_10 = arith.constant 0 : index
    %c0_11 = arith.constant 0 : index
    %7 = vector.load %arg3[%c0_8, %c1_9, %c0_10, %c0_11] : memref<1x2x32x96xf32, #tpu.memory_space<vmem>>, vector<1x1x32x96xf32>
    %8 = vector.shape_cast %7 : vector<1x1x32x96xf32> to vector<32x96xf32>
    %cst_12 = arith.constant dense<0.000000e+00> : vector<16x96xf32>
    %9 = tpu.matmul %6, %8, %cst_12 {dimension_numbers = #tpu.dot_dimension_numbers<[1], [0], [0], [1], [0, 0, 1, 1], [], []>} : vector<16x32xf32>, vector<32x96xf32>, vector<16x96xf32> -> vector<16x96xf32>
    %10 = arith.addf %4, %9 : vector<16x96xf32>
    %c0_13 = arith.constant 0 : index
    %c0_14 = arith.constant 0 : index
    %c0_15 = arith.constant 0 : index
    %11 = vector.load %arg4[%c0_13, %c0_14, %c0_15] : memref<1x1x96xf32, #tpu.memory_space<vmem>>, vector<1x1x96xf32>
    %12 = vector.shape_cast %11 : vector<1x1x96xf32> to vector<1x96xf32>
    %13 = vector.broadcast %12 : vector<1x96xf32> to vector<16x96xf32>
    %14 = arith.addf %10, %13 : vector<16x96xf32>
    %c0_16 = arith.constant 0 : index
    %c0_17 = arith.constant 0 : index
    %c0_18 = arith.constant 0 : index
    %15 = vector.load %arg5[%c0_16, %c0_17, %c0_18] : memref<1x16x96xf32, #tpu.memory_space<vmem>>, vector<1x16x96xf32>
    %16 = vector.shape_cast %15 : vector<1x16x96xf32> to vector<16x96xf32>
    %17 = vector.shape_cast %14 : vector<16x96xf32> to vector<1x16x96xf32>
    tpu.vector_store %arg5[%c0_16, %c0_17, %c0_18], %17 {strides = array<i32>} : memref<1x16x96xf32, #tpu.memory_space<vmem>>, vector<1x16x96xf32>,
    return
  }
  func.func @transform_0(%arg0: i32, %arg1: i32) -> (i32, i32, i32) {
    %c0_i32 = arith.constant 0 : i32
    %c0_i32_0 = arith.constant 0 : i32
    %c0_i32_1 = arith.constant 0 : i32
    return %c0_i32, %arg1, %c0_i32_0 : i32, i32, i32
  }
  func.func @transform_1(%arg0: i32, %arg1: i32) -> (i32, i32, i32, i32) {
    %c0_i32 = arith.constant 0 : i32
    %c0_i32_0 = arith.constant 0 : i32
    %c0_i32_1 = arith.constant 0 : i32
    %c0_i32_2 = arith.constant 0 : i32
    return %arg0, %c0_i32, %c0_i32_0, %c0_i32_1 : i32, i32, i32, i32
  }
  func.func @transform_2(%arg0: i32, %arg1: i32) -> (i32, i32, i32) {
    %c0_i32 = arith.constant 0 : i32
    %c0_i32_0 = arith.constant 0 : i32
    %c0_i32_1 = arith.constant 0 : i32
    return %arg0, %c0_i32, %c0_i32_0 : i32, i32, i32
  }
  func.func @transform_3(%arg0: i32, %arg1: i32) -> (i32, i32, i32) {
    %c0_i32 = arith.constant 0 : i32
    %c0_i32_0 = arith.constant 0 : i32
    return %arg0, %arg1, %c0_i32 : i32, i32, i32
  }
}

module attributes {stable_mosaic.version = 11 : i64} {
  func.func @_in_proj_kernel(%arg0: i32, %arg1: i32, %arg2: memref<1x16x16xf32, #tpu.memory_space<vmem>>, %arg3: memref<1x1x16x96xf32, #tpu.memory_space<vmem>>, %arg4: memref<1x1x96xf32, #tpu.memory_space<vmem>>, %arg5: memref<1x16x96xf32, #tpu.memory_space<vmem>>) attributes {dimension_semantics = [#tpu.dimension_semantics<parallel>, #tpu.dimension_semantics<parallel>], iteration_bounds = array<i64: 2, 1>, scalar_prefetch = 0 : i64, scratch_operands = 0 : i64, tpu.core_type = #tpu.core_type<tc>, window_params = [{transform_indices = @transform_0, window_bounds = array<i64: 1, 16, 16>}, {transform_indices = @transform_1, window_bounds = array<i64: 1, 1, 16, 96>}, {transform_indices = @transform_2, window_bounds = array<i64: 1, 1, 96>}, {transform_indices = @transform_3, window_bounds = array<i64: 1, 16, 96>}]} {
    %c0 = arith.constant 0 : index
    %c0_0 = arith.constant 0 : index
    %c0_1 = arith.constant 0 : index
    %0 = vector.load %arg2[%c0, %c0_0, %c0_1] : memref<1x16x16xf32, #tpu.memory_space<vmem>>, vector<1x16x16xf32>
    %1 = vector.shape_cast %0 : vector<1x16x16xf32> to vector<16x16xf32>
    %c0_2 = arith.constant 0 : index
    %c0_3 = arith.constant 0 : index
    %c0_4 = arith.constant 0 : index
    %c0_5 = arith.constant 0 : index
    %2 = vector.load %arg3[%c0_2, %c0_3, %c0_4, %c0_5] : memref<1x1x16x96xf32, #tpu.memory_space<vmem>>, vector<1x1x16x96xf32>
    %3 = vector.shape_cast %2 : vector<1x1x16x96xf32> to vector<16x96xf32>
    %cst = arith.constant dense<0.000000e+00> : vector<16x96xf32>
    %4 = tpu.matmul %1, %3, %cst {dimension_numbers = #tpu.dot_dimension_numbers<[1], [0], [0], [1], [0, 0, 1, 1], [], []>} : vector<16x16xf32>, vector<16x96xf32>, vector<16x96xf32> -> vector<16x96xf32>
    %c0_6 = arith.constant 0 : index
    %c0_7 = arith.constant 0 : index
    %c0_8 = arith.constant 0 : index
    %5 = vector.load %arg4[%c0_6, %c0_7, %c0_8] : memref<1x1x96xf32, #tpu.memory_space<vmem>>, vector<1x1x96xf32>
    %6 = vector.shape_cast %5 : vector<1x1x96xf32> to vector<1x96xf32>
    %7 = vector.broadcast %6 : vector<1x96xf32> to vector<16x96xf32>
    %8 = arith.addf %4, %7 : vector<16x96xf32>
    %c0_9 = arith.constant 0 : index
    %c0_10 = arith.constant 0 : index
    %c0_11 = arith.constant 0 : index
    %9 = vector.load %arg5[%c0_9, %c0_10, %c0_11] : memref<1x16x96xf32, #tpu.memory_space<vmem>>, vector<1x16x96xf32>
    %10 = vector.shape_cast %9 : vector<1x16x96xf32> to vector<16x96xf32>
    %11 = vector.shape_cast %8 : vector<16x96xf32> to vector<1x16x96xf32>
    tpu.vector_store %arg5[%c0_9, %c0_10, %c0_11], %11 {strides = array<i32>} : memref<1x16x96xf32, #tpu.memory_space<vmem>>, vector<1x16x96xf32>,
    return
  }
  func.func @transform_0(%arg0: i32, %arg1: i32) -> (i32, i32, i32) {
    %c0_i32 = arith.constant 0 : i32
    %c0_i32_0 = arith.constant 0 : i32
    %c0_i32_1 = arith.constant 0 : i32
    return %c0_i32, %arg1, %c0_i32_0 : i32, i32, i32
  }
  func.func @transform_1(%arg0: i32, %arg1: i32) -> (i32, i32, i32, i32) {
    %c0_i32 = arith.constant 0 : i32
    %c0_i32_0 = arith.constant 0 : i32
    %c0_i32_1 = arith.constant 0 : i32
    %c0_i32_2 = arith.constant 0 : i32
    return %arg0, %c0_i32, %c0_i32_0, %c0_i32_1 : i32, i32, i32, i32
  }
  func.func @transform_2(%arg0: i32, %arg1: i32) -> (i32, i32, i32) {
    %c0_i32 = arith.constant 0 : i32
    %c0_i32_0 = arith.constant 0 : i32
    %c0_i32_1 = arith.constant 0 : i32
    return %arg0, %c0_i32, %c0_i32_0 : i32, i32, i32
  }
  func.func @transform_3(%arg0: i32, %arg1: i32) -> (i32, i32, i32) {
    %c0_i32 = arith.constant 0 : i32
    %c0_i32_0 = arith.constant 0 : i32
    return %arg0, %arg1, %c0_i32 : i32, i32, i32
  }
}

module attributes {stable_mosaic.version = 11 : i64} {
  func.func @_gru_scan_kernel(%arg0: i32, %arg1: i32, %arg2: memref<1x8x2x96xf32, #tpu.memory_space<vmem>>, %arg3: memref<1x32x96xf32, #tpu.memory_space<vmem>>, %arg4: memref<1x1x32xf32, #tpu.memory_space<vmem>>, %arg5: memref<1x8x2x32xf32, #tpu.memory_space<vmem>>, %arg6: memref<2x32xf32, #tpu.memory_space<vmem>>) attributes {dimension_semantics = [#tpu.dimension_semantics<parallel>, #tpu.dimension_semantics<arbitrary>], iteration_bounds = array<i64: 2, 1>, scalar_prefetch = 0 : i64, scratch_operands = 1 : i64, tpu.core_type = #tpu.core_type<tc>, window_params = [{transform_indices = @transform_0, window_bounds = array<i64: 1, 8, 2, 96>}, {transform_indices = @transform_1, window_bounds = array<i64: 1, 32, 96>}, {transform_indices = @transform_2, window_bounds = array<i64: 1, 1, 32>}, {transform_indices = @transform_3, window_bounds = array<i64: 1, 8, 2, 32>}]} {
    %c0_i32 = arith.constant 0 : i32
    %0 = arith.cmpi eq, %arg1, %c0_i32 : i32
    %1 = arith.extui %0 : i1 to i32
    %c0_i32_0 = arith.constant 0 : i32
    %2 = arith.cmpi ne, %1, %c0_i32_0 : i32
    scf.if %2 {
      %cst_134 = arith.constant 0.000000e+00 : f32
      %343 = vector.broadcast %cst_134 : f32 to vector<2x32xf32>
      %c0_135 = arith.constant 0 : index
      %c0_136 = arith.constant 0 : index
      %344 = vector.load %arg6[%c0_135, %c0_136] : memref<2x32xf32, #tpu.memory_space<vmem>>, vector<2x32xf32>
      tpu.vector_store %arg6[%c0_135, %c0_136], %343 {strides = array<i32>} : memref<2x32xf32, #tpu.memory_space<vmem>>, vector<2x32xf32>,
    } else {
    }
    %c0 = arith.constant 0 : index
    %c0_1 = arith.constant 0 : index
    %c0_2 = arith.constant 0 : index
    %3 = vector.load %arg3[%c0, %c0_1, %c0_2] : memref<1x32x96xf32, #tpu.memory_space<vmem>>, vector<1x32x96xf32>
    %4 = vector.shape_cast %3 : vector<1x32x96xf32> to vector<32x96xf32>
    %c0_3 = arith.constant 0 : index
    %c0_4 = arith.constant 0 : index
    %c0_5 = arith.constant 0 : index
    %5 = vector.load %arg4[%c0_3, %c0_4, %c0_5] : memref<1x1x32xf32, #tpu.memory_space<vmem>>, vector<1x1x32xf32>
    %6 = vector.shape_cast %5 : vector<1x1x32xf32> to vector<1x32xf32>
    %c0_i32_6 = arith.constant 0 : i32
    %c2_i32 = arith.constant 2 : i32
    %7 = arith.muli %c2_i32, %c0_i32_6 : i32
    %c7_i32 = arith.constant 7 : i32
    %8 = arith.subi %c7_i32, %7 : i32
    %9 = arith.muli %arg0, %8 : i32
    %10 = arith.addi %c0_i32_6, %9 : i32
    %c0_7 = arith.constant 0 : index
    %11 = arith.index_cast %10 : i32 to index
    %c0_8 = arith.constant 0 : index
    %c0_9 = arith.constant 0 : index
    %12 = vector.load %arg2[%c0_7, %11, %c0_8, %c0_9] : memref<1x8x2x96xf32, #tpu.memory_space<vmem>>, vector<1x1x2x96xf32>
    %13 = vector.shape_cast %12 : vector<1x1x2x96xf32> to vector<2x96xf32>
    %c0_10 = arith.constant 0 : index
    %c0_11 = arith.constant 0 : index
    %14 = vector.load %arg6[%c0_10, %c0_11] : memref<2x32xf32, #tpu.memory_space<vmem>>, vector<2x32xf32>
    %cst = arith.constant dense<0.000000e+00> : vector<2x96xf32>
    %15 = tpu.matmul %14, %4, %cst {dimension_numbers = #tpu.dot_dimension_numbers<[1], [0], [0], [1], [0, 0, 1, 1], [], []>} : vector<2x32xf32>, vector<32x96xf32>, vector<2x96xf32> -> vector<2x96xf32>
    %16 = vector.extract_strided_slice %13 {offsets = [0, 0], sizes = [2, 32], strides = [1, 1]} : vector<2x96xf32> to vector<2x32xf32>
    %17 = vector.extract_strided_slice %15 {offsets = [0, 0], sizes = [2, 32], strides = [1, 1]} : vector<2x96xf32> to vector<2x32xf32>
    %18 = arith.addf %16, %17 : vector<2x32xf32>
    %19 = arith.negf %18 : vector<2x32xf32>
    %20 = math.exp %19 : vector<2x32xf32>
    %cst_12 = arith.constant 1.000000e+00 : f32
    %21 = vector.broadcast %cst_12 : f32 to vector<2x32xf32>
    %22 = arith.addf %21, %20 : vector<2x32xf32>
    %23 = arith.divf %21, %22 : vector<2x32xf32>
    %24 = vector.extract_strided_slice %13 {offsets = [0, 32], sizes = [2, 32], strides = [1, 1]} : vector<2x96xf32> to vector<2x32xf32>
    %25 = vector.extract_strided_slice %15 {offsets = [0, 32], sizes = [2, 32], strides = [1, 1]} : vector<2x96xf32> to vector<2x32xf32>
    %26 = arith.addf %24, %25 : vector<2x32xf32>
    %27 = arith.negf %26 : vector<2x32xf32>
    %28 = math.exp %27 : vector<2x32xf32>
    %cst_13 = arith.constant 1.000000e+00 : f32
    %29 = vector.broadcast %cst_13 : f32 to vector<2x32xf32>
    %30 = arith.addf %29, %28 : vector<2x32xf32>
    %31 = arith.divf %29, %30 : vector<2x32xf32>
    %32 = vector.extract_strided_slice %13 {offsets = [0, 64], sizes = [2, 32], strides = [1, 1]} : vector<2x96xf32> to vector<2x32xf32>
    %33 = vector.extract_strided_slice %15 {offsets = [0, 64], sizes = [2, 32], strides = [1, 1]} : vector<2x96xf32> to vector<2x32xf32>
    %34 = vector.broadcast %6 : vector<1x32xf32> to vector<2x32xf32>
    %35 = arith.addf %33, %34 : vector<2x32xf32>
    %36 = arith.mulf %23, %35 : vector<2x32xf32>
    %37 = arith.addf %32, %36 : vector<2x32xf32>
    %38 = math.tanh %37 : vector<2x32xf32>
    %cst_14 = arith.constant 1.000000e+00 : f32
    %39 = vector.broadcast %cst_14 : f32 to vector<2x32xf32>
    %40 = arith.subf %39, %31 : vector<2x32xf32>
    %41 = arith.mulf %40, %38 : vector<2x32xf32>
    %42 = arith.mulf %31, %14 : vector<2x32xf32>
    %43 = arith.addf %41, %42 : vector<2x32xf32>
    %c0_15 = arith.constant 0 : index
    %c0_16 = arith.constant 0 : index
    %44 = vector.load %arg6[%c0_15, %c0_16] : memref<2x32xf32, #tpu.memory_space<vmem>>, vector<2x32xf32>
    tpu.vector_store %arg6[%c0_15, %c0_16], %43 {strides = array<i32>} : memref<2x32xf32, #tpu.memory_space<vmem>>, vector<2x32xf32>,
    %c0_17 = arith.constant 0 : index
    %45 = arith.index_cast %10 : i32 to index
    %c0_18 = arith.constant 0 : index
    %c0_19 = arith.constant 0 : index
    %46 = vector.load %arg5[%c0_17, %45, %c0_18, %c0_19] : memref<1x8x2x32xf32, #tpu.memory_space<vmem>>, vector<1x1x2x32xf32>
    %47 = vector.shape_cast %46 : vector<1x1x2x32xf32> to vector<2x32xf32>
    %48 = vector.shape_cast %43 : vector<2x32xf32> to vector<1x1x2x32xf32>
    tpu.vector_store %arg5[%c0_17, %45, %c0_18, %c0_19], %48 {strides = array<i32>} : memref<1x8x2x32xf32, #tpu.memory_space<vmem>>, vector<1x1x2x32xf32>,
    %c1_i32 = arith.constant 1 : i32
    %c2_i32_20 = arith.constant 2 : i32
    %49 = arith.muli %c2_i32_20, %c1_i32 : i32
    %c7_i32_21 = arith.constant 7 : i32
    %50 = arith.subi %c7_i32_21, %49 : i32
    %51 = arith.muli %arg0, %50 : i32
    %52 = arith.addi %c1_i32, %51 : i32
    %c0_22 = arith.constant 0 : index
    %53 = arith.index_cast %52 : i32 to index
    %c0_23 = arith.constant 0 : index
    %c0_24 = arith.constant 0 : index
    %54 = vector.load %arg2[%c0_22, %53, %c0_23, %c0_24] : memref<1x8x2x96xf32, #tpu.memory_space<vmem>>, vector<1x1x2x96xf32>
    %55 = vector.shape_cast %54 : vector<1x1x2x96xf32> to vector<2x96xf32>
    %c0_25 = arith.constant 0 : index
    %c0_26 = arith.constant 0 : index
    %56 = vector.load %arg6[%c0_25, %c0_26] : memref<2x32xf32, #tpu.memory_space<vmem>>, vector<2x32xf32>
    %cst_27 = arith.constant dense<0.000000e+00> : vector<2x96xf32>
    %57 = tpu.matmul %56, %4, %cst_27 {dimension_numbers = #tpu.dot_dimension_numbers<[1], [0], [0], [1], [0, 0, 1, 1], [], []>} : vector<2x32xf32>, vector<32x96xf32>, vector<2x96xf32> -> vector<2x96xf32>
    %58 = vector.extract_strided_slice %55 {offsets = [0, 0], sizes = [2, 32], strides = [1, 1]} : vector<2x96xf32> to vector<2x32xf32>
    %59 = vector.extract_strided_slice %57 {offsets = [0, 0], sizes = [2, 32], strides = [1, 1]} : vector<2x96xf32> to vector<2x32xf32>
    %60 = arith.addf %58, %59 : vector<2x32xf32>
    %61 = arith.negf %60 : vector<2x32xf32>
    %62 = math.exp %61 : vector<2x32xf32>
    %cst_28 = arith.constant 1.000000e+00 : f32
    %63 = vector.broadcast %cst_28 : f32 to vector<2x32xf32>
    %64 = arith.addf %63, %62 : vector<2x32xf32>
    %65 = arith.divf %63, %64 : vector<2x32xf32>
    %66 = vector.extract_strided_slice %55 {offsets = [0, 32], sizes = [2, 32], strides = [1, 1]} : vector<2x96xf32> to vector<2x32xf32>
    %67 = vector.extract_strided_slice %57 {offsets = [0, 32], sizes = [2, 32], strides = [1, 1]} : vector<2x96xf32> to vector<2x32xf32>
    %68 = arith.addf %66, %67 : vector<2x32xf32>
    %69 = arith.negf %68 : vector<2x32xf32>
    %70 = math.exp %69 : vector<2x32xf32>
    %cst_29 = arith.constant 1.000000e+00 : f32
    %71 = vector.broadcast %cst_29 : f32 to vector<2x32xf32>
    %72 = arith.addf %71, %70 : vector<2x32xf32>
    %73 = arith.divf %71, %72 : vector<2x32xf32>
    %74 = vector.extract_strided_slice %55 {offsets = [0, 64], sizes = [2, 32], strides = [1, 1]} : vector<2x96xf32> to vector<2x32xf32>
    %75 = vector.extract_strided_slice %57 {offsets = [0, 64], sizes = [2, 32], strides = [1, 1]} : vector<2x96xf32> to vector<2x32xf32>
    %76 = vector.broadcast %6 : vector<1x32xf32> to vector<2x32xf32>
    %77 = arith.addf %75, %76 : vector<2x32xf32>
    %78 = arith.mulf %65, %77 : vector<2x32xf32>
    %79 = arith.addf %74, %78 : vector<2x32xf32>
    %80 = math.tanh %79 : vector<2x32xf32>
    %cst_30 = arith.constant 1.000000e+00 : f32
    %81 = vector.broadcast %cst_30 : f32 to vector<2x32xf32>
    %82 = arith.subf %81, %73 : vector<2x32xf32>
    %83 = arith.mulf %82, %80 : vector<2x32xf32>
    %84 = arith.mulf %73, %56 : vector<2x32xf32>
    %85 = arith.addf %83, %84 : vector<2x32xf32>
    %c0_31 = arith.constant 0 : index
    %c0_32 = arith.constant 0 : index
    %86 = vector.load %arg6[%c0_31, %c0_32] : memref<2x32xf32, #tpu.memory_space<vmem>>, vector<2x32xf32>
    tpu.vector_store %arg6[%c0_31, %c0_32], %85 {strides = array<i32>} : memref<2x32xf32, #tpu.memory_space<vmem>>, vector<2x32xf32>,
    %c0_33 = arith.constant 0 : index
    %87 = arith.index_cast %52 : i32 to index
    %c0_34 = arith.constant 0 : index
    %c0_35 = arith.constant 0 : index
    %88 = vector.load %arg5[%c0_33, %87, %c0_34, %c0_35] : memref<1x8x2x32xf32, #tpu.memory_space<vmem>>, vector<1x1x2x32xf32>
    %89 = vector.shape_cast %88 : vector<1x1x2x32xf32> to vector<2x32xf32>
    %90 = vector.shape_cast %85 : vector<2x32xf32> to vector<1x1x2x32xf32>
    tpu.vector_store %arg5[%c0_33, %87, %c0_34, %c0_35], %90 {strides = array<i32>} : memref<1x8x2x32xf32, #tpu.memory_space<vmem>>, vector<1x1x2x32xf32>,
    %c2_i32_36 = arith.constant 2 : i32
    %c2_i32_37 = arith.constant 2 : i32
    %91 = arith.muli %c2_i32_37, %c2_i32_36 : i32
    %c7_i32_38 = arith.constant 7 : i32
    %92 = arith.subi %c7_i32_38, %91 : i32
    %93 = arith.muli %arg0, %92 : i32
    %94 = arith.addi %c2_i32_36, %93 : i32
    %c0_39 = arith.constant 0 : index
    %95 = arith.index_cast %94 : i32 to index
    %c0_40 = arith.constant 0 : index
    %c0_41 = arith.constant 0 : index
    %96 = vector.load %arg2[%c0_39, %95, %c0_40, %c0_41] : memref<1x8x2x96xf32, #tpu.memory_space<vmem>>, vector<1x1x2x96xf32>
    %97 = vector.shape_cast %96 : vector<1x1x2x96xf32> to vector<2x96xf32>
    %c0_42 = arith.constant 0 : index
    %c0_43 = arith.constant 0 : index
    %98 = vector.load %arg6[%c0_42, %c0_43] : memref<2x32xf32, #tpu.memory_space<vmem>>, vector<2x32xf32>
    %cst_44 = arith.constant dense<0.000000e+00> : vector<2x96xf32>
    %99 = tpu.matmul %98, %4, %cst_44 {dimension_numbers = #tpu.dot_dimension_numbers<[1], [0], [0], [1], [0, 0, 1, 1], [], []>} : vector<2x32xf32>, vector<32x96xf32>, vector<2x96xf32> -> vector<2x96xf32>
    %100 = vector.extract_strided_slice %97 {offsets = [0, 0], sizes = [2, 32], strides = [1, 1]} : vector<2x96xf32> to vector<2x32xf32>
    %101 = vector.extract_strided_slice %99 {offsets = [0, 0], sizes = [2, 32], strides = [1, 1]} : vector<2x96xf32> to vector<2x32xf32>
    %102 = arith.addf %100, %101 : vector<2x32xf32>
    %103 = arith.negf %102 : vector<2x32xf32>
    %104 = math.exp %103 : vector<2x32xf32>
    %cst_45 = arith.constant 1.000000e+00 : f32
    %105 = vector.broadcast %cst_45 : f32 to vector<2x32xf32>
    %106 = arith.addf %105, %104 : vector<2x32xf32>
    %107 = arith.divf %105, %106 : vector<2x32xf32>
    %108 = vector.extract_strided_slice %97 {offsets = [0, 32], sizes = [2, 32], strides = [1, 1]} : vector<2x96xf32> to vector<2x32xf32>
    %109 = vector.extract_strided_slice %99 {offsets = [0, 32], sizes = [2, 32], strides = [1, 1]} : vector<2x96xf32> to vector<2x32xf32>
    %110 = arith.addf %108, %109 : vector<2x32xf32>
    %111 = arith.negf %110 : vector<2x32xf32>
    %112 = math.exp %111 : vector<2x32xf32>
    %cst_46 = arith.constant 1.000000e+00 : f32
    %113 = vector.broadcast %cst_46 : f32 to vector<2x32xf32>
    %114 = arith.addf %113, %112 : vector<2x32xf32>
    %115 = arith.divf %113, %114 : vector<2x32xf32>
    %116 = vector.extract_strided_slice %97 {offsets = [0, 64], sizes = [2, 32], strides = [1, 1]} : vector<2x96xf32> to vector<2x32xf32>
    %117 = vector.extract_strided_slice %99 {offsets = [0, 64], sizes = [2, 32], strides = [1, 1]} : vector<2x96xf32> to vector<2x32xf32>
    %118 = vector.broadcast %6 : vector<1x32xf32> to vector<2x32xf32>
    %119 = arith.addf %117, %118 : vector<2x32xf32>
    %120 = arith.mulf %107, %119 : vector<2x32xf32>
    %121 = arith.addf %116, %120 : vector<2x32xf32>
    %122 = math.tanh %121 : vector<2x32xf32>
    %cst_47 = arith.constant 1.000000e+00 : f32
    %123 = vector.broadcast %cst_47 : f32 to vector<2x32xf32>
    %124 = arith.subf %123, %115 : vector<2x32xf32>
    %125 = arith.mulf %124, %122 : vector<2x32xf32>
    %126 = arith.mulf %115, %98 : vector<2x32xf32>
    %127 = arith.addf %125, %126 : vector<2x32xf32>
    %c0_48 = arith.constant 0 : index
    %c0_49 = arith.constant 0 : index
    %128 = vector.load %arg6[%c0_48, %c0_49] : memref<2x32xf32, #tpu.memory_space<vmem>>, vector<2x32xf32>
    tpu.vector_store %arg6[%c0_48, %c0_49], %127 {strides = array<i32>} : memref<2x32xf32, #tpu.memory_space<vmem>>, vector<2x32xf32>,
    %c0_50 = arith.constant 0 : index
    %129 = arith.index_cast %94 : i32 to index
    %c0_51 = arith.constant 0 : index
    %c0_52 = arith.constant 0 : index
    %130 = vector.load %arg5[%c0_50, %129, %c0_51, %c0_52] : memref<1x8x2x32xf32, #tpu.memory_space<vmem>>, vector<1x1x2x32xf32>
    %131 = vector.shape_cast %130 : vector<1x1x2x32xf32> to vector<2x32xf32>
    %132 = vector.shape_cast %127 : vector<2x32xf32> to vector<1x1x2x32xf32>
    tpu.vector_store %arg5[%c0_50, %129, %c0_51, %c0_52], %132 {strides = array<i32>} : memref<1x8x2x32xf32, #tpu.memory_space<vmem>>, vector<1x1x2x32xf32>,
    %c3_i32 = arith.constant 3 : i32
    %c2_i32_53 = arith.constant 2 : i32
    %133 = arith.muli %c2_i32_53, %c3_i32 : i32
    %c7_i32_54 = arith.constant 7 : i32
    %134 = arith.subi %c7_i32_54, %133 : i32
    %135 = arith.muli %arg0, %134 : i32
    %136 = arith.addi %c3_i32, %135 : i32
    %c0_55 = arith.constant 0 : index
    %137 = arith.index_cast %136 : i32 to index
    %c0_56 = arith.constant 0 : index
    %c0_57 = arith.constant 0 : index
    %138 = vector.load %arg2[%c0_55, %137, %c0_56, %c0_57] : memref<1x8x2x96xf32, #tpu.memory_space<vmem>>, vector<1x1x2x96xf32>
    %139 = vector.shape_cast %138 : vector<1x1x2x96xf32> to vector<2x96xf32>
    %c0_58 = arith.constant 0 : index
    %c0_59 = arith.constant 0 : index
    %140 = vector.load %arg6[%c0_58, %c0_59] : memref<2x32xf32, #tpu.memory_space<vmem>>, vector<2x32xf32>
    %cst_60 = arith.constant dense<0.000000e+00> : vector<2x96xf32>
    %141 = tpu.matmul %140, %4, %cst_60 {dimension_numbers = #tpu.dot_dimension_numbers<[1], [0], [0], [1], [0, 0, 1, 1], [], []>} : vector<2x32xf32>, vector<32x96xf32>, vector<2x96xf32> -> vector<2x96xf32>
    %142 = vector.extract_strided_slice %139 {offsets = [0, 0], sizes = [2, 32], strides = [1, 1]} : vector<2x96xf32> to vector<2x32xf32>
    %143 = vector.extract_strided_slice %141 {offsets = [0, 0], sizes = [2, 32], strides = [1, 1]} : vector<2x96xf32> to vector<2x32xf32>
    %144 = arith.addf %142, %143 : vector<2x32xf32>
    %145 = arith.negf %144 : vector<2x32xf32>
    %146 = math.exp %145 : vector<2x32xf32>
    %cst_61 = arith.constant 1.000000e+00 : f32
    %147 = vector.broadcast %cst_61 : f32 to vector<2x32xf32>
    %148 = arith.addf %147, %146 : vector<2x32xf32>
    %149 = arith.divf %147, %148 : vector<2x32xf32>
    %150 = vector.extract_strided_slice %139 {offsets = [0, 32], sizes = [2, 32], strides = [1, 1]} : vector<2x96xf32> to vector<2x32xf32>
    %151 = vector.extract_strided_slice %141 {offsets = [0, 32], sizes = [2, 32], strides = [1, 1]} : vector<2x96xf32> to vector<2x32xf32>
    %152 = arith.addf %150, %151 : vector<2x32xf32>
    %153 = arith.negf %152 : vector<2x32xf32>
    %154 = math.exp %153 : vector<2x32xf32>
    %cst_62 = arith.constant 1.000000e+00 : f32
    %155 = vector.broadcast %cst_62 : f32 to vector<2x32xf32>
    %156 = arith.addf %155, %154 : vector<2x32xf32>
    %157 = arith.divf %155, %156 : vector<2x32xf32>
    %158 = vector.extract_strided_slice %139 {offsets = [0, 64], sizes = [2, 32], strides = [1, 1]} : vector<2x96xf32> to vector<2x32xf32>
    %159 = vector.extract_strided_slice %141 {offsets = [0, 64], sizes = [2, 32], strides = [1, 1]} : vector<2x96xf32> to vector<2x32xf32>
    %160 = vector.broadcast %6 : vector<1x32xf32> to vector<2x32xf32>
    %161 = arith.addf %159, %160 : vector<2x32xf32>
    %162 = arith.mulf %149, %161 : vector<2x32xf32>
    %163 = arith.addf %158, %162 : vector<2x32xf32>
    %164 = math.tanh %163 : vector<2x32xf32>
    %cst_63 = arith.constant 1.000000e+00 : f32
    %165 = vector.broadcast %cst_63 : f32 to vector<2x32xf32>
    %166 = arith.subf %165, %157 : vector<2x32xf32>
    %167 = arith.mulf %166, %164 : vector<2x32xf32>
    %168 = arith.mulf %157, %140 : vector<2x32xf32>
    %169 = arith.addf %167, %168 : vector<2x32xf32>
    %c0_64 = arith.constant 0 : index
    %c0_65 = arith.constant 0 : index
    %170 = vector.load %arg6[%c0_64, %c0_65] : memref<2x32xf32, #tpu.memory_space<vmem>>, vector<2x32xf32>
    tpu.vector_store %arg6[%c0_64, %c0_65], %169 {strides = array<i32>} : memref<2x32xf32, #tpu.memory_space<vmem>>, vector<2x32xf32>,
    %c0_66 = arith.constant 0 : index
    %171 = arith.index_cast %136 : i32 to index
    %c0_67 = arith.constant 0 : index
    %c0_68 = arith.constant 0 : index
    %172 = vector.load %arg5[%c0_66, %171, %c0_67, %c0_68] : memref<1x8x2x32xf32, #tpu.memory_space<vmem>>, vector<1x1x2x32xf32>
    %173 = vector.shape_cast %172 : vector<1x1x2x32xf32> to vector<2x32xf32>
    %174 = vector.shape_cast %169 : vector<2x32xf32> to vector<1x1x2x32xf32>
    tpu.vector_store %arg5[%c0_66, %171, %c0_67, %c0_68], %174 {strides = array<i32>} : memref<1x8x2x32xf32, #tpu.memory_space<vmem>>, vector<1x1x2x32xf32>,
    %c4_i32 = arith.constant 4 : i32
    %c2_i32_69 = arith.constant 2 : i32
    %175 = arith.muli %c2_i32_69, %c4_i32 : i32
    %c7_i32_70 = arith.constant 7 : i32
    %176 = arith.subi %c7_i32_70, %175 : i32
    %177 = arith.muli %arg0, %176 : i32
    %178 = arith.addi %c4_i32, %177 : i32
    %c0_71 = arith.constant 0 : index
    %179 = arith.index_cast %178 : i32 to index
    %c0_72 = arith.constant 0 : index
    %c0_73 = arith.constant 0 : index
    %180 = vector.load %arg2[%c0_71, %179, %c0_72, %c0_73] : memref<1x8x2x96xf32, #tpu.memory_space<vmem>>, vector<1x1x2x96xf32>
    %181 = vector.shape_cast %180 : vector<1x1x2x96xf32> to vector<2x96xf32>
    %c0_74 = arith.constant 0 : index
    %c0_75 = arith.constant 0 : index
    %182 = vector.load %arg6[%c0_74, %c0_75] : memref<2x32xf32, #tpu.memory_space<vmem>>, vector<2x32xf32>
    %cst_76 = arith.constant dense<0.000000e+00> : vector<2x96xf32>
    %183 = tpu.matmul %182, %4, %cst_76 {dimension_numbers = #tpu.dot_dimension_numbers<[1], [0], [0], [1], [0, 0, 1, 1], [], []>} : vector<2x32xf32>, vector<32x96xf32>, vector<2x96xf32> -> vector<2x96xf32>
    %184 = vector.extract_strided_slice %181 {offsets = [0, 0], sizes = [2, 32], strides = [1, 1]} : vector<2x96xf32> to vector<2x32xf32>
    %185 = vector.extract_strided_slice %183 {offsets = [0, 0], sizes = [2, 32], strides = [1, 1]} : vector<2x96xf32> to vector<2x32xf32>
    %186 = arith.addf %184, %185 : vector<2x32xf32>
    %187 = arith.negf %186 : vector<2x32xf32>
    %188 = math.exp %187 : vector<2x32xf32>
    %cst_77 = arith.constant 1.000000e+00 : f32
    %189 = vector.broadcast %cst_77 : f32 to vector<2x32xf32>
    %190 = arith.addf %189, %188 : vector<2x32xf32>
    %191 = arith.divf %189, %190 : vector<2x32xf32>
    %192 = vector.extract_strided_slice %181 {offsets = [0, 32], sizes = [2, 32], strides = [1, 1]} : vector<2x96xf32> to vector<2x32xf32>
    %193 = vector.extract_strided_slice %183 {offsets = [0, 32], sizes = [2, 32], strides = [1, 1]} : vector<2x96xf32> to vector<2x32xf32>
    %194 = arith.addf %192, %193 : vector<2x32xf32>
    %195 = arith.negf %194 : vector<2x32xf32>
    %196 = math.exp %195 : vector<2x32xf32>
    %cst_78 = arith.constant 1.000000e+00 : f32
    %197 = vector.broadcast %cst_78 : f32 to vector<2x32xf32>
    %198 = arith.addf %197, %196 : vector<2x32xf32>
    %199 = arith.divf %197, %198 : vector<2x32xf32>
    %200 = vector.extract_strided_slice %181 {offsets = [0, 64], sizes = [2, 32], strides = [1, 1]} : vector<2x96xf32> to vector<2x32xf32>
    %201 = vector.extract_strided_slice %183 {offsets = [0, 64], sizes = [2, 32], strides = [1, 1]} : vector<2x96xf32> to vector<2x32xf32>
    %202 = vector.broadcast %6 : vector<1x32xf32> to vector<2x32xf32>
    %203 = arith.addf %201, %202 : vector<2x32xf32>
    %204 = arith.mulf %191, %203 : vector<2x32xf32>
    %205 = arith.addf %200, %204 : vector<2x32xf32>
    %206 = math.tanh %205 : vector<2x32xf32>
    %cst_79 = arith.constant 1.000000e+00 : f32
    %207 = vector.broadcast %cst_79 : f32 to vector<2x32xf32>
    %208 = arith.subf %207, %199 : vector<2x32xf32>
    %209 = arith.mulf %208, %206 : vector<2x32xf32>
    %210 = arith.mulf %199, %182 : vector<2x32xf32>
    %211 = arith.addf %209, %210 : vector<2x32xf32>
    %c0_80 = arith.constant 0 : index
    %c0_81 = arith.constant 0 : index
    %212 = vector.load %arg6[%c0_80, %c0_81] : memref<2x32xf32, #tpu.memory_space<vmem>>, vector<2x32xf32>
    tpu.vector_store %arg6[%c0_80, %c0_81], %211 {strides = array<i32>} : memref<2x32xf32, #tpu.memory_space<vmem>>, vector<2x32xf32>,
    %c0_82 = arith.constant 0 : index
    %213 = arith.index_cast %178 : i32 to index
    %c0_83 = arith.constant 0 : index
    %c0_84 = arith.constant 0 : index
    %214 = vector.load %arg5[%c0_82, %213, %c0_83, %c0_84] : memref<1x8x2x32xf32, #tpu.memory_space<vmem>>, vector<1x1x2x32xf32>
    %215 = vector.shape_cast %214 : vector<1x1x2x32xf32> to vector<2x32xf32>
    %216 = vector.shape_cast %211 : vector<2x32xf32> to vector<1x1x2x32xf32>
    tpu.vector_store %arg5[%c0_82, %213, %c0_83, %c0_84], %216 {strides = array<i32>} : memref<1x8x2x32xf32, #tpu.memory_space<vmem>>, vector<1x1x2x32xf32>,
    %c5_i32 = arith.constant 5 : i32
    %c2_i32_85 = arith.constant 2 : i32
    %217 = arith.muli %c2_i32_85, %c5_i32 : i32
    %c7_i32_86 = arith.constant 7 : i32
    %218 = arith.subi %c7_i32_86, %217 : i32
    %219 = arith.muli %arg0, %218 : i32
    %220 = arith.addi %c5_i32, %219 : i32
    %c0_87 = arith.constant 0 : index
    %221 = arith.index_cast %220 : i32 to index
    %c0_88 = arith.constant 0 : index
    %c0_89 = arith.constant 0 : index
    %222 = vector.load %arg2[%c0_87, %221, %c0_88, %c0_89] : memref<1x8x2x96xf32, #tpu.memory_space<vmem>>, vector<1x1x2x96xf32>
    %223 = vector.shape_cast %222 : vector<1x1x2x96xf32> to vector<2x96xf32>
    %c0_90 = arith.constant 0 : index
    %c0_91 = arith.constant 0 : index
    %224 = vector.load %arg6[%c0_90, %c0_91] : memref<2x32xf32, #tpu.memory_space<vmem>>, vector<2x32xf32>
    %cst_92 = arith.constant dense<0.000000e+00> : vector<2x96xf32>
    %225 = tpu.matmul %224, %4, %cst_92 {dimension_numbers = #tpu.dot_dimension_numbers<[1], [0], [0], [1], [0, 0, 1, 1], [], []>} : vector<2x32xf32>, vector<32x96xf32>, vector<2x96xf32> -> vector<2x96xf32>
    %226 = vector.extract_strided_slice %223 {offsets = [0, 0], sizes = [2, 32], strides = [1, 1]} : vector<2x96xf32> to vector<2x32xf32>
    %227 = vector.extract_strided_slice %225 {offsets = [0, 0], sizes = [2, 32], strides = [1, 1]} : vector<2x96xf32> to vector<2x32xf32>
    %228 = arith.addf %226, %227 : vector<2x32xf32>
    %229 = arith.negf %228 : vector<2x32xf32>
    %230 = math.exp %229 : vector<2x32xf32>
    %cst_93 = arith.constant 1.000000e+00 : f32
    %231 = vector.broadcast %cst_93 : f32 to vector<2x32xf32>
    %232 = arith.addf %231, %230 : vector<2x32xf32>
    %233 = arith.divf %231, %232 : vector<2x32xf32>
    %234 = vector.extract_strided_slice %223 {offsets = [0, 32], sizes = [2, 32], strides = [1, 1]} : vector<2x96xf32> to vector<2x32xf32>
    %235 = vector.extract_strided_slice %225 {offsets = [0, 32], sizes = [2, 32], strides = [1, 1]} : vector<2x96xf32> to vector<2x32xf32>
    %236 = arith.addf %234, %235 : vector<2x32xf32>
    %237 = arith.negf %236 : vector<2x32xf32>
    %238 = math.exp %237 : vector<2x32xf32>
    %cst_94 = arith.constant 1.000000e+00 : f32
    %239 = vector.broadcast %cst_94 : f32 to vector<2x32xf32>
    %240 = arith.addf %239, %238 : vector<2x32xf32>
    %241 = arith.divf %239, %240 : vector<2x32xf32>
    %242 = vector.extract_strided_slice %223 {offsets = [0, 64], sizes = [2, 32], strides = [1, 1]} : vector<2x96xf32> to vector<2x32xf32>
    %243 = vector.extract_strided_slice %225 {offsets = [0, 64], sizes = [2, 32], strides = [1, 1]} : vector<2x96xf32> to vector<2x32xf32>
    %244 = vector.broadcast %6 : vector<1x32xf32> to vector<2x32xf32>
    %245 = arith.addf %243, %244 : vector<2x32xf32>
    %246 = arith.mulf %233, %245 : vector<2x32xf32>
    %247 = arith.addf %242, %246 : vector<2x32xf32>
    %248 = math.tanh %247 : vector<2x32xf32>
    %cst_95 = arith.constant 1.000000e+00 : f32
    %249 = vector.broadcast %cst_95 : f32 to vector<2x32xf32>
    %250 = arith.subf %249, %241 : vector<2x32xf32>
    %251 = arith.mulf %250, %248 : vector<2x32xf32>
    %252 = arith.mulf %241, %224 : vector<2x32xf32>
    %253 = arith.addf %251, %252 : vector<2x32xf32>
    %c0_96 = arith.constant 0 : index
    %c0_97 = arith.constant 0 : index
    %254 = vector.load %arg6[%c0_96, %c0_97] : memref<2x32xf32, #tpu.memory_space<vmem>>, vector<2x32xf32>
    tpu.vector_store %arg6[%c0_96, %c0_97], %253 {strides = array<i32>} : memref<2x32xf32, #tpu.memory_space<vmem>>, vector<2x32xf32>,
    %c0_98 = arith.constant 0 : index
    %255 = arith.index_cast %220 : i32 to index
    %c0_99 = arith.constant 0 : index
    %c0_100 = arith.constant 0 : index
    %256 = vector.load %arg5[%c0_98, %255, %c0_99, %c0_100] : memref<1x8x2x32xf32, #tpu.memory_space<vmem>>, vector<1x1x2x32xf32>
    %257 = vector.shape_cast %256 : vector<1x1x2x32xf32> to vector<2x32xf32>
    %258 = vector.shape_cast %253 : vector<2x32xf32> to vector<1x1x2x32xf32>
    tpu.vector_store %arg5[%c0_98, %255, %c0_99, %c0_100], %258 {strides = array<i32>} : memref<1x8x2x32xf32, #tpu.memory_space<vmem>>, vector<1x1x2x32xf32>,
    %c6_i32 = arith.constant 6 : i32
    %c2_i32_101 = arith.constant 2 : i32
    %259 = arith.muli %c2_i32_101, %c6_i32 : i32
    %c7_i32_102 = arith.constant 7 : i32
    %260 = arith.subi %c7_i32_102, %259 : i32
    %261 = arith.muli %arg0, %260 : i32
    %262 = arith.addi %c6_i32, %261 : i32
    %c0_103 = arith.constant 0 : index
    %263 = arith.index_cast %262 : i32 to index
    %c0_104 = arith.constant 0 : index
    %c0_105 = arith.constant 0 : index
    %264 = vector.load %arg2[%c0_103, %263, %c0_104, %c0_105] : memref<1x8x2x96xf32, #tpu.memory_space<vmem>>, vector<1x1x2x96xf32>
    %265 = vector.shape_cast %264 : vector<1x1x2x96xf32> to vector<2x96xf32>
    %c0_106 = arith.constant 0 : index
    %c0_107 = arith.constant 0 : index
    %266 = vector.load %arg6[%c0_106, %c0_107] : memref<2x32xf32, #tpu.memory_space<vmem>>, vector<2x32xf32>
    %cst_108 = arith.constant dense<0.000000e+00> : vector<2x96xf32>
    %267 = tpu.matmul %266, %4, %cst_108 {dimension_numbers = #tpu.dot_dimension_numbers<[1], [0], [0], [1], [0, 0, 1, 1], [], []>} : vector<2x32xf32>, vector<32x96xf32>, vector<2x96xf32> -> vector<2x96xf32>
    %268 = vector.extract_strided_slice %265 {offsets = [0, 0], sizes = [2, 32], strides = [1, 1]} : vector<2x96xf32> to vector<2x32xf32>
    %269 = vector.extract_strided_slice %267 {offsets = [0, 0], sizes = [2, 32], strides = [1, 1]} : vector<2x96xf32> to vector<2x32xf32>
    %270 = arith.addf %268, %269 : vector<2x32xf32>
    %271 = arith.negf %270 : vector<2x32xf32>
    %272 = math.exp %271 : vector<2x32xf32>
    %cst_109 = arith.constant 1.000000e+00 : f32
    %273 = vector.broadcast %cst_109 : f32 to vector<2x32xf32>
    %274 = arith.addf %273, %272 : vector<2x32xf32>
    %275 = arith.divf %273, %274 : vector<2x32xf32>
    %276 = vector.extract_strided_slice %265 {offsets = [0, 32], sizes = [2, 32], strides = [1, 1]} : vector<2x96xf32> to vector<2x32xf32>
    %277 = vector.extract_strided_slice %267 {offsets = [0, 32], sizes = [2, 32], strides = [1, 1]} : vector<2x96xf32> to vector<2x32xf32>
    %278 = arith.addf %276, %277 : vector<2x32xf32>
    %279 = arith.negf %278 : vector<2x32xf32>
    %280 = math.exp %279 : vector<2x32xf32>
    %cst_110 = arith.constant 1.000000e+00 : f32
    %281 = vector.broadcast %cst_110 : f32 to vector<2x32xf32>
    %282 = arith.addf %281, %280 : vector<2x32xf32>
    %283 = arith.divf %281, %282 : vector<2x32xf32>
    %284 = vector.extract_strided_slice %265 {offsets = [0, 64], sizes = [2, 32], strides = [1, 1]} : vector<2x96xf32> to vector<2x32xf32>
    %285 = vector.extract_strided_slice %267 {offsets = [0, 64], sizes = [2, 32], strides = [1, 1]} : vector<2x96xf32> to vector<2x32xf32>
    %286 = vector.broadcast %6 : vector<1x32xf32> to vector<2x32xf32>
    %287 = arith.addf %285, %286 : vector<2x32xf32>
    %288 = arith.mulf %275, %287 : vector<2x32xf32>
    %289 = arith.addf %284, %288 : vector<2x32xf32>
    %290 = math.tanh %289 : vector<2x32xf32>
    %cst_111 = arith.constant 1.000000e+00 : f32
    %291 = vector.broadcast %cst_111 : f32 to vector<2x32xf32>
    %292 = arith.subf %291, %283 : vector<2x32xf32>
    %293 = arith.mulf %292, %290 : vector<2x32xf32>
    %294 = arith.mulf %283, %266 : vector<2x32xf32>
    %295 = arith.addf %293, %294 : vector<2x32xf32>
    %c0_112 = arith.constant 0 : index
    %c0_113 = arith.constant 0 : index
    %296 = vector.load %arg6[%c0_112, %c0_113] : memref<2x32xf32, #tpu.memory_space<vmem>>, vector<2x32xf32>
    tpu.vector_store %arg6[%c0_112, %c0_113], %295 {strides = array<i32>} : memref<2x32xf32, #tpu.memory_space<vmem>>, vector<2x32xf32>,
    %c0_114 = arith.constant 0 : index
    %297 = arith.index_cast %262 : i32 to index
    %c0_115 = arith.constant 0 : index
    %c0_116 = arith.constant 0 : index
    %298 = vector.load %arg5[%c0_114, %297, %c0_115, %c0_116] : memref<1x8x2x32xf32, #tpu.memory_space<vmem>>, vector<1x1x2x32xf32>
    %299 = vector.shape_cast %298 : vector<1x1x2x32xf32> to vector<2x32xf32>
    %300 = vector.shape_cast %295 : vector<2x32xf32> to vector<1x1x2x32xf32>
    tpu.vector_store %arg5[%c0_114, %297, %c0_115, %c0_116], %300 {strides = array<i32>} : memref<1x8x2x32xf32, #tpu.memory_space<vmem>>, vector<1x1x2x32xf32>,
    %c7_i32_117 = arith.constant 7 : i32
    %c2_i32_118 = arith.constant 2 : i32
    %301 = arith.muli %c2_i32_118, %c7_i32_117 : i32
    %c7_i32_119 = arith.constant 7 : i32
    %302 = arith.subi %c7_i32_119, %301 : i32
    %303 = arith.muli %arg0, %302 : i32
    %304 = arith.addi %c7_i32_117, %303 : i32
    %c0_120 = arith.constant 0 : index
    %305 = arith.index_cast %304 : i32 to index
    %c0_121 = arith.constant 0 : index
    %c0_122 = arith.constant 0 : index
    %306 = vector.load %arg2[%c0_120, %305, %c0_121, %c0_122] : memref<1x8x2x96xf32, #tpu.memory_space<vmem>>, vector<1x1x2x96xf32>
    %307 = vector.shape_cast %306 : vector<1x1x2x96xf32> to vector<2x96xf32>
    %c0_123 = arith.constant 0 : index
    %c0_124 = arith.constant 0 : index
    %308 = vector.load %arg6[%c0_123, %c0_124] : memref<2x32xf32, #tpu.memory_space<vmem>>, vector<2x32xf32>
    %cst_125 = arith.constant dense<0.000000e+00> : vector<2x96xf32>
    %309 = tpu.matmul %308, %4, %cst_125 {dimension_numbers = #tpu.dot_dimension_numbers<[1], [0], [0], [1], [0, 0, 1, 1], [], []>} : vector<2x32xf32>, vector<32x96xf32>, vector<2x96xf32> -> vector<2x96xf32>
    %310 = vector.extract_strided_slice %307 {offsets = [0, 0], sizes = [2, 32], strides = [1, 1]} : vector<2x96xf32> to vector<2x32xf32>
    %311 = vector.extract_strided_slice %309 {offsets = [0, 0], sizes = [2, 32], strides = [1, 1]} : vector<2x96xf32> to vector<2x32xf32>
    %312 = arith.addf %310, %311 : vector<2x32xf32>
    %313 = arith.negf %312 : vector<2x32xf32>
    %314 = math.exp %313 : vector<2x32xf32>
    %cst_126 = arith.constant 1.000000e+00 : f32
    %315 = vector.broadcast %cst_126 : f32 to vector<2x32xf32>
    %316 = arith.addf %315, %314 : vector<2x32xf32>
    %317 = arith.divf %315, %316 : vector<2x32xf32>
    %318 = vector.extract_strided_slice %307 {offsets = [0, 32], sizes = [2, 32], strides = [1, 1]} : vector<2x96xf32> to vector<2x32xf32>
    %319 = vector.extract_strided_slice %309 {offsets = [0, 32], sizes = [2, 32], strides = [1, 1]} : vector<2x96xf32> to vector<2x32xf32>
    %320 = arith.addf %318, %319 : vector<2x32xf32>
    %321 = arith.negf %320 : vector<2x32xf32>
    %322 = math.exp %321 : vector<2x32xf32>
    %cst_127 = arith.constant 1.000000e+00 : f32
    %323 = vector.broadcast %cst_127 : f32 to vector<2x32xf32>
    %324 = arith.addf %323, %322 : vector<2x32xf32>
    %325 = arith.divf %323, %324 : vector<2x32xf32>
    %326 = vector.extract_strided_slice %307 {offsets = [0, 64], sizes = [2, 32], strides = [1, 1]} : vector<2x96xf32> to vector<2x32xf32>
    %327 = vector.extract_strided_slice %309 {offsets = [0, 64], sizes = [2, 32], strides = [1, 1]} : vector<2x96xf32> to vector<2x32xf32>
    %328 = vector.broadcast %6 : vector<1x32xf32> to vector<2x32xf32>
    %329 = arith.addf %327, %328 : vector<2x32xf32>
    %330 = arith.mulf %317, %329 : vector<2x32xf32>
    %331 = arith.addf %326, %330 : vector<2x32xf32>
    %332 = math.tanh %331 : vector<2x32xf32>
    %cst_128 = arith.constant 1.000000e+00 : f32
    %333 = vector.broadcast %cst_128 : f32 to vector<2x32xf32>
    %334 = arith.subf %333, %325 : vector<2x32xf32>
    %335 = arith.mulf %334, %332 : vector<2x32xf32>
    %336 = arith.mulf %325, %308 : vector<2x32xf32>
    %337 = arith.addf %335, %336 : vector<2x32xf32>
    %c0_129 = arith.constant 0 : index
    %c0_130 = arith.constant 0 : index
    %338 = vector.load %arg6[%c0_129, %c0_130] : memref<2x32xf32, #tpu.memory_space<vmem>>, vector<2x32xf32>
    tpu.vector_store %arg6[%c0_129, %c0_130], %337 {strides = array<i32>} : memref<2x32xf32, #tpu.memory_space<vmem>>, vector<2x32xf32>,
    %c0_131 = arith.constant 0 : index
    %339 = arith.index_cast %304 : i32 to index
    %c0_132 = arith.constant 0 : index
    %c0_133 = arith.constant 0 : index
    %340 = vector.load %arg5[%c0_131, %339, %c0_132, %c0_133] : memref<1x8x2x32xf32, #tpu.memory_space<vmem>>, vector<1x1x2x32xf32>
    %341 = vector.shape_cast %340 : vector<1x1x2x32xf32> to vector<2x32xf32>
    %342 = vector.shape_cast %337 : vector<2x32xf32> to vector<1x1x2x32xf32>
    tpu.vector_store %arg5[%c0_131, %339, %c0_132, %c0_133], %342 {strides = array<i32>} : memref<1x8x2x32xf32, #tpu.memory_space<vmem>>, vector<1x1x2x32xf32>,
    %c8_i32 = arith.constant 8 : i32
    return
  }
  func.func @transform_0(%arg0: i32, %arg1: i32) -> (i32, i32, i32, i32) {
    %c2_i32 = arith.constant 2 : i32
    %0 = arith.muli %c2_i32, %arg1 : i32
    %c0_i32 = arith.constant 0 : i32
    %1 = arith.subi %c0_i32, %0 : i32
    %2 = arith.muli %arg0, %1 : i32
    %3 = arith.addi %arg1, %2 : i32
    %c0_i32_0 = arith.constant 0 : i32
    %c0_i32_1 = arith.constant 0 : i32
    %c0_i32_2 = arith.constant 0 : i32
    return %arg0, %3, %c0_i32_0, %c0_i32_1 : i32, i32, i32, i32
  }
  func.func @transform_1(%arg0: i32, %arg1: i32) -> (i32, i32, i32) {
    %c0_i32 = arith.constant 0 : i32
    %c0_i32_0 = arith.constant 0 : i32
    %c0_i32_1 = arith.constant 0 : i32
    return %arg0, %c0_i32, %c0_i32_0 : i32, i32, i32
  }
  func.func @transform_2(%arg0: i32, %arg1: i32) -> (i32, i32, i32) {
    %c0_i32 = arith.constant 0 : i32
    %c0_i32_0 = arith.constant 0 : i32
    %c0_i32_1 = arith.constant 0 : i32
    return %arg0, %c0_i32, %c0_i32_0 : i32, i32, i32
  }
  func.func @transform_3(%arg0: i32, %arg1: i32) -> (i32, i32, i32, i32) {
    %c2_i32 = arith.constant 2 : i32
    %0 = arith.muli %c2_i32, %arg1 : i32
    %c0_i32 = arith.constant 0 : i32
    %1 = arith.subi %c0_i32, %0 : i32
    %2 = arith.muli %arg0, %1 : i32
    %3 = arith.addi %arg1, %2 : i32
    %c0_i32_0 = arith.constant 0 : i32
    %c0_i32_1 = arith.constant 0 : i32
    %c0_i32_2 = arith.constant 0 : i32
    return %arg0, %3, %c0_i32_0, %c0_i32_1 : i32, i32, i32, i32
  }
}

module attributes {stable_mosaic.version = 11 : i64} {
  func.func @_gru_scan_kernel(%arg0: i32, %arg1: i32, %arg2: memref<1x8x2x96xf32, #tpu.memory_space<vmem>>, %arg3: memref<1x32x96xf32, #tpu.memory_space<vmem>>, %arg4: memref<1x1x32xf32, #tpu.memory_space<vmem>>, %arg5: memref<1x8x2x32xf32, #tpu.memory_space<vmem>>, %arg6: memref<2x32xf32, #tpu.memory_space<vmem>>) attributes {dimension_semantics = [#tpu.dimension_semantics<parallel>, #tpu.dimension_semantics<arbitrary>], iteration_bounds = array<i64: 2, 1>, scalar_prefetch = 0 : i64, scratch_operands = 1 : i64, tpu.core_type = #tpu.core_type<tc>, window_params = [{transform_indices = @transform_0, window_bounds = array<i64: 1, 8, 2, 96>}, {transform_indices = @transform_1, window_bounds = array<i64: 1, 32, 96>}, {transform_indices = @transform_2, window_bounds = array<i64: 1, 1, 32>}, {transform_indices = @transform_3, window_bounds = array<i64: 1, 8, 2, 32>}]} {
    %c0_i32 = arith.constant 0 : i32
    %0 = arith.cmpi eq, %arg1, %c0_i32 : i32
    %1 = arith.extui %0 : i1 to i32
    %c0_i32_0 = arith.constant 0 : i32
    %2 = arith.cmpi ne, %1, %c0_i32_0 : i32
    scf.if %2 {
      %cst_134 = arith.constant 0.000000e+00 : f32
      %343 = vector.broadcast %cst_134 : f32 to vector<2x32xf32>
      %c0_135 = arith.constant 0 : index
      %c0_136 = arith.constant 0 : index
      %344 = vector.load %arg6[%c0_135, %c0_136] : memref<2x32xf32, #tpu.memory_space<vmem>>, vector<2x32xf32>
      tpu.vector_store %arg6[%c0_135, %c0_136], %343 {strides = array<i32>} : memref<2x32xf32, #tpu.memory_space<vmem>>, vector<2x32xf32>,
    } else {
    }
    %c0 = arith.constant 0 : index
    %c0_1 = arith.constant 0 : index
    %c0_2 = arith.constant 0 : index
    %3 = vector.load %arg3[%c0, %c0_1, %c0_2] : memref<1x32x96xf32, #tpu.memory_space<vmem>>, vector<1x32x96xf32>
    %4 = vector.shape_cast %3 : vector<1x32x96xf32> to vector<32x96xf32>
    %c0_3 = arith.constant 0 : index
    %c0_4 = arith.constant 0 : index
    %c0_5 = arith.constant 0 : index
    %5 = vector.load %arg4[%c0_3, %c0_4, %c0_5] : memref<1x1x32xf32, #tpu.memory_space<vmem>>, vector<1x1x32xf32>
    %6 = vector.shape_cast %5 : vector<1x1x32xf32> to vector<1x32xf32>
    %c0_i32_6 = arith.constant 0 : i32
    %c2_i32 = arith.constant 2 : i32
    %7 = arith.muli %c2_i32, %c0_i32_6 : i32
    %c7_i32 = arith.constant 7 : i32
    %8 = arith.subi %c7_i32, %7 : i32
    %9 = arith.muli %arg0, %8 : i32
    %10 = arith.addi %c0_i32_6, %9 : i32
    %c0_7 = arith.constant 0 : index
    %11 = arith.index_cast %10 : i32 to index
    %c0_8 = arith.constant 0 : index
    %c0_9 = arith.constant 0 : index
    %12 = vector.load %arg2[%c0_7, %11, %c0_8, %c0_9] : memref<1x8x2x96xf32, #tpu.memory_space<vmem>>, vector<1x1x2x96xf32>
    %13 = vector.shape_cast %12 : vector<1x1x2x96xf32> to vector<2x96xf32>
    %c0_10 = arith.constant 0 : index
    %c0_11 = arith.constant 0 : index
    %14 = vector.load %arg6[%c0_10, %c0_11] : memref<2x32xf32, #tpu.memory_space<vmem>>, vector<2x32xf32>
    %cst = arith.constant dense<0.000000e+00> : vector<2x96xf32>
    %15 = tpu.matmul %14, %4, %cst {dimension_numbers = #tpu.dot_dimension_numbers<[1], [0], [0], [1], [0, 0, 1, 1], [], []>} : vector<2x32xf32>, vector<32x96xf32>, vector<2x96xf32> -> vector<2x96xf32>
    %16 = vector.extract_strided_slice %13 {offsets = [0, 0], sizes = [2, 32], strides = [1, 1]} : vector<2x96xf32> to vector<2x32xf32>
    %17 = vector.extract_strided_slice %15 {offsets = [0, 0], sizes = [2, 32], strides = [1, 1]} : vector<2x96xf32> to vector<2x32xf32>
    %18 = arith.addf %16, %17 : vector<2x32xf32>
    %19 = arith.negf %18 : vector<2x32xf32>
    %20 = math.exp %19 : vector<2x32xf32>
    %cst_12 = arith.constant 1.000000e+00 : f32
    %21 = vector.broadcast %cst_12 : f32 to vector<2x32xf32>
    %22 = arith.addf %21, %20 : vector<2x32xf32>
    %23 = arith.divf %21, %22 : vector<2x32xf32>
    %24 = vector.extract_strided_slice %13 {offsets = [0, 32], sizes = [2, 32], strides = [1, 1]} : vector<2x96xf32> to vector<2x32xf32>
    %25 = vector.extract_strided_slice %15 {offsets = [0, 32], sizes = [2, 32], strides = [1, 1]} : vector<2x96xf32> to vector<2x32xf32>
    %26 = arith.addf %24, %25 : vector<2x32xf32>
    %27 = arith.negf %26 : vector<2x32xf32>
    %28 = math.exp %27 : vector<2x32xf32>
    %cst_13 = arith.constant 1.000000e+00 : f32
    %29 = vector.broadcast %cst_13 : f32 to vector<2x32xf32>
    %30 = arith.addf %29, %28 : vector<2x32xf32>
    %31 = arith.divf %29, %30 : vector<2x32xf32>
    %32 = vector.extract_strided_slice %13 {offsets = [0, 64], sizes = [2, 32], strides = [1, 1]} : vector<2x96xf32> to vector<2x32xf32>
    %33 = vector.extract_strided_slice %15 {offsets = [0, 64], sizes = [2, 32], strides = [1, 1]} : vector<2x96xf32> to vector<2x32xf32>
    %34 = vector.broadcast %6 : vector<1x32xf32> to vector<2x32xf32>
    %35 = arith.addf %33, %34 : vector<2x32xf32>
    %36 = arith.mulf %23, %35 : vector<2x32xf32>
    %37 = arith.addf %32, %36 : vector<2x32xf32>
    %38 = math.tanh %37 : vector<2x32xf32>
    %cst_14 = arith.constant 1.000000e+00 : f32
    %39 = vector.broadcast %cst_14 : f32 to vector<2x32xf32>
    %40 = arith.subf %39, %31 : vector<2x32xf32>
    %41 = arith.mulf %40, %38 : vector<2x32xf32>
    %42 = arith.mulf %31, %14 : vector<2x32xf32>
    %43 = arith.addf %41, %42 : vector<2x32xf32>
    %c0_15 = arith.constant 0 : index
    %c0_16 = arith.constant 0 : index
    %44 = vector.load %arg6[%c0_15, %c0_16] : memref<2x32xf32, #tpu.memory_space<vmem>>, vector<2x32xf32>
    tpu.vector_store %arg6[%c0_15, %c0_16], %43 {strides = array<i32>} : memref<2x32xf32, #tpu.memory_space<vmem>>, vector<2x32xf32>,
    %c0_17 = arith.constant 0 : index
    %45 = arith.index_cast %10 : i32 to index
    %c0_18 = arith.constant 0 : index
    %c0_19 = arith.constant 0 : index
    %46 = vector.load %arg5[%c0_17, %45, %c0_18, %c0_19] : memref<1x8x2x32xf32, #tpu.memory_space<vmem>>, vector<1x1x2x32xf32>
    %47 = vector.shape_cast %46 : vector<1x1x2x32xf32> to vector<2x32xf32>
    %48 = vector.shape_cast %43 : vector<2x32xf32> to vector<1x1x2x32xf32>
    tpu.vector_store %arg5[%c0_17, %45, %c0_18, %c0_19], %48 {strides = array<i32>} : memref<1x8x2x32xf32, #tpu.memory_space<vmem>>, vector<1x1x2x32xf32>,
    %c1_i32 = arith.constant 1 : i32
    %c2_i32_20 = arith.constant 2 : i32
    %49 = arith.muli %c2_i32_20, %c1_i32 : i32
    %c7_i32_21 = arith.constant 7 : i32
    %50 = arith.subi %c7_i32_21, %49 : i32
    %51 = arith.muli %arg0, %50 : i32
    %52 = arith.addi %c1_i32, %51 : i32
    %c0_22 = arith.constant 0 : index
    %53 = arith.index_cast %52 : i32 to index
    %c0_23 = arith.constant 0 : index
    %c0_24 = arith.constant 0 : index
    %54 = vector.load %arg2[%c0_22, %53, %c0_23, %c0_24] : memref<1x8x2x96xf32, #tpu.memory_space<vmem>>, vector<1x1x2x96xf32>
    %55 = vector.shape_cast %54 : vector<1x1x2x96xf32> to vector<2x96xf32>
    %c0_25 = arith.constant 0 : index
    %c0_26 = arith.constant 0 : index
    %56 = vector.load %arg6[%c0_25, %c0_26] : memref<2x32xf32, #tpu.memory_space<vmem>>, vector<2x32xf32>
    %cst_27 = arith.constant dense<0.000000e+00> : vector<2x96xf32>
    %57 = tpu.matmul %56, %4, %cst_27 {dimension_numbers = #tpu.dot_dimension_numbers<[1], [0], [0], [1], [0, 0, 1, 1], [], []>} : vector<2x32xf32>, vector<32x96xf32>, vector<2x96xf32> -> vector<2x96xf32>
    %58 = vector.extract_strided_slice %55 {offsets = [0, 0], sizes = [2, 32], strides = [1, 1]} : vector<2x96xf32> to vector<2x32xf32>
    %59 = vector.extract_strided_slice %57 {offsets = [0, 0], sizes = [2, 32], strides = [1, 1]} : vector<2x96xf32> to vector<2x32xf32>
    %60 = arith.addf %58, %59 : vector<2x32xf32>
    %61 = arith.negf %60 : vector<2x32xf32>
    %62 = math.exp %61 : vector<2x32xf32>
    %cst_28 = arith.constant 1.000000e+00 : f32
    %63 = vector.broadcast %cst_28 : f32 to vector<2x32xf32>
    %64 = arith.addf %63, %62 : vector<2x32xf32>
    %65 = arith.divf %63, %64 : vector<2x32xf32>
    %66 = vector.extract_strided_slice %55 {offsets = [0, 32], sizes = [2, 32], strides = [1, 1]} : vector<2x96xf32> to vector<2x32xf32>
    %67 = vector.extract_strided_slice %57 {offsets = [0, 32], sizes = [2, 32], strides = [1, 1]} : vector<2x96xf32> to vector<2x32xf32>
    %68 = arith.addf %66, %67 : vector<2x32xf32>
    %69 = arith.negf %68 : vector<2x32xf32>
    %70 = math.exp %69 : vector<2x32xf32>
    %cst_29 = arith.constant 1.000000e+00 : f32
    %71 = vector.broadcast %cst_29 : f32 to vector<2x32xf32>
    %72 = arith.addf %71, %70 : vector<2x32xf32>
    %73 = arith.divf %71, %72 : vector<2x32xf32>
    %74 = vector.extract_strided_slice %55 {offsets = [0, 64], sizes = [2, 32], strides = [1, 1]} : vector<2x96xf32> to vector<2x32xf32>
    %75 = vector.extract_strided_slice %57 {offsets = [0, 64], sizes = [2, 32], strides = [1, 1]} : vector<2x96xf32> to vector<2x32xf32>
    %76 = vector.broadcast %6 : vector<1x32xf32> to vector<2x32xf32>
    %77 = arith.addf %75, %76 : vector<2x32xf32>
    %78 = arith.mulf %65, %77 : vector<2x32xf32>
    %79 = arith.addf %74, %78 : vector<2x32xf32>
    %80 = math.tanh %79 : vector<2x32xf32>
    %cst_30 = arith.constant 1.000000e+00 : f32
    %81 = vector.broadcast %cst_30 : f32 to vector<2x32xf32>
    %82 = arith.subf %81, %73 : vector<2x32xf32>
    %83 = arith.mulf %82, %80 : vector<2x32xf32>
    %84 = arith.mulf %73, %56 : vector<2x32xf32>
    %85 = arith.addf %83, %84 : vector<2x32xf32>
    %c0_31 = arith.constant 0 : index
    %c0_32 = arith.constant 0 : index
    %86 = vector.load %arg6[%c0_31, %c0_32] : memref<2x32xf32, #tpu.memory_space<vmem>>, vector<2x32xf32>
    tpu.vector_store %arg6[%c0_31, %c0_32], %85 {strides = array<i32>} : memref<2x32xf32, #tpu.memory_space<vmem>>, vector<2x32xf32>,
    %c0_33 = arith.constant 0 : index
    %87 = arith.index_cast %52 : i32 to index
    %c0_34 = arith.constant 0 : index
    %c0_35 = arith.constant 0 : index
    %88 = vector.load %arg5[%c0_33, %87, %c0_34, %c0_35] : memref<1x8x2x32xf32, #tpu.memory_space<vmem>>, vector<1x1x2x32xf32>
    %89 = vector.shape_cast %88 : vector<1x1x2x32xf32> to vector<2x32xf32>
    %90 = vector.shape_cast %85 : vector<2x32xf32> to vector<1x1x2x32xf32>
    tpu.vector_store %arg5[%c0_33, %87, %c0_34, %c0_35], %90 {strides = array<i32>} : memref<1x8x2x32xf32, #tpu.memory_space<vmem>>, vector<1x1x2x32xf32>,
    %c2_i32_36 = arith.constant 2 : i32
    %c2_i32_37 = arith.constant 2 : i32
    %91 = arith.muli %c2_i32_37, %c2_i32_36 : i32
    %c7_i32_38 = arith.constant 7 : i32
    %92 = arith.subi %c7_i32_38, %91 : i32
    %93 = arith.muli %arg0, %92 : i32
    %94 = arith.addi %c2_i32_36, %93 : i32
    %c0_39 = arith.constant 0 : index
    %95 = arith.index_cast %94 : i32 to index
    %c0_40 = arith.constant 0 : index
    %c0_41 = arith.constant 0 : index
    %96 = vector.load %arg2[%c0_39, %95, %c0_40, %c0_41] : memref<1x8x2x96xf32, #tpu.memory_space<vmem>>, vector<1x1x2x96xf32>
    %97 = vector.shape_cast %96 : vector<1x1x2x96xf32> to vector<2x96xf32>
    %c0_42 = arith.constant 0 : index
    %c0_43 = arith.constant 0 : index
    %98 = vector.load %arg6[%c0_42, %c0_43] : memref<2x32xf32, #tpu.memory_space<vmem>>, vector<2x32xf32>
    %cst_44 = arith.constant dense<0.000000e+00> : vector<2x96xf32>
    %99 = tpu.matmul %98, %4, %cst_44 {dimension_numbers = #tpu.dot_dimension_numbers<[1], [0], [0], [1], [0, 0, 1, 1], [], []>} : vector<2x32xf32>, vector<32x96xf32>, vector<2x96xf32> -> vector<2x96xf32>
    %100 = vector.extract_strided_slice %97 {offsets = [0, 0], sizes = [2, 32], strides = [1, 1]} : vector<2x96xf32> to vector<2x32xf32>
    %101 = vector.extract_strided_slice %99 {offsets = [0, 0], sizes = [2, 32], strides = [1, 1]} : vector<2x96xf32> to vector<2x32xf32>
    %102 = arith.addf %100, %101 : vector<2x32xf32>
    %103 = arith.negf %102 : vector<2x32xf32>
    %104 = math.exp %103 : vector<2x32xf32>
    %cst_45 = arith.constant 1.000000e+00 : f32
    %105 = vector.broadcast %cst_45 : f32 to vector<2x32xf32>
    %106 = arith.addf %105, %104 : vector<2x32xf32>
    %107 = arith.divf %105, %106 : vector<2x32xf32>
    %108 = vector.extract_strided_slice %97 {offsets = [0, 32], sizes = [2, 32], strides = [1, 1]} : vector<2x96xf32> to vector<2x32xf32>
    %109 = vector.extract_strided_slice %99 {offsets = [0, 32], sizes = [2, 32], strides = [1, 1]} : vector<2x96xf32> to vector<2x32xf32>
    %110 = arith.addf %108, %109 : vector<2x32xf32>
    %111 = arith.negf %110 : vector<2x32xf32>
    %112 = math.exp %111 : vector<2x32xf32>
    %cst_46 = arith.constant 1.000000e+00 : f32
    %113 = vector.broadcast %cst_46 : f32 to vector<2x32xf32>
    %114 = arith.addf %113, %112 : vector<2x32xf32>
    %115 = arith.divf %113, %114 : vector<2x32xf32>
    %116 = vector.extract_strided_slice %97 {offsets = [0, 64], sizes = [2, 32], strides = [1, 1]} : vector<2x96xf32> to vector<2x32xf32>
    %117 = vector.extract_strided_slice %99 {offsets = [0, 64], sizes = [2, 32], strides = [1, 1]} : vector<2x96xf32> to vector<2x32xf32>
    %118 = vector.broadcast %6 : vector<1x32xf32> to vector<2x32xf32>
    %119 = arith.addf %117, %118 : vector<2x32xf32>
    %120 = arith.mulf %107, %119 : vector<2x32xf32>
    %121 = arith.addf %116, %120 : vector<2x32xf32>
    %122 = math.tanh %121 : vector<2x32xf32>
    %cst_47 = arith.constant 1.000000e+00 : f32
    %123 = vector.broadcast %cst_47 : f32 to vector<2x32xf32>
    %124 = arith.subf %123, %115 : vector<2x32xf32>
    %125 = arith.mulf %124, %122 : vector<2x32xf32>
    %126 = arith.mulf %115, %98 : vector<2x32xf32>
    %127 = arith.addf %125, %126 : vector<2x32xf32>
    %c0_48 = arith.constant 0 : index
    %c0_49 = arith.constant 0 : index
    %128 = vector.load %arg6[%c0_48, %c0_49] : memref<2x32xf32, #tpu.memory_space<vmem>>, vector<2x32xf32>
    tpu.vector_store %arg6[%c0_48, %c0_49], %127 {strides = array<i32>} : memref<2x32xf32, #tpu.memory_space<vmem>>, vector<2x32xf32>,
    %c0_50 = arith.constant 0 : index
    %129 = arith.index_cast %94 : i32 to index
    %c0_51 = arith.constant 0 : index
    %c0_52 = arith.constant 0 : index
    %130 = vector.load %arg5[%c0_50, %129, %c0_51, %c0_52] : memref<1x8x2x32xf32, #tpu.memory_space<vmem>>, vector<1x1x2x32xf32>
    %131 = vector.shape_cast %130 : vector<1x1x2x32xf32> to vector<2x32xf32>
    %132 = vector.shape_cast %127 : vector<2x32xf32> to vector<1x1x2x32xf32>
    tpu.vector_store %arg5[%c0_50, %129, %c0_51, %c0_52], %132 {strides = array<i32>} : memref<1x8x2x32xf32, #tpu.memory_space<vmem>>, vector<1x1x2x32xf32>,
    %c3_i32 = arith.constant 3 : i32
    %c2_i32_53 = arith.constant 2 : i32
    %133 = arith.muli %c2_i32_53, %c3_i32 : i32
    %c7_i32_54 = arith.constant 7 : i32
    %134 = arith.subi %c7_i32_54, %133 : i32
    %135 = arith.muli %arg0, %134 : i32
    %136 = arith.addi %c3_i32, %135 : i32
    %c0_55 = arith.constant 0 : index
    %137 = arith.index_cast %136 : i32 to index
    %c0_56 = arith.constant 0 : index
    %c0_57 = arith.constant 0 : index
    %138 = vector.load %arg2[%c0_55, %137, %c0_56, %c0_57] : memref<1x8x2x96xf32, #tpu.memory_space<vmem>>, vector<1x1x2x96xf32>
    %139 = vector.shape_cast %138 : vector<1x1x2x96xf32> to vector<2x96xf32>
    %c0_58 = arith.constant 0 : index
    %c0_59 = arith.constant 0 : index
    %140 = vector.load %arg6[%c0_58, %c0_59] : memref<2x32xf32, #tpu.memory_space<vmem>>, vector<2x32xf32>
    %cst_60 = arith.constant dense<0.000000e+00> : vector<2x96xf32>
    %141 = tpu.matmul %140, %4, %cst_60 {dimension_numbers = #tpu.dot_dimension_numbers<[1], [0], [0], [1], [0, 0, 1, 1], [], []>} : vector<2x32xf32>, vector<32x96xf32>, vector<2x96xf32> -> vector<2x96xf32>
    %142 = vector.extract_strided_slice %139 {offsets = [0, 0], sizes = [2, 32], strides = [1, 1]} : vector<2x96xf32> to vector<2x32xf32>
    %143 = vector.extract_strided_slice %141 {offsets = [0, 0], sizes = [2, 32], strides = [1, 1]} : vector<2x96xf32> to vector<2x32xf32>
    %144 = arith.addf %142, %143 : vector<2x32xf32>
    %145 = arith.negf %144 : vector<2x32xf32>
    %146 = math.exp %145 : vector<2x32xf32>
    %cst_61 = arith.constant 1.000000e+00 : f32
    %147 = vector.broadcast %cst_61 : f32 to vector<2x32xf32>
    %148 = arith.addf %147, %146 : vector<2x32xf32>
    %149 = arith.divf %147, %148 : vector<2x32xf32>
    %150 = vector.extract_strided_slice %139 {offsets = [0, 32], sizes = [2, 32], strides = [1, 1]} : vector<2x96xf32> to vector<2x32xf32>
    %151 = vector.extract_strided_slice %141 {offsets = [0, 32], sizes = [2, 32], strides = [1, 1]} : vector<2x96xf32> to vector<2x32xf32>
    %152 = arith.addf %150, %151 : vector<2x32xf32>
    %153 = arith.negf %152 : vector<2x32xf32>
    %154 = math.exp %153 : vector<2x32xf32>
    %cst_62 = arith.constant 1.000000e+00 : f32
    %155 = vector.broadcast %cst_62 : f32 to vector<2x32xf32>
    %156 = arith.addf %155, %154 : vector<2x32xf32>
    %157 = arith.divf %155, %156 : vector<2x32xf32>
    %158 = vector.extract_strided_slice %139 {offsets = [0, 64], sizes = [2, 32], strides = [1, 1]} : vector<2x96xf32> to vector<2x32xf32>
    %159 = vector.extract_strided_slice %141 {offsets = [0, 64], sizes = [2, 32], strides = [1, 1]} : vector<2x96xf32> to vector<2x32xf32>
    %160 = vector.broadcast %6 : vector<1x32xf32> to vector<2x32xf32>
    %161 = arith.addf %159, %160 : vector<2x32xf32>
    %162 = arith.mulf %149, %161 : vector<2x32xf32>
    %163 = arith.addf %158, %162 : vector<2x32xf32>
    %164 = math.tanh %163 : vector<2x32xf32>
    %cst_63 = arith.constant 1.000000e+00 : f32
    %165 = vector.broadcast %cst_63 : f32 to vector<2x32xf32>
    %166 = arith.subf %165, %157 : vector<2x32xf32>
    %167 = arith.mulf %166, %164 : vector<2x32xf32>
    %168 = arith.mulf %157, %140 : vector<2x32xf32>
    %169 = arith.addf %167, %168 : vector<2x32xf32>
    %c0_64 = arith.constant 0 : index
    %c0_65 = arith.constant 0 : index
    %170 = vector.load %arg6[%c0_64, %c0_65] : memref<2x32xf32, #tpu.memory_space<vmem>>, vector<2x32xf32>
    tpu.vector_store %arg6[%c0_64, %c0_65], %169 {strides = array<i32>} : memref<2x32xf32, #tpu.memory_space<vmem>>, vector<2x32xf32>,
    %c0_66 = arith.constant 0 : index
    %171 = arith.index_cast %136 : i32 to index
    %c0_67 = arith.constant 0 : index
    %c0_68 = arith.constant 0 : index
    %172 = vector.load %arg5[%c0_66, %171, %c0_67, %c0_68] : memref<1x8x2x32xf32, #tpu.memory_space<vmem>>, vector<1x1x2x32xf32>
    %173 = vector.shape_cast %172 : vector<1x1x2x32xf32> to vector<2x32xf32>
    %174 = vector.shape_cast %169 : vector<2x32xf32> to vector<1x1x2x32xf32>
    tpu.vector_store %arg5[%c0_66, %171, %c0_67, %c0_68], %174 {strides = array<i32>} : memref<1x8x2x32xf32, #tpu.memory_space<vmem>>, vector<1x1x2x32xf32>,
    %c4_i32 = arith.constant 4 : i32
    %c2_i32_69 = arith.constant 2 : i32
    %175 = arith.muli %c2_i32_69, %c4_i32 : i32
    %c7_i32_70 = arith.constant 7 : i32
    %176 = arith.subi %c7_i32_70, %175 : i32
    %177 = arith.muli %arg0, %176 : i32
    %178 = arith.addi %c4_i32, %177 : i32
    %c0_71 = arith.constant 0 : index
    %179 = arith.index_cast %178 : i32 to index
    %c0_72 = arith.constant 0 : index
    %c0_73 = arith.constant 0 : index
    %180 = vector.load %arg2[%c0_71, %179, %c0_72, %c0_73] : memref<1x8x2x96xf32, #tpu.memory_space<vmem>>, vector<1x1x2x96xf32>
    %181 = vector.shape_cast %180 : vector<1x1x2x96xf32> to vector<2x96xf32>
    %c0_74 = arith.constant 0 : index
    %c0_75 = arith.constant 0 : index
    %182 = vector.load %arg6[%c0_74, %c0_75] : memref<2x32xf32, #tpu.memory_space<vmem>>, vector<2x32xf32>
    %cst_76 = arith.constant dense<0.000000e+00> : vector<2x96xf32>
    %183 = tpu.matmul %182, %4, %cst_76 {dimension_numbers = #tpu.dot_dimension_numbers<[1], [0], [0], [1], [0, 0, 1, 1], [], []>} : vector<2x32xf32>, vector<32x96xf32>, vector<2x96xf32> -> vector<2x96xf32>
    %184 = vector.extract_strided_slice %181 {offsets = [0, 0], sizes = [2, 32], strides = [1, 1]} : vector<2x96xf32> to vector<2x32xf32>
    %185 = vector.extract_strided_slice %183 {offsets = [0, 0], sizes = [2, 32], strides = [1, 1]} : vector<2x96xf32> to vector<2x32xf32>
    %186 = arith.addf %184, %185 : vector<2x32xf32>
    %187 = arith.negf %186 : vector<2x32xf32>
    %188 = math.exp %187 : vector<2x32xf32>
    %cst_77 = arith.constant 1.000000e+00 : f32
    %189 = vector.broadcast %cst_77 : f32 to vector<2x32xf32>
    %190 = arith.addf %189, %188 : vector<2x32xf32>
    %191 = arith.divf %189, %190 : vector<2x32xf32>
    %192 = vector.extract_strided_slice %181 {offsets = [0, 32], sizes = [2, 32], strides = [1, 1]} : vector<2x96xf32> to vector<2x32xf32>
    %193 = vector.extract_strided_slice %183 {offsets = [0, 32], sizes = [2, 32], strides = [1, 1]} : vector<2x96xf32> to vector<2x32xf32>
    %194 = arith.addf %192, %193 : vector<2x32xf32>
    %195 = arith.negf %194 : vector<2x32xf32>
    %196 = math.exp %195 : vector<2x32xf32>
    %cst_78 = arith.constant 1.000000e+00 : f32
    %197 = vector.broadcast %cst_78 : f32 to vector<2x32xf32>
    %198 = arith.addf %197, %196 : vector<2x32xf32>
    %199 = arith.divf %197, %198 : vector<2x32xf32>
    %200 = vector.extract_strided_slice %181 {offsets = [0, 64], sizes = [2, 32], strides = [1, 1]} : vector<2x96xf32> to vector<2x32xf32>
    %201 = vector.extract_strided_slice %183 {offsets = [0, 64], sizes = [2, 32], strides = [1, 1]} : vector<2x96xf32> to vector<2x32xf32>
    %202 = vector.broadcast %6 : vector<1x32xf32> to vector<2x32xf32>
    %203 = arith.addf %201, %202 : vector<2x32xf32>
    %204 = arith.mulf %191, %203 : vector<2x32xf32>
    %205 = arith.addf %200, %204 : vector<2x32xf32>
    %206 = math.tanh %205 : vector<2x32xf32>
    %cst_79 = arith.constant 1.000000e+00 : f32
    %207 = vector.broadcast %cst_79 : f32 to vector<2x32xf32>
    %208 = arith.subf %207, %199 : vector<2x32xf32>
    %209 = arith.mulf %208, %206 : vector<2x32xf32>
    %210 = arith.mulf %199, %182 : vector<2x32xf32>
    %211 = arith.addf %209, %210 : vector<2x32xf32>
    %c0_80 = arith.constant 0 : index
    %c0_81 = arith.constant 0 : index
    %212 = vector.load %arg6[%c0_80, %c0_81] : memref<2x32xf32, #tpu.memory_space<vmem>>, vector<2x32xf32>
    tpu.vector_store %arg6[%c0_80, %c0_81], %211 {strides = array<i32>} : memref<2x32xf32, #tpu.memory_space<vmem>>, vector<2x32xf32>,
    %c0_82 = arith.constant 0 : index
    %213 = arith.index_cast %178 : i32 to index
    %c0_83 = arith.constant 0 : index
    %c0_84 = arith.constant 0 : index
    %214 = vector.load %arg5[%c0_82, %213, %c0_83, %c0_84] : memref<1x8x2x32xf32, #tpu.memory_space<vmem>>, vector<1x1x2x32xf32>
    %215 = vector.shape_cast %214 : vector<1x1x2x32xf32> to vector<2x32xf32>
    %216 = vector.shape_cast %211 : vector<2x32xf32> to vector<1x1x2x32xf32>
    tpu.vector_store %arg5[%c0_82, %213, %c0_83, %c0_84], %216 {strides = array<i32>} : memref<1x8x2x32xf32, #tpu.memory_space<vmem>>, vector<1x1x2x32xf32>,
    %c5_i32 = arith.constant 5 : i32
    %c2_i32_85 = arith.constant 2 : i32
    %217 = arith.muli %c2_i32_85, %c5_i32 : i32
    %c7_i32_86 = arith.constant 7 : i32
    %218 = arith.subi %c7_i32_86, %217 : i32
    %219 = arith.muli %arg0, %218 : i32
    %220 = arith.addi %c5_i32, %219 : i32
    %c0_87 = arith.constant 0 : index
    %221 = arith.index_cast %220 : i32 to index
    %c0_88 = arith.constant 0 : index
    %c0_89 = arith.constant 0 : index
    %222 = vector.load %arg2[%c0_87, %221, %c0_88, %c0_89] : memref<1x8x2x96xf32, #tpu.memory_space<vmem>>, vector<1x1x2x96xf32>
    %223 = vector.shape_cast %222 : vector<1x1x2x96xf32> to vector<2x96xf32>
    %c0_90 = arith.constant 0 : index
    %c0_91 = arith.constant 0 : index
    %224 = vector.load %arg6[%c0_90, %c0_91] : memref<2x32xf32, #tpu.memory_space<vmem>>, vector<2x32xf32>
    %cst_92 = arith.constant dense<0.000000e+00> : vector<2x96xf32>
    %225 = tpu.matmul %224, %4, %cst_92 {dimension_numbers = #tpu.dot_dimension_numbers<[1], [0], [0], [1], [0, 0, 1, 1], [], []>} : vector<2x32xf32>, vector<32x96xf32>, vector<2x96xf32> -> vector<2x96xf32>
    %226 = vector.extract_strided_slice %223 {offsets = [0, 0], sizes = [2, 32], strides = [1, 1]} : vector<2x96xf32> to vector<2x32xf32>
    %227 = vector.extract_strided_slice %225 {offsets = [0, 0], sizes = [2, 32], strides = [1, 1]} : vector<2x96xf32> to vector<2x32xf32>
    %228 = arith.addf %226, %227 : vector<2x32xf32>
    %229 = arith.negf %228 : vector<2x32xf32>
    %230 = math.exp %229 : vector<2x32xf32>
    %cst_93 = arith.constant 1.000000e+00 : f32
    %231 = vector.broadcast %cst_93 : f32 to vector<2x32xf32>
    %232 = arith.addf %231, %230 : vector<2x32xf32>
    %233 = arith.divf %231, %232 : vector<2x32xf32>
    %234 = vector.extract_strided_slice %223 {offsets = [0, 32], sizes = [2, 32], strides = [1, 1]} : vector<2x96xf32> to vector<2x32xf32>
    %235 = vector.extract_strided_slice %225 {offsets = [0, 32], sizes = [2, 32], strides = [1, 1]} : vector<2x96xf32> to vector<2x32xf32>
    %236 = arith.addf %234, %235 : vector<2x32xf32>
    %237 = arith.negf %236 : vector<2x32xf32>
    %238 = math.exp %237 : vector<2x32xf32>
    %cst_94 = arith.constant 1.000000e+00 : f32
    %239 = vector.broadcast %cst_94 : f32 to vector<2x32xf32>
    %240 = arith.addf %239, %238 : vector<2x32xf32>
    %241 = arith.divf %239, %240 : vector<2x32xf32>
    %242 = vector.extract_strided_slice %223 {offsets = [0, 64], sizes = [2, 32], strides = [1, 1]} : vector<2x96xf32> to vector<2x32xf32>
    %243 = vector.extract_strided_slice %225 {offsets = [0, 64], sizes = [2, 32], strides = [1, 1]} : vector<2x96xf32> to vector<2x32xf32>
    %244 = vector.broadcast %6 : vector<1x32xf32> to vector<2x32xf32>
    %245 = arith.addf %243, %244 : vector<2x32xf32>
    %246 = arith.mulf %233, %245 : vector<2x32xf32>
    %247 = arith.addf %242, %246 : vector<2x32xf32>
    %248 = math.tanh %247 : vector<2x32xf32>
    %cst_95 = arith.constant 1.000000e+00 : f32
    %249 = vector.broadcast %cst_95 : f32 to vector<2x32xf32>
    %250 = arith.subf %249, %241 : vector<2x32xf32>
    %251 = arith.mulf %250, %248 : vector<2x32xf32>
    %252 = arith.mulf %241, %224 : vector<2x32xf32>
    %253 = arith.addf %251, %252 : vector<2x32xf32>
    %c0_96 = arith.constant 0 : index
    %c0_97 = arith.constant 0 : index
    %254 = vector.load %arg6[%c0_96, %c0_97] : memref<2x32xf32, #tpu.memory_space<vmem>>, vector<2x32xf32>
    tpu.vector_store %arg6[%c0_96, %c0_97], %253 {strides = array<i32>} : memref<2x32xf32, #tpu.memory_space<vmem>>, vector<2x32xf32>,
    %c0_98 = arith.constant 0 : index
    %255 = arith.index_cast %220 : i32 to index
    %c0_99 = arith.constant 0 : index
    %c0_100 = arith.constant 0 : index
    %256 = vector.load %arg5[%c0_98, %255, %c0_99, %c0_100] : memref<1x8x2x32xf32, #tpu.memory_space<vmem>>, vector<1x1x2x32xf32>
    %257 = vector.shape_cast %256 : vector<1x1x2x32xf32> to vector<2x32xf32>
    %258 = vector.shape_cast %253 : vector<2x32xf32> to vector<1x1x2x32xf32>
    tpu.vector_store %arg5[%c0_98, %255, %c0_99, %c0_100], %258 {strides = array<i32>} : memref<1x8x2x32xf32, #tpu.memory_space<vmem>>, vector<1x1x2x32xf32>,
    %c6_i32 = arith.constant 6 : i32
    %c2_i32_101 = arith.constant 2 : i32
    %259 = arith.muli %c2_i32_101, %c6_i32 : i32
    %c7_i32_102 = arith.constant 7 : i32
    %260 = arith.subi %c7_i32_102, %259 : i32
    %261 = arith.muli %arg0, %260 : i32
    %262 = arith.addi %c6_i32, %261 : i32
    %c0_103 = arith.constant 0 : index
    %263 = arith.index_cast %262 : i32 to index
    %c0_104 = arith.constant 0 : index
    %c0_105 = arith.constant 0 : index
    %264 = vector.load %arg2[%c0_103, %263, %c0_104, %c0_105] : memref<1x8x2x96xf32, #tpu.memory_space<vmem>>, vector<1x1x2x96xf32>
    %265 = vector.shape_cast %264 : vector<1x1x2x96xf32> to vector<2x96xf32>
    %c0_106 = arith.constant 0 : index
    %c0_107 = arith.constant 0 : index
    %266 = vector.load %arg6[%c0_106, %c0_107] : memref<2x32xf32, #tpu.memory_space<vmem>>, vector<2x32xf32>
    %cst_108 = arith.constant dense<0.000000e+00> : vector<2x96xf32>
    %267 = tpu.matmul %266, %4, %cst_108 {dimension_numbers = #tpu.dot_dimension_numbers<[1], [0], [0], [1], [0, 0, 1, 1], [], []>} : vector<2x32xf32>, vector<32x96xf32>, vector<2x96xf32> -> vector<2x96xf32>
    %268 = vector.extract_strided_slice %265 {offsets = [0, 0], sizes = [2, 32], strides = [1, 1]} : vector<2x96xf32> to vector<2x32xf32>
    %269 = vector.extract_strided_slice %267 {offsets = [0, 0], sizes = [2, 32], strides = [1, 1]} : vector<2x96xf32> to vector<2x32xf32>
    %270 = arith.addf %268, %269 : vector<2x32xf32>
    %271 = arith.negf %270 : vector<2x32xf32>
    %272 = math.exp %271 : vector<2x32xf32>
    %cst_109 = arith.constant 1.000000e+00 : f32
    %273 = vector.broadcast %cst_109 : f32 to vector<2x32xf32>
    %274 = arith.addf %273, %272 : vector<2x32xf32>
    %275 = arith.divf %273, %274 : vector<2x32xf32>
    %276 = vector.extract_strided_slice %265 {offsets = [0, 32], sizes = [2, 32], strides = [1, 1]} : vector<2x96xf32> to vector<2x32xf32>
    %277 = vector.extract_strided_slice %267 {offsets = [0, 32], sizes = [2, 32], strides = [1, 1]} : vector<2x96xf32> to vector<2x32xf32>
    %278 = arith.addf %276, %277 : vector<2x32xf32>
    %279 = arith.negf %278 : vector<2x32xf32>
    %280 = math.exp %279 : vector<2x32xf32>
    %cst_110 = arith.constant 1.000000e+00 : f32
    %281 = vector.broadcast %cst_110 : f32 to vector<2x32xf32>
    %282 = arith.addf %281, %280 : vector<2x32xf32>
    %283 = arith.divf %281, %282 : vector<2x32xf32>
    %284 = vector.extract_strided_slice %265 {offsets = [0, 64], sizes = [2, 32], strides = [1, 1]} : vector<2x96xf32> to vector<2x32xf32>
    %285 = vector.extract_strided_slice %267 {offsets = [0, 64], sizes = [2, 32], strides = [1, 1]} : vector<2x96xf32> to vector<2x32xf32>
    %286 = vector.broadcast %6 : vector<1x32xf32> to vector<2x32xf32>
    %287 = arith.addf %285, %286 : vector<2x32xf32>
    %288 = arith.mulf %275, %287 : vector<2x32xf32>
    %289 = arith.addf %284, %288 : vector<2x32xf32>
    %290 = math.tanh %289 : vector<2x32xf32>
    %cst_111 = arith.constant 1.000000e+00 : f32
    %291 = vector.broadcast %cst_111 : f32 to vector<2x32xf32>
    %292 = arith.subf %291, %283 : vector<2x32xf32>
    %293 = arith.mulf %292, %290 : vector<2x32xf32>
    %294 = arith.mulf %283, %266 : vector<2x32xf32>
    %295 = arith.addf %293, %294 : vector<2x32xf32>
    %c0_112 = arith.constant 0 : index
    %c0_113 = arith.constant 0 : index
    %296 = vector.load %arg6[%c0_112, %c0_113] : memref<2x32xf32, #tpu.memory_space<vmem>>, vector<2x32xf32>
    tpu.vector_store %arg6[%c0_112, %c0_113], %295 {strides = array<i32>} : memref<2x32xf32, #tpu.memory_space<vmem>>, vector<2x32xf32>,
    %c0_114 = arith.constant 0 : index
    %297 = arith.index_cast %262 : i32 to index
    %c0_115 = arith.constant 0 : index
    %c0_116 = arith.constant 0 : index
    %298 = vector.load %arg5[%c0_114, %297, %c0_115, %c0_116] : memref<1x8x2x32xf32, #tpu.memory_space<vmem>>, vector<1x1x2x32xf32>
    %299 = vector.shape_cast %298 : vector<1x1x2x32xf32> to vector<2x32xf32>
    %300 = vector.shape_cast %295 : vector<2x32xf32> to vector<1x1x2x32xf32>
    tpu.vector_store %arg5[%c0_114, %297, %c0_115, %c0_116], %300 {strides = array<i32>} : memref<1x8x2x32xf32, #tpu.memory_space<vmem>>, vector<1x1x2x32xf32>,
    %c7_i32_117 = arith.constant 7 : i32
    %c2_i32_118 = arith.constant 2 : i32
    %301 = arith.muli %c2_i32_118, %c7_i32_117 : i32
    %c7_i32_119 = arith.constant 7 : i32
    %302 = arith.subi %c7_i32_119, %301 : i32
    %303 = arith.muli %arg0, %302 : i32
    %304 = arith.addi %c7_i32_117, %303 : i32
    %c0_120 = arith.constant 0 : index
    %305 = arith.index_cast %304 : i32 to index
    %c0_121 = arith.constant 0 : index
    %c0_122 = arith.constant 0 : index
    %306 = vector.load %arg2[%c0_120, %305, %c0_121, %c0_122] : memref<1x8x2x96xf32, #tpu.memory_space<vmem>>, vector<1x1x2x96xf32>
    %307 = vector.shape_cast %306 : vector<1x1x2x96xf32> to vector<2x96xf32>
    %c0_123 = arith.constant 0 : index
    %c0_124 = arith.constant 0 : index
    %308 = vector.load %arg6[%c0_123, %c0_124] : memref<2x32xf32, #tpu.memory_space<vmem>>, vector<2x32xf32>
    %cst_125 = arith.constant dense<0.000000e+00> : vector<2x96xf32>
    %309 = tpu.matmul %308, %4, %cst_125 {dimension_numbers = #tpu.dot_dimension_numbers<[1], [0], [0], [1], [0, 0, 1, 1], [], []>} : vector<2x32xf32>, vector<32x96xf32>, vector<2x96xf32> -> vector<2x96xf32>
    %310 = vector.extract_strided_slice %307 {offsets = [0, 0], sizes = [2, 32], strides = [1, 1]} : vector<2x96xf32> to vector<2x32xf32>
    %311 = vector.extract_strided_slice %309 {offsets = [0, 0], sizes = [2, 32], strides = [1, 1]} : vector<2x96xf32> to vector<2x32xf32>
    %312 = arith.addf %310, %311 : vector<2x32xf32>
    %313 = arith.negf %312 : vector<2x32xf32>
    %314 = math.exp %313 : vector<2x32xf32>
    %cst_126 = arith.constant 1.000000e+00 : f32
    %315 = vector.broadcast %cst_126 : f32 to vector<2x32xf32>
    %316 = arith.addf %315, %314 : vector<2x32xf32>
    %317 = arith.divf %315, %316 : vector<2x32xf32>
    %318 = vector.extract_strided_slice %307 {offsets = [0, 32], sizes = [2, 32], strides = [1, 1]} : vector<2x96xf32> to vector<2x32xf32>
    %319 = vector.extract_strided_slice %309 {offsets = [0, 32], sizes = [2, 32], strides = [1, 1]} : vector<2x96xf32> to vector<2x32xf32>
    %320 = arith.addf %318, %319 : vector<2x32xf32>
    %321 = arith.negf %320 : vector<2x32xf32>
    %322 = math.exp %321 : vector<2x32xf32>
    %cst_127 = arith.constant 1.000000e+00 : f32
    %323 = vector.broadcast %cst_127 : f32 to vector<2x32xf32>
    %324 = arith.addf %323, %322 : vector<2x32xf32>
    %325 = arith.divf %323, %324 : vector<2x32xf32>
    %326 = vector.extract_strided_slice %307 {offsets = [0, 64], sizes = [2, 32], strides = [1, 1]} : vector<2x96xf32> to vector<2x32xf32>
    %327 = vector.extract_strided_slice %309 {offsets = [0, 64], sizes = [2, 32], strides = [1, 1]} : vector<2x96xf32> to vector<2x32xf32>
    %328 = vector.broadcast %6 : vector<1x32xf32> to vector<2x32xf32>
    %329 = arith.addf %327, %328 : vector<2x32xf32>
    %330 = arith.mulf %317, %329 : vector<2x32xf32>
    %331 = arith.addf %326, %330 : vector<2x32xf32>
    %332 = math.tanh %331 : vector<2x32xf32>
    %cst_128 = arith.constant 1.000000e+00 : f32
    %333 = vector.broadcast %cst_128 : f32 to vector<2x32xf32>
    %334 = arith.subf %333, %325 : vector<2x32xf32>
    %335 = arith.mulf %334, %332 : vector<2x32xf32>
    %336 = arith.mulf %325, %308 : vector<2x32xf32>
    %337 = arith.addf %335, %336 : vector<2x32xf32>
    %c0_129 = arith.constant 0 : index
    %c0_130 = arith.constant 0 : index
    %338 = vector.load %arg6[%c0_129, %c0_130] : memref<2x32xf32, #tpu.memory_space<vmem>>, vector<2x32xf32>
    tpu.vector_store %arg6[%c0_129, %c0_130], %337 {strides = array<i32>} : memref<2x32xf32, #tpu.memory_space<vmem>>, vector<2x32xf32>,
    %c0_131 = arith.constant 0 : index
    %339 = arith.index_cast %304 : i32 to index
    %c0_132 = arith.constant 0 : index
    %c0_133 = arith.constant 0 : index
    %340 = vector.load %arg5[%c0_131, %339, %c0_132, %c0_133] : memref<1x8x2x32xf32, #tpu.memory_space<vmem>>, vector<1x1x2x32xf32>
    %341 = vector.shape_cast %340 : vector<1x1x2x32xf32> to vector<2x32xf32>
    %342 = vector.shape_cast %337 : vector<2x32xf32> to vector<1x1x2x32xf32>
    tpu.vector_store %arg5[%c0_131, %339, %c0_132, %c0_133], %342 {strides = array<i32>} : memref<1x8x2x32xf32, #tpu.memory_space<vmem>>, vector<1x1x2x32xf32>,
    %c8_i32 = arith.constant 8 : i32
    return
  }
  func.func @transform_0(%arg0: i32, %arg1: i32) -> (i32, i32, i32, i32) {
    %c2_i32 = arith.constant 2 : i32
    %0 = arith.muli %c2_i32, %arg1 : i32
    %c0_i32 = arith.constant 0 : i32
    %1 = arith.subi %c0_i32, %0 : i32
    %2 = arith.muli %arg0, %1 : i32
    %3 = arith.addi %arg1, %2 : i32
    %c0_i32_0 = arith.constant 0 : i32
    %c0_i32_1 = arith.constant 0 : i32
    %c0_i32_2 = arith.constant 0 : i32
    return %arg0, %3, %c0_i32_0, %c0_i32_1 : i32, i32, i32, i32
  }
  func.func @transform_1(%arg0: i32, %arg1: i32) -> (i32, i32, i32) {
    %c0_i32 = arith.constant 0 : i32
    %c0_i32_0 = arith.constant 0 : i32
    %c0_i32_1 = arith.constant 0 : i32
    return %arg0, %c0_i32, %c0_i32_0 : i32, i32, i32
  }
  func.func @transform_2(%arg0: i32, %arg1: i32) -> (i32, i32, i32) {
    %c0_i32 = arith.constant 0 : i32
    %c0_i32_0 = arith.constant 0 : i32
    %c0_i32_1 = arith.constant 0 : i32
    return %arg0, %c0_i32, %c0_i32_0 : i32, i32, i32
  }
  func.func @transform_3(%arg0: i32, %arg1: i32) -> (i32, i32, i32, i32) {
    %c2_i32 = arith.constant 2 : i32
    %0 = arith.muli %c2_i32, %arg1 : i32
    %c0_i32 = arith.constant 0 : i32
    %1 = arith.subi %c0_i32, %0 : i32
    %2 = arith.muli %arg0, %1 : i32
    %3 = arith.addi %arg1, %2 : i32
    %c0_i32_0 = arith.constant 0 : i32
    %c0_i32_1 = arith.constant 0 : i32
    %c0_i32_2 = arith.constant 0 : i32
    return %arg0, %3, %c0_i32_0, %c0_i32_1 : i32, i32, i32, i32
  }
}

module attributes {stable_mosaic.version = 11 : i64} {
  func.func @kernel(%arg0: memref<2x32xf32, #tpu.memory_space<vmem>>, %arg1: memref<2x32xf32, #tpu.memory_space<vmem>>, %arg2: memref<32x64xf32, #tpu.memory_space<vmem>>, %arg3: memref<32x64xf32, #tpu.memory_space<vmem>>, %arg4: memref<1x64xf32, #tpu.memory_space<vmem>>, %arg5: memref<64x8xf32, #tpu.memory_space<vmem>>, %arg6: memref<1x8xf32, #tpu.memory_space<vmem>>, %arg7: memref<2x8xf32, #tpu.memory_space<vmem>>) attributes {dimension_semantics = [], scalar_prefetch = 0 : i64, scratch_operands = 0 : i64, tpu.core_type = #tpu.core_type<tc>} {
    %c0 = arith.constant 0 : index
    %c0_0 = arith.constant 0 : index
    %0 = vector.load %arg0[%c0, %c0_0] : memref<2x32xf32, #tpu.memory_space<vmem>>, vector<2x32xf32>
    %c0_1 = arith.constant 0 : index
    %c0_2 = arith.constant 0 : index
    %1 = vector.load %arg2[%c0_1, %c0_2] : memref<32x64xf32, #tpu.memory_space<vmem>>, vector<32x64xf32>
    %cst = arith.constant dense<0.000000e+00> : vector<2x64xf32>
    %2 = tpu.matmul %0, %1, %cst {dimension_numbers = #tpu.dot_dimension_numbers<[1], [0], [0], [1], [0, 0, 1, 1], [], []>} : vector<2x32xf32>, vector<32x64xf32>, vector<2x64xf32> -> vector<2x64xf32>
    %c0_3 = arith.constant 0 : index
    %c0_4 = arith.constant 0 : index
    %3 = vector.load %arg1[%c0_3, %c0_4] : memref<2x32xf32, #tpu.memory_space<vmem>>, vector<2x32xf32>
    %c0_5 = arith.constant 0 : index
    %c0_6 = arith.constant 0 : index
    %4 = vector.load %arg3[%c0_5, %c0_6] : memref<32x64xf32, #tpu.memory_space<vmem>>, vector<32x64xf32>
    %cst_7 = arith.constant dense<0.000000e+00> : vector<2x64xf32>
    %5 = tpu.matmul %3, %4, %cst_7 {dimension_numbers = #tpu.dot_dimension_numbers<[1], [0], [0], [1], [0, 0, 1, 1], [], []>} : vector<2x32xf32>, vector<32x64xf32>, vector<2x64xf32> -> vector<2x64xf32>
    %6 = arith.addf %2, %5 : vector<2x64xf32>
    %c0_8 = arith.constant 0 : index
    %c0_9 = arith.constant 0 : index
    %7 = vector.load %arg4[%c0_8, %c0_9] : memref<1x64xf32, #tpu.memory_space<vmem>>, vector<1x64xf32>
    %8 = vector.broadcast %7 : vector<1x64xf32> to vector<2x64xf32>
    %9 = arith.addf %6, %8 : vector<2x64xf32>
    %cst_10 = arith.constant 0.000000e+00 : f32
    %10 = vector.broadcast %cst_10 : f32 to vector<2x64xf32>
    %11 = arith.maximumf %9, %10 : vector<2x64xf32>
    %c0_11 = arith.constant 0 : index
    %c0_12 = arith.constant 0 : index
    %12 = vector.load %arg5[%c0_11, %c0_12] : memref<64x8xf32, #tpu.memory_space<vmem>>, vector<64x8xf32>
    %cst_13 = arith.constant dense<0.000000e+00> : vector<2x8xf32>
    %13 = tpu.matmul %11, %12, %cst_13 {dimension_numbers = #tpu.dot_dimension_numbers<[1], [0], [0], [1], [0, 0, 1, 1], [], []>} : vector<2x64xf32>, vector<64x8xf32>, vector<2x8xf32> -> vector<2x8xf32>
    %c0_14 = arith.constant 0 : index
    %c0_15 = arith.constant 0 : index
    %14 = vector.load %arg6[%c0_14, %c0_15] : memref<1x8xf32, #tpu.memory_space<vmem>>, vector<1x8xf32>
    %15 = vector.broadcast %14 : vector<1x8xf32> to vector<2x8xf32>
    %16 = arith.addf %13, %15 : vector<2x8xf32>
    %c0_16 = arith.constant 0 : index
    %c0_17 = arith.constant 0 : index
    %17 = vector.load %arg7[%c0_16, %c0_17] : memref<2x8xf32, #tpu.memory_space<vmem>>, vector<2x8xf32>
    tpu.vector_store %arg7[%c0_16, %c0_17], %16 {strides = array<i32>} : memref<2x8xf32, #tpu.memory_space<vmem>>, vector<2x8xf32>,
    return
  }
}

</mosaic_0001>

<bundles_post_ra>
// kernel: zgru_forward.7
= control target key start
LH: loop header
LB: loop body
LE: loop exit
PB: predicated region body
PF: predicated region fallthrough
CT: control target
= control target key end

     0   :  { %s651_s12 = smov 0   ;;  %s653_s13 = smov 0   ;;  %s708_s0 = inlined_call_operand.vmem [shape: f32[2,16,32], index: 0, kind: input, shape index: {}]   ;;  %s709_s1 = inlined_call_operand.vmem [shape: f32[2,2,32,96], index: 1, kind: input, shape index: {}]   ;;  %s710_s2 = inlined_call_operand.vmem [shape: f32[2,1,96], index: 2, kind: input, shape index: {}]   ;;  %s711_s3 = inlined_call_operand.vmem [shape: f32[2,16,96], index: 3, kind: output, shape index: {}]  }
   0x1   :  { %s655_s14 = smov 0  }
   0x2 LB: > { %s25_s15 = sadd.s32 1, %s625_s13  ;;  %p529_p0 = scmp.ge.s32.totalorder %s629_s14, 1  ;;  %s629_s14 = sphi %s655_s14, %s13_s14   ;;  %s625_s13 = sphi %s653_s13, %s713_s13   ;;  %s621_s12 = sphi %s651_s12, %s712_s12  }
   0x3   : > { %p27_p1 = scmp.ge.s32.totalorder %s25_s15, 2  ;;  %p170_p2 = scmp.lt.s32.totalorder %s629_s14, 3 }
   0x5   : > { %s715_s15 = smov (%p27_p1, %s25_s15), 0  ;;  %p171_p3 = pnand %p529_p0, %p170_p2 }
   0x6   : > { %p212_p4 = scmp.lt.s32.totalorder (!%p171_p3), %s621_s12, 1 }
   0x7   : > { %174 = sbr.rel (%p171_p3) target bundleno = 225 (0xe1), region = 32 }
   0xc   : > { %v534_v0 = vld [vmem:[%s708_s0 + $0x10] sm:$0xff]  ;;  %vm244_vm0 = vcmask 261120   ;;  %v230_v1 = vld [vmem:[%s708_s0] sm:$0xff]  ;;  %s717_s12 = smov (!%p212_p4, %s621_s12), 1  ;;  %v535_v10 = vld [vmem:[%s708_s0 + $0x18] sm:$0xff]  ;;  %vm416_vm1 = vcmask 785408  }
   0xd   : > { %569 = vmatprep.mubr.msk.f32.mxu0 %vm244_vm0, %v534_v0  ;;  %580 = vmatprep.mubr.msk.f32.mxu1 %vm244_vm0, %v230_v1  ;;  %s547_s20 = sshll.u32 %s717_s12, 6  ;;  %v231_v11 = vld [vmem:[%s708_s0 + $0x8] sm:$0xff]  ;;  %s219_s30 = scalar_lea.vmem %s710_s2, %s717_s12 }
   0xe   : > { %s216_s23 = scalar_lea.vmem %s709_s1, %s547_s20  ;;  %s548_s4 = sshll.u32 %s717_s12, 4  ;;  %v544_v14 = vld [vmem:[%s219_s30] ss:$0 sm:$0xff] }
   0xf   : > { %v539_v2 = vld [vmem:[%s216_s23 + $0x38] sm:$0xff]  ;;  %v538_v4 = vld [vmem:[%s216_s23 + $0x30] sm:$0xff]  ;;  %v537_v6 = vld [vmem:[%s216_s23 + $0x28] sm:$0xff]  ;;  %s228_s7 = scalar_lea.vmem %s711_s3, %s548_s4 }
  0x10   : > { %v235_v3 = vld [vmem:[%s216_s23 + $0x18] sm:$0xff]  ;;  %561 = vmatprep.subr.mxu0 %v539_v2  ;;  %v234_v5 = vld [vmem:[%s216_s23 + $0x10] sm:$0xff]  ;;  %v233_v7 = vld [vmem:[%s216_s23 + $0x8] sm:$0xff] }
  0x11   : > { %572 = vmatprep.subr.mxu1 %v235_v3  ;;  %562 = vmatpush3.msra.mxu0 %v539_v2  ;;  %v536_v8 = vld [vmem:[%s216_s23 + $0x20] sm:$0xff] }
  0x12   : > { %573 = vmatpush3.msra.mxu1 %v235_v3  ;;  %563 = vmatprep.subr.mxu0 %v538_v4  ;;  %v232_v9 = vld [vmem:[%s216_s23] sm:$0xff] }
  0x13   : > { %574 = vmatprep.subr.mxu1 %v234_v5  ;;  %564 = vmatpush3.msra.mxu0 %v538_v4 }
  0x14   : > { %575 = vmatpush3.msra.mxu1 %v234_v5  ;;  %565 = vmatprep.subr.mxu0 %v537_v6 }
  0x15   : > { %576 = vmatprep.subr.mxu1 %v233_v7  ;;  %566 = vmatpush3.msra.mxu0 %v537_v6 }
  0x16   : > { %577 = vmatpush3.msra.mxu1 %v233_v7  ;;  %567 = vmatprep.subr.mxu0 %v536_v8 }
  0x17   : > { %578 = vmatprep.subr.mxu1 %v232_v9  ;;  %568 = vmatpush3.msra.mxu0 %v536_v8 }
  0x18   : > { %579 = vmatpush3.msra.mxu1 %v232_v9  ;;  %570 = vmatmul.mubr.msk.f32.vlgmr.msra.gmra.mxu0 %vm244_vm0, %v535_v10 }
  0x19   : > { %581 = vmatmul.mubr.msk.f32.vlgmr.msra.gmra.mxu1 %vm244_vm0, %v231_v11 }
  0xd8   : > { %v571_v12 = vpop.f32.mrf.mxu0 }
  0xd9   : > { %v582_v13 = vpop.f32.mrf.mxu1 }
  0xda   : > { %v404_v15 = vadd.f32 %v582_v13, %v571_v12  ;;  %v317_v16 = vpop.f32.mrf.mxu0 }
  0xdb   : > { %v398_v17 = vpop.f32.mrf.mxu1 }
  0xdc   : > { %v415_v18 = vadd.f32 %v544_v14, %v404_v15  ;;  %v399_v19 = vadd.f32 %v398_v17, %v317_v16 }
  0xde   : > { %418 = vst.msk [vmem:[%s228_s7 + $0x8] sm:$0xff] %vm416_vm1, %v415_v18  ;;  %v414_v20 = vadd.f32 %v544_v14, %v399_v19 }
  0xe0   : > { %417 = vst.msk [vmem:[%s228_s7] sm:$0xff] %vm416_vm1, %v414_v20 }
  0xe1 PF: > { %s13_s14 = sadd.s32 1, %s629_s14   ;;  %s712_s12 = smov %s625_s13 }
  0xe2   : > { %p10_p5 = scmp.ge.s32.totalorder %s13_s14, 4   ;;  %s713_s13 = smov %s715_s15 }
  0xe4   :  { %12 = sbr.rel (!%p10_p5) target bundleno = 2 (0x2), region = 70 }

// kernel: zgru_forward.5
= control target key start
LH: loop header
LB: loop body
LE: loop exit
PB: predicated region body
PF: predicated region fallthrough
CT: control target
= control target key end

     0   :  { %8 = vsyncpa [#allocation3], 0  ;;  %s756_s0 = inlined_call_operand.vmem [shape: f32[1,16,16], index: 0, kind: input, shape index: {}]   ;;  %s757_s1 = inlined_call_operand.vmem [shape: f32[2,1,16,96], index: 1, kind: input, shape index: {}]   ;;  %s758_s2 = inlined_call_operand.hbm [shape: f32[2,1,96], index: 2, kind: input, shape index: {}]   ;;  %s759_s3 = inlined_call_operand.vmem [shape: f32[2,16,96], index: 3, kind: output, shape index: {}]  }
   0x1   :  { %10 = vsyncpa [#allocation3 + $0x1], 0  ;;  %s647_s12 = smov 0   ;;  %s649_s13 = smov 0  }
   0x2   :  { %s651_s14 = smov 0   ;;  %s653_s15 = smov 0  }
   0x3   :  { %s655_s16 = smov 0   ;;  %s657_s17 = smov 0  }
   0x4 LB: > { %s462_s18 = sadd.s32 4294967295, %s624_s17   ;;  %s28_s19 = sadd.s32 1, %s620_s16  ;;  %s624_s17 = sphi %s657_s17, %s16_s17   ;;  %s620_s16 = sphi %s655_s16, %s767_s16   ;;  %s616_s15 = sphi %s653_s15, %s766_s15   ;;  %s612_s14 = sphi %s651_s14, %s765_s14   ;;  %s608_s13 = sphi %s649_s13, %s764_s13   ;;  %s604_s12 = sphi %s647_s12, %s763_s12  }
   0x5   : > { %p30_p0 = scmp.ge.s32.totalorder %s28_s19, 2  ;;  %s87_s20 = sadd.s32 1, %s612_s14 }
   0x6   : > { %p94_p1 = scmp.ne.s32.totalorder %s612_s14, %s608_s13  ;;  %p95_p2 = scmp.eq.s32.totalorder %s624_s17, 0 }
   0x7   : > { %s769_s19 = smov (%p30_p0, %s28_s19), 0  ;;  %p100_p4 = scmp.ne.s32.totalorder %s608_s13, %s604_s12 }
   0x8   : > { %p683_p3 = por %p95_p2, %p94_p1  ;;  %s84_s22 = ssub.s32 %s620_s16, %s769_s19 }
   0x9   : > { %p101_p5 = scmp.eq.s32.totalorder %s462_s18, 0  ;;  %p85_p6 = scmp.eq.s32.totalorder %s84_s22, 0 }
   0xa   : > { %p497_p8 = scmp.lt.s32.totalorder %s624_s17, 2  ;;  %s169_s25 = sand.u32 1, %s612_s14  }
   0xb   : > { %p690_p7 = por %p101_p5, %p100_p4  ;;  %s467_s26 = sshll.u32 %s620_s16, 4 }
   0xc   : > { %s696_s24 = scalar_select %p85_p6, %s612_s14, %s87_s20  }
   0xd   : > { %s177_s29 = scalar_lea.hbm %s758_s2, %s467_s26  ;;  %s172_s30 = scalar_lea.vmem [#allocation2], %s169_s25 }
   0xe   : > { %s179_s4 = sshll.u32 %s172_s30, 4  ;;  %p705_p9 = pnand %p497_p8, %p683_p3  ;;  %s180_s4 = int_to_ptr.vmem [resolvable:$true] %s179_s4 }
   0xf   : > { %p468_p10 = scmp.ge.s32.totalorder %s624_s17, 1  ;;  %p184_p11 = scmp.lt.s32.totalorder %s624_s17, 3 }
  0x10   : > { %s170_s6 = scalar_lea.sflag [#allocation3], %s169_s25  ;;  %p548_p12 = pneg %p705_p9 }
  0x11   : > { %s559_s7 = scalar_lea.vmem %s180_s4, 16  ;;  %s626_s8 = smov [#allocation2]  }
  0x12   : > { %p560_p13 = scmp.ne.s32.totalorder %s180_s4, %s559_s7  ;;  %s564_s9 = sshll.u32 %s626_s8, 4  ;;  %s565_s9 = int_to_ptr.vmem [resolvable:$false] %s564_s9 }
  0x13   : > { %s566_s10 = scalar_lea.vmem %s565_s9, 32  ;;  %p567_p2 = scmp.lt.s32.totalorder %s180_s4, %s565_s9 }
  0x14   : > { %p562_p0 = pnand %p560_p13, %p548_p12  ;;  %p568_p4 = scmp.lt.s32.totalorder %s566_s10, %s559_s7 }
  0x16   : > { %p563_p1 = pneg %p562_p0  ;;  %p569_p3 = por %p568_p4, %p567_p2 }
  0x18   : > { %p570_p5 = pnand %p569_p3, %p563_p1 }
  0x1a   : > { %573 = shalt.err (!%p570_p5)
}
  0x1b   : > { %496 = dma.hbm_to_vmem [thread:$0]  (!%p705_p9), %s177_s29, 16, %s180_s4, %s170_s6  }
  0x1c   : > { %p185_p6 = pnand %p468_p10, %p184_p11 }
  0x1d   : > { %s190_s11 = sand.u32 (!%p185_p6), 1, %s608_s13  }
  0x1e   : > { %188 = sbr.rel (%p185_p6) target bundleno = 244 (0xf4), region = 32  ;;  %s191_s12 = scalar_lea.sflag (!%p185_p6), [#allocation3], %s190_s11 }
  0x1f   : > { %s193_s18 = scalar_lea.vmem (!%p185_p6), [#allocation2], %s190_s11 }
  0x23   : > { %599 = dma.done.wait (%p690_p7), %s191_s12, 16  }
  0x24   : > { %601 = vsyncadd (%p690_p7), %s191_s12, 4294967280  ;;  %p235_p8 = scmp.lt.s32.totalorder %s616_s15, 1  ;;  %vm261_vm0 = vcmask 130048   ;;  %v250_v2 = vld [vmem:[%s756_s0] sm:$0xff]  ;;  %v251_v3 = vld [vmem:[%s756_s0 + $0x8] sm:$0xff]  ;;  %vm343_vm1 = vcmask 785408  }
  0x25   : > { %488 = vmatprep.mubr.msk.f32.mxu0 %vm261_vm0, %v250_v2  ;;  %v473_v4 = vld [vmem:[%s193_s18] ss:$0 sm:$0xff] }
  0x26   : > { %s771_s15 = smov (!%p235_p8, %s616_s15), 1 }
  0x27   : > { %s478_s20 = sshll.u32 %s771_s15, 4 }
  0x28   : > { %s239_s25 = scalar_lea.vmem %s757_s1, %s478_s20  ;;  %s248_s30 = scalar_lea.vmem %s759_s3, %s478_s20 }
  0x29   : > { %v253_v0 = vld [vmem:[%s239_s25 + $0x8] sm:$0xff]  ;;  %v252_v1 = vld [vmem:[%s239_s25] sm:$0xff] }
  0x2a   : > { %484 = vmatprep.subr.mxu0 %v253_v0 }
  0x2b   : > { %485 = vmatpush3.msra.mxu0 %v253_v0 }
  0x2c   : > { %486 = vmatprep.subr.mxu0 %v252_v1 }
  0x2d   : > { %487 = vmatpush3.msra.mxu0 %v252_v1 }
  0x2e   : > { %489 = vmatmul.mubr.msk.f32.vlgmr.msra.gmra.mxu0 %vm261_vm0, %v251_v3 }
  0xee   : > { %v490_v5 = vpop.f32.mrf.mxu0 }
  0xef   : > { %v340_v6 = vadd.f32 %v490_v5, %v473_v4 }
  0xf0   : > { %v334_v7 = vpop.f32.mrf.mxu0 }
  0xf1   : > { %345 = vst.msk [vmem:[%s248_s30 + $0x8] sm:$0xff] %vm343_vm1, %v340_v6  ;;  %v335_v8 = vadd.f32 %v473_v4, %v334_v7 }
  0xf3   : > { %344 = vst.msk [vmem:[%s248_s30] sm:$0xff] %vm343_vm1, %v335_v8 }
  0xf4 PF: > { %s16_s17 = sadd.s32 1, %s624_s17   ;;  %s763_s12 = smov %s608_s13 }
  0xf5   : > { %p13_p7 = scmp.ge.s32.totalorder %s16_s17, 4   ;;  %s764_s13 = smov %s612_s14 }
  0xf6   : > { %s765_s14 = smov %s696_s24  ;;  %s766_s15 = smov %s620_s16 }
  0xf7   : > { %s767_s16 = smov %s769_s19  ;;  %15 = sbr.rel (!%p13_p7) target bundleno = 4 (0x4), region = 78 }
  0xfc   :  { %376 = vsyncpa [#allocation3], 1 }
  0xfd   :  { %378 = vsyncpa [#allocation3 + $0x1], 1 }

// kernel: zgru_forward.6
= control target key start
LH: loop header
LB: loop body
LE: loop exit
PB: predicated region body
PF: predicated region fallthrough
CT: control target
= control target key end

     0   :  { %8 = vsyncpa [#allocation4], 0  ;;  %s2247_s0 = inlined_call_operand.vmem [shape: f32[2,8,2,96], index: 0, kind: input, shape index: {}]   ;;  %s2248_s1 = inlined_call_operand.hbm [shape: f32[2,32,96], index: 1, kind: input, shape index: {}]   ;;  %s2249_s2 = inlined_call_operand.hbm [shape: f32[2,1,32], index: 2, kind: input, shape index: {}]   ;;  %s2250_s3 = inlined_call_operand.vmem [shape: f32[2,8,2,32], index: 3, kind: output, shape index: {}]  }
   0x1   :  { %10 = vsyncpa [#allocation4 + $0x1], 0 }
   0x2   :  { %11 = vsyncpa [#allocation6], 0 }
   0x3   :  { %13 = vsyncpa [#allocation6 + $0x1], 0  ;;  %s1920_s12 = smov 0   ;;  %s1922_s13 = smov 0  }
   0x4   :  { %s1924_s14 = smov 0   ;;  %s1926_s15 = smov 0  }
   0x5   :  { %s1928_s16 = smov 0   ;;  %s1930_s17 = smov 0  }
   0x6 LB: > { %s1474_s18 = sadd.s32 4294967295, %s1889_s17   ;;  %s31_s19 = sadd.s32 1, %s1885_s16  ;;  %s1889_s17 = sphi %s1930_s17, %s19_s17   ;;  %s1885_s16 = sphi %s1928_s16, %s2259_s16   ;;  %s1881_s15 = sphi %s1926_s15, %s2258_s15   ;;  %s1877_s14 = sphi %s1924_s14, %s2257_s14   ;;  %s1873_s13 = sphi %s1922_s13, %s2256_s13   ;;  %s1869_s12 = sphi %s1920_s12, %s2255_s12  }
   0x7   : > { %p33_p0 = scmp.ge.s32.totalorder %s31_s19, 2  ;;  %s74_s20 = sadd.s32 1, %s1877_s14 }
   0x8   : > { %p81_p1 = scmp.ne.s32.totalorder %s1877_s14, %s1873_s13  ;;  %p82_p2 = scmp.eq.s32.totalorder %s1889_s17, 0 }
   0x9   : > { %s2261_s19 = smov (%p33_p0, %s31_s19), 0  ;;  %p87_p4 = scmp.ne.s32.totalorder %s1873_s13, %s1869_s12 }
   0xa   : > { %p1956_p3 = por %p82_p2, %p81_p1  ;;  %s71_s22 = ssub.s32 %s1885_s16, %s2261_s19 }
   0xb   : > { %p88_p5 = scmp.eq.s32.totalorder %s1474_s18, 0  ;;  %p72_p6 = scmp.eq.s32.totalorder %s71_s22, 0 }
   0xc   : > { %p1675_p8 = scmp.lt.s32.totalorder %s1889_s17, 2  ;;  %s1972_s25 = sand.u32 1, %s1877_s14  }
   0xd   : > { %p1963_p7 = por %p88_p5, %p87_p4  ;;  %s1533_s26 = sshll.u32 %s1885_s16, 9 }
   0xe   : > { %s1969_s24 = scalar_select %p72_p6, %s1877_s14, %s74_s20  }
   0xf   : > { %s1478_s27 = sshll.u32 %s1972_s25, 5  ;;  %s204_s30 = scalar_lea.hbm %s2248_s1, %s1533_s26 }
  0x10   : > { %s198_s4 = scalar_lea.vmem [#allocation3], %s1478_s27  ;;  %p1981_p9 = pnand %p1675_p8, %p1956_p3 }
  0x11   : > { %s205_s5 = sshll.u32 %s198_s4, 4  ;;  %s195_s7 = scalar_lea.sflag [#allocation4], %s1972_s25  ;;  %s206_s5 = int_to_ptr.vmem [resolvable:$true] %s205_s5 }
  0x12   : > { %p1781_p10 = pneg %p1981_p9  ;;  %s1792_s8 = scalar_lea.vmem %s206_s5, 512 }
  0x13   : > { %p1793_p11 = scmp.ne.s32.totalorder %s206_s5, %s1792_s8  ;;  %s1891_s9 = smov [#allocation3]  }
  0x14   : > { %s1797_s10 = sshll.u32 %s1891_s9, 4  ;;  %s1798_s10 = int_to_ptr.vmem [resolvable:$false] %s1797_s10 }
  0x15   : > { %p1795_p12 = pnand %p1793_p11, %p1781_p10  ;;  %s1799_s11 = scalar_lea.vmem %s1798_s10, 1024 }
  0x16   : > { %p1800_p0 = scmp.lt.s32.totalorder %s206_s5, %s1798_s10  ;;  %p1801_p1 = scmp.lt.s32.totalorder %s1799_s11, %s1792_s8 }
  0x17   : > { %p1796_p13 = pneg %p1795_p12 }
  0x18   : > { %p1802_p2 = por %p1801_p1, %p1800_p0 }
  0x1a   : > { %p1803_p3 = pnand %p1802_p2, %p1796_p13 }
  0x1c   : > { %1806 = shalt.err (!%p1803_p3)
}
  0x1d   : > { %s1892_s12 = smov 128   ;;  %s1893_s18 = smov 8  }
  0x1e   : > { %1671 = dma.hbm_to_vmem [thread:$0]  (!%p1981_p9), %s204_s30, 512, %s206_s5, %s195_s7, %s1892_s12, %s1892_s12, %s1893_s18  }
  0x1f   : > { %p1482_p4 = scmp.ge.s32.totalorder %s1889_s17, 1  ;;  %p230_p5 = scmp.lt.s32.totalorder %s1889_s17, 3 }
  0x20   : > { %s1481_s21 = sshll.u32 %s1885_s16, 4  ;;  %s218_s28 = scalar_lea.vmem [#allocation5], %s1972_s25 }
  0x21   : > { %p1995_p6 = pnand %p1482_p4, %p230_p5  ;;  %s223_s27 = scalar_lea.hbm %s2249_s2, %s1481_s21 }
  0x22   : > { %s225_s29 = sshll.u32 %s218_s28, 4  ;;  %s216_s4 = scalar_lea.sflag [#allocation6], %s1972_s25  ;;  %s226_s29 = int_to_ptr.vmem [resolvable:$true] %s225_s29 }
  0x23   : > { %s1820_s8 = scalar_lea.vmem %s226_s29, 16  ;;  %s1894_s30 = smov [#allocation5]  }
  0x24   : > { %p1821_p8 = scmp.ne.s32.totalorder %s226_s29, %s1820_s8  ;;  %s1825_s5 = sshll.u32 %s1894_s30, 4  ;;  %s1826_s5 = int_to_ptr.vmem [resolvable:$false] %s1825_s5 }
  0x25   : > { %s1827_s7 = scalar_lea.vmem %s1826_s5, 32  ;;  %p1828_p13 = scmp.lt.s32.totalorder %s226_s29, %s1826_s5 }
  0x26   : > { %p1823_p11 = pnand %p1821_p8, %p1781_p10  ;;  %p1829_p0 = scmp.lt.s32.totalorder %s1827_s7, %s1820_s8 }
  0x28   : > { %p1824_p12 = pneg %p1823_p11  ;;  %p1830_p1 = por %p1829_p0, %p1828_p13 }
  0x2a   : > { %p1831_p2 = pnand %p1830_p1, %p1824_p12 }
  0x2c   : > { %1834 = shalt.err (!%p1831_p2)
}
  0x2d   : > { %1674 = dma.hbm_to_vmem [thread:$0]  (!%p1981_p9), %s223_s27, 16, %s226_s29, %s216_s4  }
  0x2e   : > { %234 = sbr.rel (%p1995_p6) target bundleno = 5537 (0x15a1), region = 32  ;;  %s236_s25 = sand.u32 (!%p1995_p6), 1, %s1873_s13  }
  0x2f   : > { %s1483_s9 = sshll.u32 (!%p1995_p6), %s236_s25, 5  ;;  %s237_s10 = scalar_lea.sflag (!%p1995_p6), [#allocation4], %s236_s25 }
  0x30   : > { %s240_s11 = scalar_lea.vmem (!%p1995_p6), [#allocation3], %s1483_s9 }
  0x33   : > { %1860 = dma.done.wait (%p1963_p7), %s237_s10, 512  }
  0x34   : > { %1862 = vsyncadd (%p1963_p7), %s237_s10, 4294966784  ;;  %s246_s12 = scalar_lea.sflag [#allocation6], %s236_s25  ;;  %s248_s18 = scalar_lea.vmem [#allocation5], %s236_s25 }
  0x35   : > { %1864 = dma.done.wait (%p1963_p7), %s246_s12, 16  }
  0x36   : > { %1866 = vsyncadd (%p1963_p7), %s246_s12, 4294967280  ;;  %vm336_vm0 = vcmask 254976   ;;  %v1895_v0 = vmov 0.0   ;;  %vm1896_vm1 = vmmov 0   ;;  %v2029_v1 = vld [vmem:[%s240_s11 + $0x18] sm:$0xff]  ;;  %v2031_v2 = vld [vmem:[%s240_s11 + $0x10] sm:$0xff] }
  0x37   : > { %1576 = vmatprep.subr.mxu0 %v1895_v0  ;;  %1584 = vmatprep.mubr.msk.f32.mxu0 %vm1896_vm1, %v1895_v0  ;;  %337 = vst.msk [vmem:[#allocation2] sm:$0x3] %vm336_vm0, %v1895_v0  ;;  %v1491_v3 = vld [vmem:[%s248_s18] ss:$0 sm:$0xff]  ;;  %v2036_v4 = vld [vmem:[%s240_s11 + $0x8] sm:$0xff]  ;;  %s1897_s23 = smov 64  }
  0x38   : > { %1587 = vmatprep.subr.mxu1 %v1895_v0  ;;  %1595 = vmatprep.mubr.msk.f32.mxu1 %vm1896_vm1, %v1895_v0  ;;  %v2042_v5 = vld [vmem:[%s240_s11] sm:$0xff]  ;;  %vm348_vm2 = vcmask 261120   ;;  %s1898_s6 = smov 32   ;;  %p301_p7 = scmp.lt.s32.totalorder %s1881_s15, 1 }
  0x39   : > { %1577 = vmatpush3.msra.mxu0 %v2029_v1  ;;  %1588 = vmatpush3.msra.mxu1 %v2029_v1  ;;  %s1488_s22 = smul.u32 14, %s1881_s15  ;;  %s1899_s4 = smov 96  }
  0x3a   : > { %1578 = vmatprep.subr.mxu0 %v1895_v0  ;;  %434 = vrot.lane.b32.xlu0 %v1491_v3, %s1897_s23  ;;  %s2072_s20 = scalar_select %p301_p7, %s1881_s15, 1 }
  0x3b   : > { %1579 = vmatpush3.msra.mxu0 %v2031_v2  ;;  %1589 = vmatprep.subr.mxu1 %v1895_v0  ;;  %s1492_s25 = smul.u32 10, %s1881_s15  ;;  %s815_s26 = ssub.s32 4, %s1881_s15 }
  0x3c   : > { %1580 = vmatprep.subr.mxu0 %v1895_v0  ;;  %1590 = vmatpush3.msra.mxu1 %v2031_v2  ;;  %s1534_s21 = sshll.u32 %s2072_s20, 4  ;;  %s1498_s11 = smul.u32 6, %s1881_s15 }
  0x3d   : > { %1581 = vmatpush3.msra.mxu0 %v2036_v4  ;;  %1591 = vmatprep.subr.mxu1 %v1895_v0  ;;  %s2079_s28 = scalar_lea.vmem %s2247_s0, %s1534_s21  ;;  %s2088_s5 = scalar_lea.vmem %s2250_s3, %s1534_s21 }
  0x3e   : > { %v347_v6 = vld [vmem:[#allocation2] sm:$0x3]  ;;  %1582 = vmatprep.subr.mxu0 %v1895_v0  ;;  %1592 = vmatpush3.msra.mxu1 %v2036_v4  ;;  %s345_s29 = scalar_lea.vmem %s2079_s28, %s1488_s22  ;;  %s466_s7 = scalar_lea.vmem %s2088_s5, %s1488_s22 }
  0x3f   : > { %1583 = vmatpush3.msra.mxu0 %v2042_v5  ;;  %1593 = vmatprep.subr.mxu1 %v1895_v0  ;;  %v346_v11 = vld [vmem:[%s345_s29] sm:$0x3]  ;;  %s1371_s9 = scalar_lea.vmem %s2079_s28, %s1492_s25  ;;  %s1375_s10 = scalar_lea.vmem %s2088_s5, %s1492_s25 }
  0x40   : > { %1585 = vmatmul.mubr.msk.f32.vlgmr.msra.gmra.mxu0 %vm348_vm2, %v347_v6  ;;  %1594 = vmatpush3.msra.mxu1 %v2042_v5  ;;  %v1493_v33 = vld [vmem:[%s1371_s9 + $0x2] sm:$0x3]  ;;  %s1379_s12 = scalar_lea.vmem %s2079_s28, %s1498_s11  ;;  %s1383_s18 = scalar_lea.vmem %s2088_s5, %s1498_s11 }
  0x41   : > { %1598 = vmatprep.subr.mxu0 %v1895_v0  ;;  %1606 = vmatprep.mubr.msk.f32.mxu0 %vm1896_vm1, %v1895_v0  ;;  %v1499_v55 = vld [vmem:[%s1379_s12 + $0x4] sm:$0x3]  ;;  %s1504_s20 = sshll.u32 %s1881_s15, 1  ;;  %s2172_s27 = sshll.u32 %s815_s26, 1 }
  0x42   : > { %1599 = vmatpush3.msra.mxu0 %v2029_v1  ;;  %1609 = vmatprep.subr.mxu1 %v1895_v0  ;;  %s1386_s21 = scalar_lea.vmem %s2079_s28, %s1504_s20  ;;  %s1389_s22 = scalar_lea.vmem %s2088_s5, %s1504_s20 }
  0x43   : > { %1600 = vmatprep.subr.mxu0 %v1895_v0  ;;  %s817_s29 = scalar_lea.vmem %s2079_s28, %s2172_s27  ;;  %s928_s8 = scalar_lea.vmem %s2088_s5, %s2172_s27 }
  0x44   : > { %1601 = vmatpush3.msra.mxu0 %v2031_v2  ;;  %s1513_s30 = smul.u32 4294967290, %s1881_s15 }
  0x45   : > { %1602 = vmatprep.subr.mxu0 %v1895_v0  ;;  %s1519_s9 = smul.u32 4294967286, %s1881_s15 }
  0x46   : > { %1603 = vmatpush3.msra.mxu0 %v2036_v4  ;;  %s1401_s25 = scalar_lea.vmem %s2088_s5, %s1513_s30  ;;  %s1525_s12 = smul.u32 4294967282, %s1881_s15 }
  0x47   : > { %1604 = vmatprep.subr.mxu0 %v1895_v0  ;;  %s1409_s11 = scalar_lea.vmem %s2088_s5, %s1519_s9 }
  0x48   : > { %1605 = vmatpush3.msra.mxu0 %v2042_v5  ;;  %s1417_s15 = scalar_lea.vmem %s2088_s5, %s1525_s12 }
  0x49   : > { %1620 = vmatprep.subr.mxu0 %v1895_v0 }
  0xac   : > { %v2065_v7 = vpop.permute.xlu0 %434 }
 0x100   : > { %v418_v8 = vpop.f32.mrf.mxu0 }
 0x101   : > { %v437_v9 = vadd.f32 %v2065_v7, %v418_v8  ;;  %v422_v12 = vadd.f32 %v418_v8, %v346_v11 }
 0x102   : > { %v1586_v10 = vpop.f32.mrf.mxu0 }
 0x103   : > { %439 = vrot.lane.b32.xlu0 %v437_v9, %s1897_s23  ;;  %v1490_v13 = vmul.f32 -1.442695, %v422_v12 }
 0x105   : > { %1731 = vpow2.f32 %v1490_v13 }
 0x107   : > { %455 = vrot.lane.b32.xlu0 %v347_v6, %s1898_s6 }
 0x112   : > { %v1732_v14 = vpop.eup %1731 }
 0x113   : > { %v426_v15 = vadd.f32 1.0, %v1732_v14 }
 0x115   : > { %1733 = vrcp.f32 %v426_v15 }
 0x122   : > { %v1734_v16 = vpop.eup %1733 }
 0x123   : > { %v449_v23 = vsub.f32 1.0, %v1734_v16 }
 0x175   : > { %v440_v17 = vpop.permute.xlu0 %439 }
 0x176   : > { %v442_v18 = vmul.f32 %v1734_v16, %v440_v17 }
 0x178   : > { %444 = vrot.lane.b32.xlu1 %v442_v18, %s1897_s23 }
 0x179   : > { %v456_v22 = vpop.permute.xlu0 %455 }
 0x17a   : > { %v458_v25 = vmul.f32 %v1734_v16, %v456_v22 }
 0x1ea   : > { %v445_v19 = vpop.permute.xlu1 %444 }
 0x1eb   : > { %v447_v20 = vadd.f32 %v445_v19, %v346_v11  ;;  %v1505_v19 = vld [vmem:[%s1386_s21 + $0x6] sm:$0x3] }
 0x1ed   : > { %1735 = vtanh.f32 %v447_v20 }
 0x1fa   : > { %v1736_v21 = vpop.eup %1735 }
 0x1fb   : > { %451 = vrot.lane.b32.xlu1 %v1736_v21, %s1899_s4 }
 0x26d   : > { %v452_v24 = vpop.permute.xlu1 %451 }
 0x26e   : > { %v454_v26 = vmul.f32 %v452_v24, %v449_v23 }
 0x270   : > { %v459_v27 = vadd.f32 %v458_v25, %v454_v26 }
 0x272   : > { %461 = vrot.lane.b32.xlu1 %v459_v27, %s1899_s4 }
 0x2e4   : > { %v462_v28 = vpop.permute.xlu1 %461 }
 0x2e5   : > { %465 = vst.msk [vmem:[#allocation2] sm:$0x3] %vm336_vm0, %v462_v28  ;;  %467 = vst.msk [vmem:[%s466_s7] sm:$0x3] %vm336_vm0, %v462_v28  ;;  %s1397_s7 = scalar_lea.vmem %s2079_s28, %s1513_s30 }
 0x2ec   : > { %v473_v29 = vld [vmem:[#allocation2] sm:$0x3] }
 0x2ed   : > { %1596 = vmatmul.mubr.msk.f32.vlgmr.msra.gmra.mxu1 %vm348_vm2, %v473_v29 }
 0x2ee   : > { %1610 = vmatpush3.msra.mxu1 %v2029_v1  ;;  %1617 = vmatprep.mubr.msk.f32.mxu1 %vm1896_vm1, %v1895_v0 }
 0x2ef   : > { %1611 = vmatprep.subr.mxu1 %v1895_v0 }
 0x2f0   : > { %1612 = vmatpush3.msra.mxu1 %v2031_v2 }
 0x2f1   : > { %1613 = vmatprep.subr.mxu1 %v1895_v0 }
 0x2f2   : > { %1614 = vmatpush3.msra.mxu1 %v2036_v4 }
 0x2f3   : > { %1615 = vmatprep.subr.mxu1 %v1895_v0 }
 0x2f4   : > { %1616 = vmatpush3.msra.mxu1 %v2042_v5 }
 0x2f5   : > { %1631 = vmatprep.subr.mxu1 %v1895_v0 }
 0x3ad   : > { %v543_v30 = vpop.f32.mrf.mxu1 }
 0x3ae   : > { %v554_v31 = vadd.f32 %v543_v30, %v2065_v7  ;;  %v547_v34 = vadd.f32 %v1493_v33, %v543_v30 }
 0x3af   : > { %v1597_v32 = vpop.f32.mrf.mxu1 }
 0x3b0   : > { %556 = vrot.lane.b32.xlu0 %v554_v31, %s1897_s23  ;;  %v1495_v35 = vmul.f32 -1.442695, %v547_v34 }
 0x3b2   : > { %1737 = vpow2.f32 %v1495_v35 }
 0x3bf   : > { %v1738_v36 = vpop.eup %1737 }
 0x3c0   : > { %v551_v37 = vadd.f32 1.0, %v1738_v36 }
 0x3c2   : > { %1739 = vrcp.f32 %v551_v37 }
 0x3cf   : > { %v1740_v38 = vpop.eup %1739 }
 0x3d0   : > { %v566_v45 = vsub.f32 1.0, %v1740_v38 }
 0x422   : > { %v557_v39 = vpop.permute.xlu0 %556 }
 0x423   : > { %v559_v40 = vmul.f32 %v1740_v38, %v557_v39 }
 0x425   : > { %561 = vrot.lane.b32.xlu1 %v559_v40, %s1897_s23 }
 0x429   : > { %572 = vrot.lane.b32.xlu1 %v473_v29, %s1898_s6 }
 0x497   : > { %v562_v41 = vpop.permute.xlu1 %561 }
 0x498   : > { %v564_v42 = vadd.f32 %v1493_v33, %v562_v41  ;;  %v818_v41 = vld [vmem:[%s817_s29] sm:$0x3] }
 0x49a   : > { %1741 = vtanh.f32 %v564_v42 }
 0x49b   : > { %v573_v44 = vpop.permute.xlu1 %572 }
 0x49c   : > { %v575_v47 = vmul.f32 %v1740_v38, %v573_v44 }
 0x4a7   : > { %v1742_v43 = vpop.eup %1741 }
 0x4a8   : > { %568 = vrot.lane.b32.xlu0 %v1742_v43, %s1899_s4 }
 0x51a   : > { %v569_v46 = vpop.permute.xlu0 %568 }
 0x51b   : > { %v571_v48 = vmul.f32 %v569_v46, %v566_v45 }
 0x51d   : > { %v576_v49 = vadd.f32 %v575_v47, %v571_v48 }
 0x51f   : > { %578 = vrot.lane.b32.xlu0 %v576_v49, %s1899_s4 }
 0x591   : > { %v579_v50 = vpop.permute.xlu0 %578 }
 0x592   : > { %581 = vst.msk [vmem:[#allocation2] sm:$0x3] %vm336_vm0, %v579_v50  ;;  %1497 = vst.msk [vmem:[%s1375_s10 + $0x2] sm:$0x3] %vm336_vm0, %v579_v50  ;;  %s1405_s10 = scalar_lea.vmem %s2079_s28, %s1519_s9 }
 0x599   : > { %v589_v51 = vld [vmem:[#allocation2] sm:$0x3] }
 0x59a   : > { %1607 = vmatmul.mubr.msk.f32.vlgmr.msra.gmra.mxu0 %vm348_vm2, %v589_v51 }
 0x59b   : > { %1621 = vmatpush3.msra.mxu0 %v2029_v1  ;;  %1628 = vmatprep.mubr.msk.f32.mxu0 %vm1896_vm1, %v1895_v0 }
 0x59c   : > { %1622 = vmatprep.subr.mxu0 %v1895_v0 }
 0x59d   : > { %1623 = vmatpush3.msra.mxu0 %v2031_v2 }
 0x59e   : > { %1624 = vmatprep.subr.mxu0 %v1895_v0 }
 0x59f   : > { %1625 = vmatpush3.msra.mxu0 %v2036_v4 }
 0x5a0   : > { %1626 = vmatprep.subr.mxu0 %v1895_v0 }
 0x5a1   : > { %1627 = vmatpush3.msra.mxu0 %v2042_v5 }
 0x5a2   : > { %1642 = vmatprep.subr.mxu0 %v1895_v0 }
 0x65a   : > { %v659_v52 = vpop.f32.mrf.mxu0 }
 0x65b   : > { %v670_v53 = vadd.f32 %v659_v52, %v2065_v7  ;;  %v663_v56 = vadd.f32 %v1499_v55, %v659_v52 }
 0x65c   : > { %v1608_v54 = vpop.f32.mrf.mxu0 }
 0x65d   : > { %672 = vrot.lane.b32.xlu1 %v670_v53, %s1897_s23  ;;  %v1501_v57 = vmul.f32 -1.442695, %v663_v56 }
 0x65f   : > { %1743 = vpow2.f32 %v1501_v57 }
 0x66c   : > { %v1744_v58 = vpop.eup %1743 }
 0x66d   : > { %v667_v59 = vadd.f32 1.0, %v1744_v58 }
 0x66f   : > { %1745 = vrcp.f32 %v667_v59 }
 0x67c   : > { %v1746_v60 = vpop.eup %1745 }
 0x67d   : > { %v682_v9 = vsub.f32 1.0, %v1746_v60 }
 0x6cf   : > { %v673_v61 = vpop.permute.xlu1 %672 }
 0x6d0   : > { %v675_v62 = vmul.f32 %v1746_v60, %v673_v61 }
 0x6d2   : > { %677 = vrot.lane.b32.xlu0 %v675_v62, %s1897_s23 }
 0x6d6   : > { %688 = vrot.lane.b32.xlu0 %v589_v51, %s1898_s6 }
 0x744   : > { %v678_v63 = vpop.permute.xlu0 %677 }
 0x745   : > { %v680_v3 = vadd.f32 %v1499_v55, %v678_v63 }
 0x747   : > { %1747 = vtanh.f32 %v680_v3 }
 0x748   : > { %v689_v8 = vpop.permute.xlu0 %688 }
 0x749   : > { %v691_v11 = vmul.f32 %v1746_v60, %v689_v8 }
 0x754   : > { %v1748_v6 = vpop.eup %1747 }
 0x755   : > { %684 = vrot.lane.b32.xlu1 %v1748_v6, %s1899_s4 }
 0x7c7   : > { %v685_v10 = vpop.permute.xlu1 %684 }
 0x7c8   : > { %v687_v12 = vmul.f32 %v685_v10, %v682_v9 }
 0x7ca   : > { %v692_v13 = vadd.f32 %v691_v11, %v687_v12 }
 0x7cc   : > { %694 = vrot.lane.b32.xlu1 %v692_v13, %s1899_s4 }
 0x83e   : > { %v695_v14 = vpop.permute.xlu1 %694 }
 0x83f   : > { %697 = vst.msk [vmem:[#allocation2] sm:$0x3] %vm336_vm0, %v695_v14  ;;  %1503 = vst.msk [vmem:[%s1383_s18 + $0x4] sm:$0x3] %vm336_vm0, %v695_v14  ;;  %s1413_s18 = scalar_lea.vmem %s2079_s28, %s1525_s12 }
 0x846   : > { %v704_v15 = vld [vmem:[#allocation2] sm:$0x3] }
 0x847   : > { %1618 = vmatmul.mubr.msk.f32.vlgmr.msra.gmra.mxu1 %vm348_vm2, %v704_v15 }
 0x848   : > { %1632 = vmatpush3.msra.mxu1 %v2029_v1  ;;  %1639 = vmatprep.mubr.msk.f32.mxu1 %vm1896_vm1, %v1895_v0 }
 0x849   : > { %1633 = vmatprep.subr.mxu1 %v1895_v0 }
 0x84a   : > { %1634 = vmatpush3.msra.mxu1 %v2031_v2 }
 0x84b   : > { %1635 = vmatprep.subr.mxu1 %v1895_v0 }
 0x84c   : > { %1636 = vmatpush3.msra.mxu1 %v2036_v4 }
 0x84d   : > { %1637 = vmatprep.subr.mxu1 %v1895_v0 }
 0x84e   : > { %1638 = vmatpush3.msra.mxu1 %v2042_v5 }
 0x84f   : > { %1653 = vmatprep.subr.mxu1 %v1895_v0 }
 0x907   : > { %v774_v16 = vpop.f32.mrf.mxu1 }
 0x908   : > { %v785_v17 = vadd.f32 %v774_v16, %v2065_v7  ;;  %v778_v20 = vadd.f32 %v1505_v19, %v774_v16 }
 0x909   : > { %v1619_v18 = vpop.f32.mrf.mxu1 }
 0x90a   : > { %787 = vrot.lane.b32.xlu0 %v785_v17, %s1897_s23  ;;  %v1507_v21 = vmul.f32 -1.442695, %v778_v20 }
 0x90c   : > { %1749 = vpow2.f32 %v1507_v21 }
 0x919   : > { %v1750_v22 = vpop.eup %1749 }
 0x91a   : > { %v782_v23 = vadd.f32 1.0, %v1750_v22  ;;  %v1520_v22 = vld [vmem:[%s1405_s10 + $0xc] sm:$0x3] }
 0x91c   : > { %1751 = vrcp.f32 %v782_v23 }
 0x929   : > { %v1752_v24 = vpop.eup %1751 }
 0x92a   : > { %v797_v31 = vsub.f32 1.0, %v1752_v24 }
 0x97c   : > { %v788_v25 = vpop.permute.xlu0 %787 }
 0x97d   : > { %v790_v26 = vmul.f32 %v1752_v24, %v788_v25 }
 0x97f   : > { %792 = vrot.lane.b32.xlu1 %v790_v26, %s1897_s23 }
 0x983   : > { %803 = vrot.lane.b32.xlu1 %v704_v15, %s1898_s6 }
 0x9f1   : > { %v793_v27 = vpop.permute.xlu1 %792 }
 0x9f2   : > { %v795_v28 = vadd.f32 %v1505_v19, %v793_v27 }
 0x9f4   : > { %1753 = vtanh.f32 %v795_v28 }
 0x9f5   : > { %v804_v30 = vpop.permute.xlu1 %803 }
 0x9f6   : > { %v806_v33 = vmul.f32 %v1752_v24, %v804_v30 }
 0xa01   : > { %v1754_v29 = vpop.eup %1753 }
 0xa02   : > { %799 = vrot.lane.b32.xlu0 %v1754_v29, %s1899_s4 }
 0xa74   : > { %v800_v32 = vpop.permute.xlu0 %799 }
 0xa75   : > { %v802_v34 = vmul.f32 %v800_v32, %v797_v31 }
 0xa77   : > { %v807_v35 = vadd.f32 %v806_v33, %v802_v34 }
 0xa79   : > { %809 = vrot.lane.b32.xlu0 %v807_v35, %s1899_s4 }
 0xaeb   : > { %v810_v36 = vpop.permute.xlu0 %809 }
 0xaec   : > { %812 = vst.msk [vmem:[#allocation2] sm:$0x3] %vm336_vm0, %v810_v36  ;;  %1509 = vst.msk [vmem:[%s1389_s22 + $0x6] sm:$0x3] %vm336_vm0, %v810_v36 }
 0xaf3   : > { %v819_v37 = vld [vmem:[#allocation2] sm:$0x3] }
 0xaf4   : > { %1629 = vmatmul.mubr.msk.f32.vlgmr.msra.gmra.mxu0 %vm348_vm2, %v819_v37 }
 0xaf5   : > { %1643 = vmatpush3.msra.mxu0 %v2029_v1  ;;  %1650 = vmatprep.mubr.msk.f32.mxu0 %vm1896_vm1, %v1895_v0 }
 0xaf6   : > { %1644 = vmatprep.subr.mxu0 %v1895_v0 }
 0xaf7   : > { %1645 = vmatpush3.msra.mxu0 %v2031_v2 }
 0xaf8   : > { %1646 = vmatprep.subr.mxu0 %v1895_v0 }
 0xaf9   : > { %1647 = vmatpush3.msra.mxu0 %v2036_v4 }
 0xafa   : > { %1648 = vmatprep.subr.mxu0 %v1895_v0 }
 0xafb   : > { %1649 = vmatpush3.msra.mxu0 %v2042_v5 }
 0xbb4   : > { %v889_v38 = vpop.f32.mrf.mxu0 }
 0xbb5   : > { %v900_v39 = vadd.f32 %v889_v38, %v2065_v7  ;;  %v893_v42 = vadd.f32 %v889_v38, %v818_v41 }
 0xbb6   : > { %v1630_v40 = vpop.f32.mrf.mxu0 }
 0xbb7   : > { %902 = vrot.lane.b32.xlu1 %v900_v39, %s1897_s23  ;;  %v1512_v43 = vmul.f32 -1.442695, %v893_v42 }
 0xbb9   : > { %1755 = vpow2.f32 %v1512_v43 }
 0xbc6   : > { %v1756_v44 = vpop.eup %1755 }
 0xbc7   : > { %v897_v45 = vadd.f32 1.0, %v1756_v44  ;;  %v1526_v44 = vld [vmem:[%s1413_s18 + $0xe] sm:$0x3] }
 0xbc9   : > { %1757 = vrcp.f32 %v897_v45 }
 0xbd6   : > { %v1758_v46 = vpop.eup %1757 }
 0xbd7   : > { %v912_v53 = vsub.f32 1.0, %v1758_v46 }
 0xc29   : > { %v903_v47 = vpop.permute.xlu1 %902 }
 0xc2a   : > { %v905_v48 = vmul.f32 %v1758_v46, %v903_v47 }
 0xc2c   : > { %907 = vrot.lane.b32.xlu0 %v905_v48, %s1897_s23 }
 0xc30   : > { %918 = vrot.lane.b32.xlu0 %v819_v37, %s1898_s6 }
 0xc9e   : > { %v908_v49 = vpop.permute.xlu0 %907 }
 0xc9f   : > { %v910_v50 = vadd.f32 %v908_v49, %v818_v41 }
 0xca1   : > { %1759 = vtanh.f32 %v910_v50 }
 0xca2   : > { %v919_v52 = vpop.permute.xlu0 %918 }
 0xca3   : > { %v921_v55 = vmul.f32 %v1758_v46, %v919_v52 }
 0xcae   : > { %v1760_v51 = vpop.eup %1759 }
 0xcaf   : > { %914 = vrot.lane.b32.xlu1 %v1760_v51, %s1899_s4 }
 0xd21   : > { %v915_v54 = vpop.permute.xlu1 %914 }
 0xd22   : > { %v917_v56 = vmul.f32 %v915_v54, %v912_v53 }
 0xd24   : > { %v922_v57 = vadd.f32 %v921_v55, %v917_v56 }
 0xd26   : > { %924 = vrot.lane.b32.xlu1 %v922_v57, %s1899_s4 }
 0xd98   : > { %v925_v58 = vpop.permute.xlu1 %924 }
 0xd99   : > { %927 = vst.msk [vmem:[#allocation2] sm:$0x3] %vm336_vm0, %v925_v58  ;;  %929 = vst.msk [vmem:[%s928_s8] sm:$0x3] %vm336_vm0, %v925_v58 }
 0xda0   : > { %v935_v59 = vld [vmem:[#allocation2] sm:$0x3] }
 0xda1   : > { %1640 = vmatmul.mubr.msk.f32.vlgmr.msra.gmra.mxu1 %vm348_vm2, %v935_v59 }
 0xda2   : > { %1654 = vmatpush3.msra.mxu1 %v2029_v1  ;;  %1661 = vmatprep.mubr.msk.f32.mxu1 %vm1896_vm1, %v1895_v0  ;;  %v1514_v1 = vld [vmem:[%s1397_s7 + $0xa] sm:$0x3] }
 0xda3   : > { %1655 = vmatprep.subr.mxu1 %v1895_v0 }
 0xda4   : > { %1656 = vmatpush3.msra.mxu1 %v2031_v2 }
 0xda5   : > { %1657 = vmatprep.subr.mxu1 %v1895_v0 }
 0xda6   : > { %1658 = vmatpush3.msra.mxu1 %v2036_v4 }
 0xda7   : > { %1659 = vmatprep.subr.mxu1 %v1895_v0 }
 0xda8   : > { %1660 = vmatpush3.msra.mxu1 %v2042_v5 }
 0xe61   : > { %v1005_v60 = vpop.f32.mrf.mxu1 }
 0xe62   : > { %v1016_v61 = vadd.f32 %v1005_v60, %v2065_v7  ;;  %v1009_v63 = vadd.f32 %v1514_v1, %v1005_v60 }
 0xe63   : > { %v1641_v62 = vpop.f32.mrf.mxu1 }
 0xe64   : > { %1018 = vrot.lane.b32.xlu0 %v1016_v61, %s1897_s23  ;;  %v1516_v3 = vmul.f32 -1.442695, %v1009_v63 }
 0xe66   : > { %1761 = vpow2.f32 %v1516_v3 }
 0xe73   : > { %v1762_v2 = vpop.eup %1761 }
 0xe74   : > { %v1013_v6 = vadd.f32 1.0, %v1762_v2 }
 0xe76   : > { %1763 = vrcp.f32 %v1013_v6 }
 0xe83   : > { %v1764_v4 = vpop.eup %1763 }
 0xe84   : > { %v1028_v12 = vsub.f32 1.0, %v1764_v4 }
 0xed6   : > { %v1019_v8 = vpop.permute.xlu0 %1018 }
 0xed7   : > { %v1021_v0 = vmul.f32 %v1764_v4, %v1019_v8 }
 0xed9   : > { %1023 = vrot.lane.b32.xlu1 %v1021_v0, %s1897_s23 }
 0xedd   : > { %1034 = vrot.lane.b32.xlu1 %v935_v59, %s1898_s6 }
 0xf4b   : > { %v1024_v5 = vpop.permute.xlu1 %1023 }
 0xf4c   : > { %v1026_v9 = vadd.f32 %v1514_v1, %v1024_v5 }
 0xf4e   : > { %1765 = vtanh.f32 %v1026_v9 }
 0xf4f   : > { %v1035_v11 = vpop.permute.xlu1 %1034 }
 0xf50   : > { %v1037_v14 = vmul.f32 %v1764_v4, %v1035_v11 }
 0xf5b   : > { %v1766_v10 = vpop.eup %1765 }
 0xf5c   : > { %1030 = vrot.lane.b32.xlu0 %v1766_v10, %s1899_s4 }
 0xfce   : > { %v1031_v13 = vpop.permute.xlu0 %1030 }
 0xfcf   : > { %v1033_v15 = vmul.f32 %v1031_v13, %v1028_v12 }
 0xfd1   : > { %v1038_v16 = vadd.f32 %v1037_v14, %v1033_v15 }
 0xfd3   : > { %1040 = vrot.lane.b32.xlu0 %v1038_v16, %s1899_s4 }
0x1045   : > { %v1041_v17 = vpop.permute.xlu0 %1040 }
0x1046   : > { %1043 = vst.msk [vmem:[#allocation2] sm:$0x3] %vm336_vm0, %v1041_v17  ;;  %1518 = vst.msk [vmem:[%s1401_s25 + $0xa] sm:$0x3] %vm336_vm0, %v1041_v17 }
0x104d   : > { %v1051_v18 = vld [vmem:[#allocation2] sm:$0x3] }
0x104e   : > { %1651 = vmatmul.mubr.msk.f32.vlgmr.msra.gmra.mxu0 %vm348_vm2, %v1051_v18 }
0x110e   : > { %v1121_v19 = vpop.f32.mrf.mxu0 }
0x110f   : > { %v1132_v20 = vadd.f32 %v1121_v19, %v2065_v7  ;;  %v1125_v23 = vadd.f32 %v1520_v22, %v1121_v19 }
0x1110   : > { %v1652_v21 = vpop.f32.mrf.mxu0 }
0x1111   : > { %1134 = vrot.lane.b32.xlu1 %v1132_v20, %s1897_s23  ;;  %v1522_v24 = vmul.f32 -1.442695, %v1125_v23 }
0x1113   : > { %1767 = vpow2.f32 %v1522_v24 }
0x1120   : > { %v1768_v25 = vpop.eup %1767 }
0x1121   : > { %v1129_v26 = vadd.f32 1.0, %v1768_v25 }
0x1123   : > { %1769 = vrcp.f32 %v1129_v26 }
0x1130   : > { %v1770_v27 = vpop.eup %1769 }
0x1131   : > { %v1144_v34 = vsub.f32 1.0, %v1770_v27 }
0x1183   : > { %v1135_v28 = vpop.permute.xlu1 %1134 }
0x1184   : > { %v1137_v29 = vmul.f32 %v1770_v27, %v1135_v28 }
0x1186   : > { %1139 = vrot.lane.b32.xlu0 %v1137_v29, %s1897_s23 }
0x118a   : > { %1150 = vrot.lane.b32.xlu0 %v1051_v18, %s1898_s6 }
0x11f8   : > { %v1140_v30 = vpop.permute.xlu0 %1139 }
0x11f9   : > { %v1142_v31 = vadd.f32 %v1520_v22, %v1140_v30 }
0x11fb   : > { %1771 = vtanh.f32 %v1142_v31 }
0x11fc   : > { %v1151_v33 = vpop.permute.xlu0 %1150 }
0x11fd   : > { %v1153_v36 = vmul.f32 %v1770_v27, %v1151_v33 }
0x1208   : > { %v1772_v32 = vpop.eup %1771 }
0x1209   : > { %1146 = vrot.lane.b32.xlu1 %v1772_v32, %s1899_s4 }
0x127b   : > { %v1147_v35 = vpop.permute.xlu1 %1146 }
0x127c   : > { %v1149_v37 = vmul.f32 %v1147_v35, %v1144_v34 }
0x127e   : > { %v1154_v38 = vadd.f32 %v1153_v36, %v1149_v37 }
0x1280   : > { %1156 = vrot.lane.b32.xlu1 %v1154_v38, %s1899_s4 }
0x12f2   : > { %v1157_v39 = vpop.permute.xlu1 %1156 }
0x12f3   : > { %1159 = vst.msk [vmem:[#allocation2] sm:$0x3] %vm336_vm0, %v1157_v39  ;;  %1524 = vst.msk [vmem:[%s1409_s11 + $0xc] sm:$0x3] %vm336_vm0, %v1157_v39 }
0x12fa   : > { %v1167_v40 = vld [vmem:[#allocation2] sm:$0x3] }
0x12fb   : > { %1662 = vmatmul.mubr.msk.f32.vlgmr.msra.gmra.mxu1 %vm348_vm2, %v1167_v40 }
0x13bb   : > { %v1237_v41 = vpop.f32.mrf.mxu1 }
0x13bc   : > { %v1248_v42 = vadd.f32 %v1237_v41, %v2065_v7  ;;  %v1241_v45 = vadd.f32 %v1526_v44, %v1237_v41 }
0x13bd   : > { %v1663_v43 = vpop.f32.mrf.mxu1 }
0x13be   : > { %1250 = vrot.lane.b32.xlu0 %v1248_v42, %s1897_s23  ;;  %v1528_v46 = vmul.f32 -1.442695, %v1241_v45 }
0x13c0   : > { %1773 = vpow2.f32 %v1528_v46 }
0x13cd   : > { %v1774_v47 = vpop.eup %1773 }
0x13ce   : > { %v1245_v48 = vadd.f32 1.0, %v1774_v47 }
0x13d0   : > { %1775 = vrcp.f32 %v1245_v48 }
0x13dd   : > { %v1776_v49 = vpop.eup %1775 }
0x13de   : > { %v1260_v55 = vsub.f32 1.0, %v1776_v49 }
0x1430   : > { %v1251_v50 = vpop.permute.xlu0 %1250 }
0x1431   : > { %v1253_v51 = vmul.f32 %v1776_v49, %v1251_v50 }
0x1433   : > { %1255 = vrot.lane.b32.xlu1 %v1253_v51, %s1897_s23 }
0x1437   : > { %1266 = vrot.lane.b32.xlu1 %v1167_v40, %s1898_s6 }
0x14a5   : > { %v1256_v7 = vpop.permute.xlu1 %1255 }
0x14a6   : > { %v1258_v52 = vadd.f32 %v1526_v44, %v1256_v7 }
0x14a8   : > { %1777 = vtanh.f32 %v1258_v52 }
0x14a9   : > { %v1267_v54 = vpop.permute.xlu1 %1266 }
0x14aa   : > { %v1269_v57 = vmul.f32 %v1776_v49, %v1267_v54 }
0x14b5   : > { %v1778_v53 = vpop.eup %1777 }
0x14b6   : > { %1262 = vrot.lane.b32.xlu0 %v1778_v53, %s1899_s4 }
0x1528   : > { %v1263_v56 = vpop.permute.xlu0 %1262 }
0x1529   : > { %v1265_v58 = vmul.f32 %v1263_v56, %v1260_v55 }
0x152b   : > { %v1270_v59 = vadd.f32 %v1269_v57, %v1265_v58 }
0x152d   : > { %1272 = vrot.lane.b32.xlu0 %v1270_v59, %s1899_s4 }
0x159f   : > { %v1273_v60 = vpop.permute.xlu0 %1272 }
0x15a0   : > { %1275 = vst.msk [vmem:[#allocation2] sm:$0x3] %vm336_vm0, %v1273_v60  ;;  %1530 = vst.msk [vmem:[%s1417_s15 + $0xe] sm:$0x3] %vm336_vm0, %v1273_v60 }
0x15a1 PF: > { %s19_s17 = sadd.s32 1, %s1889_s17   ;;  %s2255_s12 = smov %s1873_s13 }
0x15a2   : > { %p16_p9 = scmp.ge.s32.totalorder %s19_s17, 4   ;;  %s2256_s13 = smov %s1877_s14 }
0x15a3   : > { %s2257_s14 = smov %s1969_s24  ;;  %s2258_s15 = smov %s1885_s16 }
0x15a4   : > { %s2259_s16 = smov %s2261_s19  ;;  %18 = sbr.rel (!%p16_p9) target bundleno = 6 (0x6), region = 108 }
0x15a9   :  { %1320 = vsyncpa [#allocation4], 1 }
0x15aa   :  { %1322 = vsyncpa [#allocation4 + $0x1], 1 }
0x15ab   :  { %1323 = vsyncpa [#allocation6], 1 }
0x15ac   :  { %1325 = vsyncpa [#allocation6 + $0x1], 1 }

// kernel: zgru_forward.8
= control target key start
LH: loop header
LB: loop body
LE: loop exit
PB: predicated region body
PF: predicated region fallthrough
CT: control target
= control target key end

     0   :  { %s1725_s12 = smov 0   ;;  %s1727_s13 = smov 0   ;;  %s1970_s0 = inlined_call_operand.vmem [shape: f32[2,8,2,96], index: 0, kind: input, shape index: {}]   ;;  %s1971_s1 = inlined_call_operand.vmem [shape: f32[2,32,96], index: 1, kind: input, shape index: {}]   ;;  %s1972_s2 = inlined_call_operand.vmem [shape: f32[2,1,32], index: 2, kind: input, shape index: {}]   ;;  %s1973_s3 = inlined_call_operand.vmem [shape: f32[2,8,2,32], index: 3, kind: output, shape index: {}]  }
   0x1   :  { %s1729_s14 = smov 0  }
   0x2 LB: > { %s25_s15 = sadd.s32 1, %s1694_s13  ;;  %p1416_p0 = scmp.ge.s32.totalorder %s1698_s14, 1  ;;  %s1698_s14 = sphi %s1729_s14, %s13_s14   ;;  %s1694_s13 = sphi %s1727_s13, %s1975_s13   ;;  %s1690_s12 = sphi %s1725_s12, %s1974_s12  }
   0x3   : > { %p27_p1 = scmp.ge.s32.totalorder %s25_s15, 2  ;;  %p200_p2 = scmp.lt.s32.totalorder %s1698_s14, 3 }
   0x5   : > { %s1977_s15 = smov (%p27_p1, %s25_s15), 0  ;;  %p201_p3 = pnand %p1416_p0, %p200_p2 }
   0x6   : > { %p253_p4 = scmp.lt.s32.totalorder (!%p201_p3), %s1690_s12, 1  ;;  %s1702_s24 = smov (!%p201_p3), 64  }
   0x7   : > { %204 = sbr.rel (%p201_p3) target bundleno = 5497 (0x1579), region = 32  ;;  %s1703_s25 = smov (!%p201_p3), 32  }
   0x8   : > { %s1423_s27 = smul.u32 (!%p201_p3), 14, %s1690_s12  ;;  %s1704_s5 = smov (!%p201_p3), 96  }
   0x9   : > { %s1427_s10 = smul.u32 (!%p201_p3), 10, %s1690_s12 }
   0xa   : > { %s1448_s29 = smul.u32 (!%p201_p3), 4294967290, %s1690_s12 }
   0xb   : > { %s1454_s7 = smul.u32 (!%p201_p3), 4294967286, %s1690_s12 }
   0xc   : > { %vm296_vm0 = vcmask 254976   ;;  %v1700_v0 = vmov 0.0   ;;  %vm1701_vm1 = vmmov 0   ;;  %s1752_s16 = scalar_select %p253_p4, %s1690_s12, 1  ;;  %vm308_vm2 = vcmask 261120  }
   0xd   : > { %1511 = vmatprep.subr.mxu0 %v1700_v0  ;;  %1519 = vmatprep.mubr.msk.f32.mxu0 %vm1701_vm1, %v1700_v0  ;;  %297 = vst.msk [vmem:[#allocation2] sm:$0x3] %vm296_vm0, %v1700_v0 }
   0xe   : > { %1522 = vmatprep.subr.mxu1 %v1700_v0  ;;  %1530 = vmatprep.mubr.msk.f32.mxu1 %vm1701_vm1, %v1700_v0  ;;  %s1469_s17 = sshll.u32 %s1752_s16, 5  ;;  %s273_s20 = scalar_lea.vmem %s1972_s2, %s1752_s16 }
   0xf   : > { %s270_s23 = scalar_lea.vmem %s1971_s1, %s1469_s17  ;;  %v1426_v1 = vld [vmem:[%s273_s20] ss:$0 sm:$0xff]  ;;  %s1468_s26 = sshll.u32 %s1752_s16, 4 }
  0x10   : > { %v1765_v2 = vld [vmem:[%s270_s23 + $0x18] sm:$0xff]  ;;  %v1767_v3 = vld [vmem:[%s270_s23 + $0x10] sm:$0xff]  ;;  %394 = vrot.lane.b32.xlu0 %v1426_v1, %s1702_s24  ;;  %v1773_v4 = vld [vmem:[%s270_s23 + $0x8] sm:$0xff]  ;;  %s1811_s30 = scalar_lea.vmem %s1970_s0, %s1468_s26  ;;  %s1820_s8 = scalar_lea.vmem %s1973_s3, %s1468_s26 }
  0x11   : > { %1512 = vmatpush3.msra.mxu0 %v1765_v2  ;;  %1523 = vmatpush3.msra.mxu1 %v1765_v2  ;;  %v1779_v5 = vld [vmem:[%s270_s23] sm:$0xff]  ;;  %s305_s4 = scalar_lea.vmem %s1811_s30, %s1423_s27  ;;  %s426_s9 = scalar_lea.vmem %s1820_s8, %s1423_s27 }
  0x12   : > { %1513 = vmatprep.subr.mxu0 %v1700_v0  ;;  %1524 = vmatprep.subr.mxu1 %v1700_v0  ;;  %v306_v11 = vld [vmem:[%s305_s4] sm:$0x3]  ;;  %s1315_s11 = scalar_lea.vmem %s1811_s30, %s1427_s10  ;;  %s1319_s16 = scalar_lea.vmem %s1820_s8, %s1427_s10 }
  0x13   : > { %1514 = vmatpush3.msra.mxu0 %v1767_v3  ;;  %1525 = vmatpush3.msra.mxu1 %v1767_v3  ;;  %v1428_v33 = vld [vmem:[%s1315_s11 + $0x2] sm:$0x3]  ;;  %s1433_s17 = smul.u32 6, %s1690_s12  ;;  %s1439_s20 = sshll.u32 %s1690_s12, 1 }
  0x14   : > { %1515 = vmatprep.subr.mxu0 %v1700_v0  ;;  %1526 = vmatprep.subr.mxu1 %v1700_v0  ;;  %v307_v6 = vld [vmem:[#allocation2] sm:$0x3]  ;;  %s1330_s21 = scalar_lea.vmem %s1811_s30, %s1439_s20  ;;  %s1333_s22 = scalar_lea.vmem %s1820_s8, %s1439_s20 }
  0x15   : > { %1516 = vmatpush3.msra.mxu0 %v1773_v4  ;;  %1527 = vmatpush3.msra.mxu1 %v1773_v4  ;;  %s1323_s18 = scalar_lea.vmem %s1811_s30, %s1433_s17  ;;  %s1327_s19 = scalar_lea.vmem %s1820_s8, %s1433_s17 }
  0x16   : > { %1517 = vmatprep.subr.mxu0 %v1700_v0  ;;  %1528 = vmatprep.subr.mxu1 %v1700_v0  ;;  %v1434_v55 = vld [vmem:[%s1323_s18 + $0x4] sm:$0x3]  ;;  %s775_s23 = ssub.s32 4, %s1690_s12  ;;  %s1341_s4 = scalar_lea.vmem %s1811_s30, %s1448_s29 }
  0x17   : > { %1518 = vmatpush3.msra.mxu0 %v1779_v5  ;;  %1529 = vmatpush3.msra.mxu1 %v1779_v5  ;;  %s1904_s26 = sshll.u32 %s775_s23, 1  ;;  %s1345_s6 = scalar_lea.vmem %s1820_s8, %s1448_s29 }
  0x18   : > { %1520 = vmatmul.mubr.msk.f32.vlgmr.msra.gmra.mxu0 %vm308_vm2, %v307_v6  ;;  %1533 = vmatprep.subr.mxu0 %v1700_v0  ;;  %s777_s27 = scalar_lea.vmem %s1811_s30, %s1904_s26  ;;  %s888_s28 = scalar_lea.vmem %s1820_s8, %s1904_s26 }
  0x19   : > { %1534 = vmatpush3.msra.mxu0 %v1765_v2  ;;  %1541 = vmatprep.mubr.msk.f32.mxu0 %vm1701_vm1, %v1700_v0  ;;  %s1353_s10 = scalar_lea.vmem %s1820_s8, %s1454_s7  ;;  %s1460_s11 = smul.u32 4294967282, %s1690_s12 }
  0x1a   : > { %1535 = vmatprep.subr.mxu0 %v1700_v0  ;;  %1544 = vmatprep.subr.mxu1 %v1700_v0 }
  0x1b   : > { %1536 = vmatpush3.msra.mxu0 %v1767_v3  ;;  %s1361_s12 = scalar_lea.vmem %s1820_s8, %s1460_s11 }
  0x1c   : > { %1537 = vmatprep.subr.mxu0 %v1700_v0 }
  0x1d   : > { %1538 = vmatpush3.msra.mxu0 %v1773_v4 }
  0x1e   : > { %1539 = vmatprep.subr.mxu0 %v1700_v0 }
  0x1f   : > { %1540 = vmatpush3.msra.mxu0 %v1779_v5 }
  0x20   : > { %1555 = vmatprep.subr.mxu0 %v1700_v0 }
  0x82   : > { %v1801_v7 = vpop.permute.xlu0 %394 }
  0xd8   : > { %v378_v8 = vpop.f32.mrf.mxu0 }
  0xd9   : > { %v397_v9 = vadd.f32 %v1801_v7, %v378_v8  ;;  %v382_v12 = vadd.f32 %v378_v8, %v306_v11 }
  0xda   : > { %v1521_v10 = vpop.f32.mrf.mxu0 }
  0xdb   : > { %399 = vrot.lane.b32.xlu0 %v397_v9, %s1702_s24  ;;  %v1425_v13 = vmul.f32 -1.442695, %v382_v12 }
  0xdd   : > { %1628 = vpow2.f32 %v1425_v13 }
  0xdf   : > { %415 = vrot.lane.b32.xlu0 %v307_v6, %s1703_s25 }
  0xea   : > { %v1629_v14 = vpop.eup %1628 }
  0xeb   : > { %v386_v15 = vadd.f32 1.0, %v1629_v14 }
  0xed   : > { %1630 = vrcp.f32 %v386_v15 }
  0xfa   : > { %v1631_v16 = vpop.eup %1630 }
  0xfb   : > { %v409_v23 = vsub.f32 1.0, %v1631_v16 }
 0x14d   : > { %v400_v17 = vpop.permute.xlu0 %399 }
 0x14e   : > { %v402_v18 = vmul.f32 %v1631_v16, %v400_v17 }
 0x150   : > { %404 = vrot.lane.b32.xlu1 %v402_v18, %s1702_s24 }
 0x151   : > { %v416_v22 = vpop.permute.xlu0 %415 }
 0x152   : > { %v418_v25 = vmul.f32 %v1631_v16, %v416_v22 }
 0x1c2   : > { %v405_v19 = vpop.permute.xlu1 %404 }
 0x1c3   : > { %v407_v20 = vadd.f32 %v405_v19, %v306_v11  ;;  %v1440_v19 = vld [vmem:[%s1330_s21 + $0x6] sm:$0x3] }
 0x1c5   : > { %1632 = vtanh.f32 %v407_v20 }
 0x1d2   : > { %v1633_v21 = vpop.eup %1632 }
 0x1d3   : > { %411 = vrot.lane.b32.xlu1 %v1633_v21, %s1704_s5 }
 0x245   : > { %v412_v24 = vpop.permute.xlu1 %411 }
 0x246   : > { %v414_v26 = vmul.f32 %v412_v24, %v409_v23 }
 0x248   : > { %v419_v27 = vadd.f32 %v418_v25, %v414_v26 }
 0x24a   : > { %421 = vrot.lane.b32.xlu1 %v419_v27, %s1704_s5 }
 0x2bc   : > { %v422_v28 = vpop.permute.xlu1 %421 }
 0x2bd   : > { %425 = vst.msk [vmem:[#allocation2] sm:$0x3] %vm296_vm0, %v422_v28  ;;  %427 = vst.msk [vmem:[%s426_s9] sm:$0x3] %vm296_vm0, %v422_v28  ;;  %s1349_s9 = scalar_lea.vmem %s1811_s30, %s1454_s7 }
 0x2c4   : > { %v433_v29 = vld [vmem:[#allocation2] sm:$0x3] }
 0x2c5   : > { %1531 = vmatmul.mubr.msk.f32.vlgmr.msra.gmra.mxu1 %vm308_vm2, %v433_v29 }
 0x2c6   : > { %1545 = vmatpush3.msra.mxu1 %v1765_v2  ;;  %1552 = vmatprep.mubr.msk.f32.mxu1 %vm1701_vm1, %v1700_v0 }
 0x2c7   : > { %1546 = vmatprep.subr.mxu1 %v1700_v0 }
 0x2c8   : > { %1547 = vmatpush3.msra.mxu1 %v1767_v3 }
 0x2c9   : > { %1548 = vmatprep.subr.mxu1 %v1700_v0 }
 0x2ca   : > { %1549 = vmatpush3.msra.mxu1 %v1773_v4 }
 0x2cb   : > { %1550 = vmatprep.subr.mxu1 %v1700_v0 }
 0x2cc   : > { %1551 = vmatpush3.msra.mxu1 %v1779_v5 }
 0x2cd   : > { %1566 = vmatprep.subr.mxu1 %v1700_v0 }
 0x385   : > { %v503_v30 = vpop.f32.mrf.mxu1 }
 0x386   : > { %v514_v31 = vadd.f32 %v503_v30, %v1801_v7  ;;  %v507_v34 = vadd.f32 %v1428_v33, %v503_v30 }
 0x387   : > { %v1532_v32 = vpop.f32.mrf.mxu1 }
 0x388   : > { %516 = vrot.lane.b32.xlu0 %v514_v31, %s1702_s24  ;;  %v1430_v35 = vmul.f32 -1.442695, %v507_v34 }
 0x38a   : > { %1634 = vpow2.f32 %v1430_v35 }
 0x397   : > { %v1635_v36 = vpop.eup %1634 }
 0x398   : > { %v511_v37 = vadd.f32 1.0, %v1635_v36 }
 0x39a   : > { %1636 = vrcp.f32 %v511_v37 }
 0x3a7   : > { %v1637_v38 = vpop.eup %1636 }
 0x3a8   : > { %v526_v45 = vsub.f32 1.0, %v1637_v38 }
 0x3fa   : > { %v517_v39 = vpop.permute.xlu0 %516 }
 0x3fb   : > { %v519_v40 = vmul.f32 %v1637_v38, %v517_v39 }
 0x3fd   : > { %521 = vrot.lane.b32.xlu1 %v519_v40, %s1702_s24 }
 0x401   : > { %532 = vrot.lane.b32.xlu1 %v433_v29, %s1703_s25 }
 0x46f   : > { %v522_v41 = vpop.permute.xlu1 %521 }
 0x470   : > { %v524_v42 = vadd.f32 %v1428_v33, %v522_v41  ;;  %v778_v41 = vld [vmem:[%s777_s27] sm:$0x3] }
 0x472   : > { %1638 = vtanh.f32 %v524_v42 }
 0x473   : > { %v533_v44 = vpop.permute.xlu1 %532 }
 0x474   : > { %v535_v47 = vmul.f32 %v1637_v38, %v533_v44 }
 0x47f   : > { %v1639_v43 = vpop.eup %1638 }
 0x480   : > { %528 = vrot.lane.b32.xlu0 %v1639_v43, %s1704_s5 }
 0x4f2   : > { %v529_v46 = vpop.permute.xlu0 %528 }
 0x4f3   : > { %v531_v48 = vmul.f32 %v529_v46, %v526_v45 }
 0x4f5   : > { %v536_v49 = vadd.f32 %v535_v47, %v531_v48 }
 0x4f7   : > { %538 = vrot.lane.b32.xlu0 %v536_v49, %s1704_s5 }
 0x569   : > { %v539_v50 = vpop.permute.xlu0 %538 }
 0x56a   : > { %541 = vst.msk [vmem:[#allocation2] sm:$0x3] %vm296_vm0, %v539_v50  ;;  %1432 = vst.msk [vmem:[%s1319_s16 + $0x2] sm:$0x3] %vm296_vm0, %v539_v50  ;;  %s1357_s16 = scalar_lea.vmem %s1811_s30, %s1460_s11 }
 0x571   : > { %v549_v51 = vld [vmem:[#allocation2] sm:$0x3] }
 0x572   : > { %1542 = vmatmul.mubr.msk.f32.vlgmr.msra.gmra.mxu0 %vm308_vm2, %v549_v51 }
 0x573   : > { %1556 = vmatpush3.msra.mxu0 %v1765_v2  ;;  %1563 = vmatprep.mubr.msk.f32.mxu0 %vm1701_vm1, %v1700_v0 }
 0x574   : > { %1557 = vmatprep.subr.mxu0 %v1700_v0 }
 0x575   : > { %1558 = vmatpush3.msra.mxu0 %v1767_v3 }
 0x576   : > { %1559 = vmatprep.subr.mxu0 %v1700_v0 }
 0x577   : > { %1560 = vmatpush3.msra.mxu0 %v1773_v4 }
 0x578   : > { %1561 = vmatprep.subr.mxu0 %v1700_v0 }
 0x579   : > { %1562 = vmatpush3.msra.mxu0 %v1779_v5 }
 0x57a   : > { %1577 = vmatprep.subr.mxu0 %v1700_v0 }
 0x632   : > { %v619_v52 = vpop.f32.mrf.mxu0 }
 0x633   : > { %v630_v53 = vadd.f32 %v619_v52, %v1801_v7  ;;  %v623_v56 = vadd.f32 %v1434_v55, %v619_v52 }
 0x634   : > { %v1543_v54 = vpop.f32.mrf.mxu0 }
 0x635   : > { %632 = vrot.lane.b32.xlu1 %v630_v53, %s1702_s24  ;;  %v1436_v57 = vmul.f32 -1.442695, %v623_v56 }
 0x637   : > { %1640 = vpow2.f32 %v1436_v57 }
 0x644   : > { %v1641_v58 = vpop.eup %1640 }
 0x645   : > { %v627_v59 = vadd.f32 1.0, %v1641_v58 }
 0x647   : > { %1642 = vrcp.f32 %v627_v59 }
 0x654   : > { %v1643_v60 = vpop.eup %1642 }
 0x655   : > { %v642_v9 = vsub.f32 1.0, %v1643_v60 }
 0x6a7   : > { %v633_v61 = vpop.permute.xlu1 %632 }
 0x6a8   : > { %v635_v62 = vmul.f32 %v1643_v60, %v633_v61 }
 0x6aa   : > { %637 = vrot.lane.b32.xlu0 %v635_v62, %s1702_s24 }
 0x6ae   : > { %648 = vrot.lane.b32.xlu0 %v549_v51, %s1703_s25 }
 0x71c   : > { %v638_v63 = vpop.permute.xlu0 %637 }
 0x71d   : > { %v640_v1 = vadd.f32 %v1434_v55, %v638_v63 }
 0x71f   : > { %1644 = vtanh.f32 %v640_v1 }
 0x720   : > { %v649_v8 = vpop.permute.xlu0 %648 }
 0x721   : > { %v651_v11 = vmul.f32 %v1643_v60, %v649_v8 }
 0x72c   : > { %v1645_v6 = vpop.eup %1644 }
 0x72d   : > { %644 = vrot.lane.b32.xlu1 %v1645_v6, %s1704_s5 }
 0x79f   : > { %v645_v10 = vpop.permute.xlu1 %644 }
 0x7a0   : > { %v647_v12 = vmul.f32 %v645_v10, %v642_v9 }
 0x7a2   : > { %v652_v13 = vadd.f32 %v651_v11, %v647_v12 }
 0x7a4   : > { %654 = vrot.lane.b32.xlu1 %v652_v13, %s1704_s5 }
 0x816   : > { %v655_v14 = vpop.permute.xlu1 %654 }
 0x817   : > { %657 = vst.msk [vmem:[#allocation2] sm:$0x3] %vm296_vm0, %v655_v14  ;;  %1438 = vst.msk [vmem:[%s1327_s19 + $0x4] sm:$0x3] %vm296_vm0, %v655_v14 }
 0x81e   : > { %v664_v15 = vld [vmem:[#allocation2] sm:$0x3] }
 0x81f   : > { %1553 = vmatmul.mubr.msk.f32.vlgmr.msra.gmra.mxu1 %vm308_vm2, %v664_v15 }
 0x820   : > { %1567 = vmatpush3.msra.mxu1 %v1765_v2  ;;  %1574 = vmatprep.mubr.msk.f32.mxu1 %vm1701_vm1, %v1700_v0 }
 0x821   : > { %1568 = vmatprep.subr.mxu1 %v1700_v0 }
 0x822   : > { %1569 = vmatpush3.msra.mxu1 %v1767_v3 }
 0x823   : > { %1570 = vmatprep.subr.mxu1 %v1700_v0 }
 0x824   : > { %1571 = vmatpush3.msra.mxu1 %v1773_v4 }
 0x825   : > { %1572 = vmatprep.subr.mxu1 %v1700_v0 }
 0x826   : > { %1573 = vmatpush3.msra.mxu1 %v1779_v5 }
 0x827   : > { %1588 = vmatprep.subr.mxu1 %v1700_v0 }
 0x8df   : > { %v734_v16 = vpop.f32.mrf.mxu1 }
 0x8e0   : > { %v745_v17 = vadd.f32 %v734_v16, %v1801_v7  ;;  %v738_v20 = vadd.f32 %v1440_v19, %v734_v16 }
 0x8e1   : > { %v1554_v18 = vpop.f32.mrf.mxu1 }
 0x8e2   : > { %747 = vrot.lane.b32.xlu0 %v745_v17, %s1702_s24  ;;  %v1442_v21 = vmul.f32 -1.442695, %v738_v20 }
 0x8e4   : > { %1646 = vpow2.f32 %v1442_v21 }
 0x8f1   : > { %v1647_v22 = vpop.eup %1646 }
 0x8f2   : > { %v742_v23 = vadd.f32 1.0, %v1647_v22  ;;  %v1455_v22 = vld [vmem:[%s1349_s9 + $0xc] sm:$0x3] }
 0x8f4   : > { %1648 = vrcp.f32 %v742_v23 }
 0x901   : > { %v1649_v24 = vpop.eup %1648 }
 0x902   : > { %v757_v31 = vsub.f32 1.0, %v1649_v24 }
 0x954   : > { %v748_v25 = vpop.permute.xlu0 %747 }
 0x955   : > { %v750_v26 = vmul.f32 %v1649_v24, %v748_v25 }
 0x957   : > { %752 = vrot.lane.b32.xlu1 %v750_v26, %s1702_s24 }
 0x95b   : > { %763 = vrot.lane.b32.xlu1 %v664_v15, %s1703_s25 }
 0x9c9   : > { %v753_v27 = vpop.permute.xlu1 %752 }
 0x9ca   : > { %v755_v28 = vadd.f32 %v1440_v19, %v753_v27 }
 0x9cc   : > { %1650 = vtanh.f32 %v755_v28 }
 0x9cd   : > { %v764_v30 = vpop.permute.xlu1 %763 }
 0x9ce   : > { %v766_v33 = vmul.f32 %v1649_v24, %v764_v30 }
 0x9d9   : > { %v1651_v29 = vpop.eup %1650 }
 0x9da   : > { %759 = vrot.lane.b32.xlu0 %v1651_v29, %s1704_s5 }
 0xa4c   : > { %v760_v32 = vpop.permute.xlu0 %759 }
 0xa4d   : > { %v762_v34 = vmul.f32 %v760_v32, %v757_v31 }
 0xa4f   : > { %v767_v35 = vadd.f32 %v766_v33, %v762_v34 }
 0xa51   : > { %769 = vrot.lane.b32.xlu0 %v767_v35, %s1704_s5 }
 0xac3   : > { %v770_v36 = vpop.permute.xlu0 %769 }
 0xac4   : > { %772 = vst.msk [vmem:[#allocation2] sm:$0x3] %vm296_vm0, %v770_v36  ;;  %1444 = vst.msk [vmem:[%s1333_s22 + $0x6] sm:$0x3] %vm296_vm0, %v770_v36 }
 0xacb   : > { %v779_v37 = vld [vmem:[#allocation2] sm:$0x3] }
 0xacc   : > { %1564 = vmatmul.mubr.msk.f32.vlgmr.msra.gmra.mxu0 %vm308_vm2, %v779_v37 }
 0xacd   : > { %1578 = vmatpush3.msra.mxu0 %v1765_v2  ;;  %1585 = vmatprep.mubr.msk.f32.mxu0 %vm1701_vm1, %v1700_v0 }
 0xace   : > { %1579 = vmatprep.subr.mxu0 %v1700_v0 }
 0xacf   : > { %1580 = vmatpush3.msra.mxu0 %v1767_v3 }
 0xad0   : > { %1581 = vmatprep.subr.mxu0 %v1700_v0 }
 0xad1   : > { %1582 = vmatpush3.msra.mxu0 %v1773_v4 }
 0xad2   : > { %1583 = vmatprep.subr.mxu0 %v1700_v0 }
 0xad3   : > { %1584 = vmatpush3.msra.mxu0 %v1779_v5 }
 0xb8c   : > { %v849_v38 = vpop.f32.mrf.mxu0 }
 0xb8d   : > { %v860_v39 = vadd.f32 %v849_v38, %v1801_v7  ;;  %v853_v42 = vadd.f32 %v849_v38, %v778_v41 }
 0xb8e   : > { %v1565_v40 = vpop.f32.mrf.mxu0 }
 0xb8f   : > { %862 = vrot.lane.b32.xlu1 %v860_v39, %s1702_s24  ;;  %v1447_v43 = vmul.f32 -1.442695, %v853_v42 }
 0xb91   : > { %1652 = vpow2.f32 %v1447_v43 }
 0xb9e   : > { %v1653_v44 = vpop.eup %1652 }
 0xb9f   : > { %v857_v45 = vadd.f32 1.0, %v1653_v44  ;;  %v1461_v44 = vld [vmem:[%s1357_s16 + $0xe] sm:$0x3] }
 0xba1   : > { %1654 = vrcp.f32 %v857_v45 }
 0xbae   : > { %v1655_v46 = vpop.eup %1654 }
 0xbaf   : > { %v872_v53 = vsub.f32 1.0, %v1655_v46 }
 0xc01   : > { %v863_v47 = vpop.permute.xlu1 %862 }
 0xc02   : > { %v865_v48 = vmul.f32 %v1655_v46, %v863_v47 }
 0xc04   : > { %867 = vrot.lane.b32.xlu0 %v865_v48, %s1702_s24 }
 0xc08   : > { %878 = vrot.lane.b32.xlu0 %v779_v37, %s1703_s25 }
 0xc76   : > { %v868_v49 = vpop.permute.xlu0 %867 }
 0xc77   : > { %v870_v50 = vadd.f32 %v868_v49, %v778_v41 }
 0xc79   : > { %1656 = vtanh.f32 %v870_v50 }
 0xc7a   : > { %v879_v52 = vpop.permute.xlu0 %878 }
 0xc7b   : > { %v881_v55 = vmul.f32 %v1655_v46, %v879_v52 }
 0xc86   : > { %v1657_v51 = vpop.eup %1656 }
 0xc87   : > { %874 = vrot.lane.b32.xlu1 %v1657_v51, %s1704_s5 }
 0xcf9   : > { %v875_v54 = vpop.permute.xlu1 %874 }
 0xcfa   : > { %v877_v56 = vmul.f32 %v875_v54, %v872_v53 }
 0xcfc   : > { %v882_v57 = vadd.f32 %v881_v55, %v877_v56 }
 0xcfe   : > { %884 = vrot.lane.b32.xlu1 %v882_v57, %s1704_s5 }
 0xd70   : > { %v885_v58 = vpop.permute.xlu1 %884 }
 0xd71   : > { %887 = vst.msk [vmem:[#allocation2] sm:$0x3] %vm296_vm0, %v885_v58  ;;  %889 = vst.msk [vmem:[%s888_s28] sm:$0x3] %vm296_vm0, %v885_v58 }
 0xd78   : > { %v895_v59 = vld [vmem:[#allocation2] sm:$0x3] }
 0xd79   : > { %1575 = vmatmul.mubr.msk.f32.vlgmr.msra.gmra.mxu1 %vm308_vm2, %v895_v59 }
 0xd7a   : > { %1589 = vmatpush3.msra.mxu1 %v1765_v2  ;;  %1596 = vmatprep.mubr.msk.f32.mxu1 %vm1701_vm1, %v1700_v0  ;;  %v1449_v2 = vld [vmem:[%s1341_s4 + $0xa] sm:$0x3] }
 0xd7b   : > { %1590 = vmatprep.subr.mxu1 %v1700_v0 }
 0xd7c   : > { %1591 = vmatpush3.msra.mxu1 %v1767_v3 }
 0xd7d   : > { %1592 = vmatprep.subr.mxu1 %v1700_v0 }
 0xd7e   : > { %1593 = vmatpush3.msra.mxu1 %v1773_v4 }
 0xd7f   : > { %1594 = vmatprep.subr.mxu1 %v1700_v0 }
 0xd80   : > { %1595 = vmatpush3.msra.mxu1 %v1779_v5 }
 0xe39   : > { %v965_v60 = vpop.f32.mrf.mxu1 }
 0xe3a   : > { %v976_v61 = vadd.f32 %v965_v60, %v1801_v7  ;;  %v969_v63 = vadd.f32 %v1449_v2, %v965_v60 }
 0xe3b   : > { %v1576_v62 = vpop.f32.mrf.mxu1 }
 0xe3c   : > { %978 = vrot.lane.b32.xlu0 %v976_v61, %s1702_s24  ;;  %v1451_v1 = vmul.f32 -1.442695, %v969_v63 }
 0xe3e   : > { %1658 = vpow2.f32 %v1451_v1 }
 0xe4b   : > { %v1659_v3 = vpop.eup %1658 }
 0xe4c   : > { %v973_v6 = vadd.f32 1.0, %v1659_v3 }
 0xe4e   : > { %1660 = vrcp.f32 %v973_v6 }
 0xe5b   : > { %v1661_v4 = vpop.eup %1660 }
 0xe5c   : > { %v988_v12 = vsub.f32 1.0, %v1661_v4 }
 0xeae   : > { %v979_v8 = vpop.permute.xlu0 %978 }
 0xeaf   : > { %v981_v0 = vmul.f32 %v1661_v4, %v979_v8 }
 0xeb1   : > { %983 = vrot.lane.b32.xlu1 %v981_v0, %s1702_s24 }
 0xeb5   : > { %994 = vrot.lane.b32.xlu1 %v895_v59, %s1703_s25 }
 0xf23   : > { %v984_v5 = vpop.permute.xlu1 %983 }
 0xf24   : > { %v986_v9 = vadd.f32 %v1449_v2, %v984_v5 }
 0xf26   : > { %1662 = vtanh.f32 %v986_v9 }
 0xf27   : > { %v995_v11 = vpop.permute.xlu1 %994 }
 0xf28   : > { %v997_v14 = vmul.f32 %v1661_v4, %v995_v11 }
 0xf33   : > { %v1663_v10 = vpop.eup %1662 }
 0xf34   : > { %990 = vrot.lane.b32.xlu0 %v1663_v10, %s1704_s5 }
 0xfa6   : > { %v991_v13 = vpop.permute.xlu0 %990 }
 0xfa7   : > { %v993_v15 = vmul.f32 %v991_v13, %v988_v12 }
 0xfa9   : > { %v998_v16 = vadd.f32 %v997_v14, %v993_v15 }
 0xfab   : > { %1000 = vrot.lane.b32.xlu0 %v998_v16, %s1704_s5 }
0x101d   : > { %v1001_v17 = vpop.permute.xlu0 %1000 }
0x101e   : > { %1003 = vst.msk [vmem:[#allocation2] sm:$0x3] %vm296_vm0, %v1001_v17  ;;  %1453 = vst.msk [vmem:[%s1345_s6 + $0xa] sm:$0x3] %vm296_vm0, %v1001_v17 }
0x1025   : > { %v1011_v18 = vld [vmem:[#allocation2] sm:$0x3] }
0x1026   : > { %1586 = vmatmul.mubr.msk.f32.vlgmr.msra.gmra.mxu0 %vm308_vm2, %v1011_v18 }
0x10e6   : > { %v1081_v19 = vpop.f32.mrf.mxu0 }
0x10e7   : > { %v1092_v20 = vadd.f32 %v1081_v19, %v1801_v7  ;;  %v1085_v23 = vadd.f32 %v1455_v22, %v1081_v19 }
0x10e8   : > { %v1587_v21 = vpop.f32.mrf.mxu0 }
0x10e9   : > { %1094 = vrot.lane.b32.xlu1 %v1092_v20, %s1702_s24  ;;  %v1457_v24 = vmul.f32 -1.442695, %v1085_v23 }
0x10eb   : > { %1664 = vpow2.f32 %v1457_v24 }
0x10f8   : > { %v1665_v25 = vpop.eup %1664 }
0x10f9   : > { %v1089_v26 = vadd.f32 1.0, %v1665_v25 }
0x10fb   : > { %1666 = vrcp.f32 %v1089_v26 }
0x1108   : > { %v1667_v27 = vpop.eup %1666 }
0x1109   : > { %v1104_v34 = vsub.f32 1.0, %v1667_v27 }
0x115b   : > { %v1095_v28 = vpop.permute.xlu1 %1094 }
0x115c   : > { %v1097_v29 = vmul.f32 %v1667_v27, %v1095_v28 }
0x115e   : > { %1099 = vrot.lane.b32.xlu0 %v1097_v29, %s1702_s24 }
0x1162   : > { %1110 = vrot.lane.b32.xlu0 %v1011_v18, %s1703_s25 }
0x11d0   : > { %v1100_v30 = vpop.permute.xlu0 %1099 }
0x11d1   : > { %v1102_v31 = vadd.f32 %v1455_v22, %v1100_v30 }
0x11d3   : > { %1668 = vtanh.f32 %v1102_v31 }
0x11d4   : > { %v1111_v33 = vpop.permute.xlu0 %1110 }
0x11d5   : > { %v1113_v36 = vmul.f32 %v1667_v27, %v1111_v33 }
0x11e0   : > { %v1669_v32 = vpop.eup %1668 }
0x11e1   : > { %1106 = vrot.lane.b32.xlu1 %v1669_v32, %s1704_s5 }
0x1253   : > { %v1107_v35 = vpop.permute.xlu1 %1106 }
0x1254   : > { %v1109_v37 = vmul.f32 %v1107_v35, %v1104_v34 }
0x1256   : > { %v1114_v38 = vadd.f32 %v1113_v36, %v1109_v37 }
0x1258   : > { %1116 = vrot.lane.b32.xlu1 %v1114_v38, %s1704_s5 }
0x12ca   : > { %v1117_v39 = vpop.permute.xlu1 %1116 }
0x12cb   : > { %1119 = vst.msk [vmem:[#allocation2] sm:$0x3] %vm296_vm0, %v1117_v39  ;;  %1459 = vst.msk [vmem:[%s1353_s10 + $0xc] sm:$0x3] %vm296_vm0, %v1117_v39 }
0x12d2   : > { %v1127_v40 = vld [vmem:[#allocation2] sm:$0x3] }
0x12d3   : > { %1597 = vmatmul.mubr.msk.f32.vlgmr.msra.gmra.mxu1 %vm308_vm2, %v1127_v40 }
0x1393   : > { %v1197_v41 = vpop.f32.mrf.mxu1 }
0x1394   : > { %v1208_v42 = vadd.f32 %v1197_v41, %v1801_v7  ;;  %v1201_v45 = vadd.f32 %v1461_v44, %v1197_v41 }
0x1395   : > { %v1598_v43 = vpop.f32.mrf.mxu1 }
0x1396   : > { %1210 = vrot.lane.b32.xlu0 %v1208_v42, %s1702_s24  ;;  %v1463_v46 = vmul.f32 -1.442695, %v1201_v45 }
0x1398   : > { %1670 = vpow2.f32 %v1463_v46 }
0x13a5   : > { %v1671_v47 = vpop.eup %1670 }
0x13a6   : > { %v1205_v48 = vadd.f32 1.0, %v1671_v47 }
0x13a8   : > { %1672 = vrcp.f32 %v1205_v48 }
0x13b5   : > { %v1673_v49 = vpop.eup %1672 }
0x13b6   : > { %v1220_v55 = vsub.f32 1.0, %v1673_v49 }
0x1408   : > { %v1211_v50 = vpop.permute.xlu0 %1210 }
0x1409   : > { %v1213_v51 = vmul.f32 %v1673_v49, %v1211_v50 }
0x140b   : > { %1215 = vrot.lane.b32.xlu1 %v1213_v51, %s1702_s24 }
0x140f   : > { %1226 = vrot.lane.b32.xlu1 %v1127_v40, %s1703_s25 }
0x147d   : > { %v1216_v7 = vpop.permute.xlu1 %1215 }
0x147e   : > { %v1218_v52 = vadd.f32 %v1461_v44, %v1216_v7 }
0x1480   : > { %1674 = vtanh.f32 %v1218_v52 }
0x1481   : > { %v1227_v54 = vpop.permute.xlu1 %1226 }
0x1482   : > { %v1229_v57 = vmul.f32 %v1673_v49, %v1227_v54 }
0x148d   : > { %v1675_v53 = vpop.eup %1674 }
0x148e   : > { %1222 = vrot.lane.b32.xlu0 %v1675_v53, %s1704_s5 }
0x1500   : > { %v1223_v56 = vpop.permute.xlu0 %1222 }
0x1501   : > { %v1225_v58 = vmul.f32 %v1223_v56, %v1220_v55 }
0x1503   : > { %v1230_v59 = vadd.f32 %v1229_v57, %v1225_v58 }
0x1505   : > { %1232 = vrot.lane.b32.xlu0 %v1230_v59, %s1704_s5 }
0x1577   : > { %v1233_v60 = vpop.permute.xlu0 %1232 }
0x1578   : > { %1235 = vst.msk [vmem:[#allocation2] sm:$0x3] %vm296_vm0, %v1233_v60  ;;  %1465 = vst.msk [vmem:[%s1361_s12 + $0xe] sm:$0x3] %vm296_vm0, %v1233_v60 }
0x1579 PF: > { %s13_s14 = sadd.s32 1, %s1698_s14   ;;  %s1974_s12 = smov %s1694_s13 }
0x157a   : > { %p10_p5 = scmp.ge.s32.totalorder %s13_s14, 4   ;;  %s1975_s13 = smov %s1977_s15 }
0x157c   :  { %12 = sbr.rel (!%p10_p5) target bundleno = 2 (0x2), region = 88 }

// kernel: zgru_forward.9
= control target key start
LH: loop header
LB: loop body
LE: loop exit
PB: predicated region body
PF: predicated region fallthrough
CT: control target
= control target key end

     0   :  { %v388_v1 = vmov 0.0   ;;  %vm389_vm0 = vmmov 0   ;;  %s499_s0 = inlined_call_operand.vmem [shape: f32[2,32], index: 0, kind: input, shape index: {}]   ;;  %s500_s1 = inlined_call_operand.vmem [shape: f32[2,32], index: 1, kind: input, shape index: {}]   ;;  %s501_s2 = inlined_call_operand.vmem [shape: f32[32,64], index: 2, kind: input, shape index: {}]   ;;  %s502_s3 = inlined_call_operand.vmem [shape: f32[32,64], index: 3, kind: input, shape index: {}]   ;;  %s503_s4 = inlined_call_operand.vmem [shape: f32[1,64], index: 4, kind: input, shape index: {}]   ;;  %s504_s5 = inlined_call_operand.vmem [shape: f32[64,8], index: 5, kind: input, shape index: {}]   ;;  %s505_s6 = inlined_call_operand.vmem [shape: f32[1,8], index: 6, kind: input, shape index: {}]   ;;  %s506_s7 = inlined_call_operand.hbm [shape: f32[2,8], index: 7, kind: output, shape index: {}]  }
   0x1   :  { %v36_v0 = vld [vmem:[%s502_s3 + $0x18] sm:$0xff]  ;;  %322 = vmatprep.subr.mxu1 %v388_v1  ;;  %v35_v2 = vld [vmem:[%s502_s3 + $0x10] sm:$0xff]  ;;  %330 = vmatprep.mubr.msk.f32.mxu1 %vm389_vm0, %v388_v1  ;;  %v34_v3 = vld [vmem:[%s502_s3 + $0x8] sm:$0xff] }
   0x2   :  { %323 = vmatpush3.msra.mxu1 %v36_v0  ;;  %344 = vmatprep.subr.mxu0 %v388_v1 }
   0x3   :  { %324 = vmatprep.subr.mxu1 %v388_v1  ;;  %360 = vmatprep.mubr.msk.f32.mxu0 %vm389_vm0, %v388_v1 }
   0x4   :  { %12 = vsyncpa [#allocation3], 0  ;;  %325 = vmatpush3.msra.mxu1 %v35_v2  ;;  %v33_v4 = vld [vmem:[%s502_s3] sm:$0xff]  ;;  %vm37_vm1 = vcmask 261120   ;;  %v31_v6 = vld [vmem:[%s501_s2 + $0x18] sm:$0xff]  ;;  %vm208_vm2 = vcmask 523264  }
   0x5   :  { %326 = vmatprep.subr.mxu1 %v388_v1  ;;  %v32_v5 = vld [vmem:[%s500_s1] sm:$0x3]  ;;  %v30_v7 = vld [vmem:[%s501_s2 + $0x10] sm:$0xff]  ;;  %v29_v8 = vld [vmem:[%s501_s2 + $0x8] sm:$0xff]  ;;  %s390_s14 = smov [#allocation2]   ;;  %vm282_vm3 = vcmask 58368  }
   0x6   :  { %327 = vmatpush3.msra.mxu1 %v34_v3  ;;  %v28_v9 = vld [vmem:[%s501_s2] sm:$0xff]  ;;  %v200_v11 = vld [vmem:[%s504_s5 + $0x38] sm:$0xff]  ;;  %v199_v12 = vld [vmem:[%s504_s5 + $0x30] sm:$0xff] }
   0x7   :  { %328 = vmatprep.subr.mxu1 %v388_v1  ;;  %v27_v10 = vld [vmem:[%s499_s0] sm:$0x3]  ;;  %345 = vmatpush3.msra.mxu0 %v200_v11  ;;  %v198_v13 = vld [vmem:[%s504_s5 + $0x28] sm:$0xff]  ;;  %v196_v15 = vld [vmem:[%s504_s5 + $0x18] sm:$0xff] }
   0x8   :  { %329 = vmatpush3.msra.mxu1 %v33_v4  ;;  %346 = vmatprep.subr.mxu0 %v388_v1  ;;  %v197_v14 = vld [vmem:[%s504_s5 + $0x20] sm:$0xff]  ;;  %v195_v16 = vld [vmem:[%s504_s5 + $0x10] sm:$0xff]  ;;  %v194_v17 = vld [vmem:[%s504_s5 + $0x8] sm:$0xff] }
   0x9   :  { %331 = vmatmul.mubr.msk.f32.vlgmr.msra.gmra.mxu1 %vm37_vm1, %v32_v5  ;;  %333 = vmatprep.subr.mxu1 %v388_v1  ;;  %v193_v18 = vld [vmem:[%s504_s5] sm:$0xff]  ;;  %s290_s5 = sshll.u32 %s390_s14, 4  ;;  %s291_s5 = int_to_ptr.vmem [resolvable:$true] %s290_s5 }
   0xa   :  { %334 = vmatpush3.msra.mxu1 %v31_v6  ;;  %341 = vmatprep.mubr.msk.f32.mxu1 %vm389_vm0, %v388_v1  ;;  %v300_v22 = vld [vmem:[%s503_s4] ss:$0 sm:$0xff]  ;;  %s366_s3 = scalar_lea.vmem %s291_s5, 32  ;;  %p371_p1 = scmp.lt.s32.totalorder %s291_s5, %s291_s5 }
   0xb   :  { %335 = vmatprep.subr.mxu1 %v388_v1  ;;  %347 = vmatpush3.msra.mxu0 %v199_v12  ;;  %v301_v27 = vld [vmem:[%s505_s6] ss:$0 sm:$0xff]  ;;  %p367_p0 = scmp.ne.s32.totalorder %s291_s5, %s366_s3  ;;  %p372_p2 = scmp.lt.s32.totalorder %s366_s3, %s366_s3 }
   0xc   :  { %336 = vmatpush3.msra.mxu1 %v30_v7  ;;  %348 = vmatprep.subr.mxu0 %v388_v1 }
   0xd   :  { %337 = vmatprep.subr.mxu1 %v388_v1  ;;  %349 = vmatpush3.msra.mxu0 %v198_v13  ;;  %p373_p3 = por %p372_p2, %p371_p1 }
   0xe   :  { %338 = vmatpush3.msra.mxu1 %v29_v8  ;;  %350 = vmatprep.subr.mxu0 %v388_v1 }
   0xf   :  { %339 = vmatprep.subr.mxu1 %v388_v1  ;;  %351 = vmatpush3.msra.mxu0 %v197_v14  ;;  %p374_p4 = pnand %p373_p3, %p367_p0 }
  0x10   :  { %340 = vmatpush3.msra.mxu1 %v28_v9  ;;  %352 = vmatprep.subr.mxu0 %v388_v1 }
  0x11   :  { %342 = vmatmul.mubr.msk.f32.vlgmr.msra.gmra.mxu1 %vm37_vm1, %v27_v10  ;;  %353 = vmatpush3.msra.mxu0 %v196_v15 }
  0x12   :  { %354 = vmatprep.subr.mxu0 %v388_v1 }
  0x13   :  { %355 = vmatpush3.msra.mxu0 %v195_v16 }
  0x14   :  { %356 = vmatprep.subr.mxu0 %v388_v1 }
  0x15   :  { %357 = vmatpush3.msra.mxu0 %v194_v17 }
  0x16   :  { %358 = vmatprep.subr.mxu0 %v388_v1 }
  0x17   :  { %359 = vmatpush3.msra.mxu0 %v193_v18 }
  0xc9   :  { %v107_v19 = vpop.f32.mrf.mxu1 }
  0xcb   :  { %v332_v20 = vpop.f32.mrf.mxu1 }
  0xd1   :  { %v180_v21 = vpop.f32.mrf.mxu1 }
  0xd2   :  { %v181_v23 = vadd.f32 %v180_v21, %v107_v19 }
  0xd3   :  { %v343_v24 = vpop.f32.mrf.mxu1 }
  0xd4   :  { %v191_v25 = vadd.f32 %v300_v22, %v181_v23 }
  0xd6   :  { %v192_v26 = vmax.f32 %v191_v25, 0.0 }
  0xd8   :  { %361 = vmatmul.mubr.msk.f32.vlgmr.msra.gmra.mxu0 %vm208_vm2, %v192_v26 }
 0x198   :  { %v278_v28 = vpop.f32.mrf.mxu0 }
 0x199   :  { %v279_v29 = vadd.f32 %v301_v27, %v278_v28 }
 0x19a   :  { %v362_v30 = vpop.f32.mrf.mxu0 }
 0x19b   :  { %283 = vst.msk [vmem:[#allocation2] sm:$0x3] %vm282_vm3, %v279_v29 }
 0x19c   :  { %377 = shalt.err (!%p374_p4)
}
 0x19d   :  { %293 = dma.vmem_to_hbm [thread:$0]  %s291_s5, 32, %s506_s7, [#allocation3]  }
 0x19e   :  { %386 = dma.done.wait [#allocation3], 32  }
 0x19f   :  { %387 = vsyncadd [#allocation3], 4294967264 }
 0x1a0   :  { %297 = vsyncpa [#allocation3], 1 }

</bundles_post_ra>
